<compile_context>
chip_gen: v6e
topology: v6e:2x2x1
jax: 0.10.0
libtpu: 0.0.40
codegen_flags: <defaults>
</compile_context>

<pallas_src>
import functools

import jax
import jax.numpy as jnp
import numpy as np
from jax.experimental import pallas as pl
from jax.experimental.pallas import tpu as pltpu


# ----------------------------------------------------------------------------
# Small helpers (value ops only - safe on Mosaic and in interpret mode)
# ----------------------------------------------------------------------------
def _split_even_odd(a, axis):
    """Return (even, odd) index slabs of `a` along `axis`.

    even[..., i, ...] = a[..., 2*i, ...]; odd[..., i, ...] = a[..., 2*i+1, ...].
    The axis is zero-padded to even length first.  Implemented with
    concatenate + reshape + static slicing only (no strided slices, no
    strided pl.ds), so it lowers cleanly everywhere.
    """
    n = a.shape[axis]
    if n % 2:
        pad_shape = list(a.shape)
        pad_shape[axis] = 1
        a = jnp.concatenate([a, jnp.zeros(pad_shape, a.dtype)], axis=axis)
        n += 1
    new_shape = list(a.shape)
    new_shape[axis:axis + 1] = [n // 2, 2]
    a = a.reshape(new_shape)
    sel = [slice(None)] * a.ndim
    sel[axis + 1] = 0
    even = a[tuple(sel)]
    sel[axis + 1] = 1
    odd = a[tuple(sel)]
    return even, odd


# ----------------------------------------------------------------------------
# Kernel: one grid step = NB whole images.
# ----------------------------------------------------------------------------
def _bottleneck_kernel(x_ref, w1_ref, w2_ref, w3_ref, b1_ref, b2_ref, b3_ref,
                       *rest, stride, downsample):
    if downsample:
        wd_ref, bd_ref, out_ref = rest
    else:
        (out_ref,) = rest

    f32 = jnp.float32
    bf16 = jnp.bfloat16
    nb, h, w, cin = x_ref.shape
    _, ho, wo, cout = out_ref.shape
    c4 = w1_ref.shape[1]
    s = stride
    m = nb * ho * wo

    x = x_ref[...]                                            # (nb, h, w, cin)

    # ---- conv1: 1x1 + folded BN + ReLU (one matmul, M = nb*h*w) -------------
    y1 = jnp.dot(x.reshape(nb * h * w, cin), w1_ref[...],
                 preferred_element_type=f32)
    y1 = jnp.maximum(y1 + b1_ref[...], 0.0).astype(bf16).reshape(nb, h, w, c4)

    # ---- conv2: 3x3 stride s + folded BN + ReLU ------------------------------
    # Zero-pad spatial borders as values (no HBM padding of x needed).
    zc = jnp.zeros((nb, h, 1, c4), bf16)
    y1p = jnp.concatenate([zc, y1, zc], axis=2)               # (nb, h, w+2, c4)
    zr = jnp.zeros((nb, 1, w + 2, c4), bf16)
    y1p = jnp.concatenate([zr, y1p, zr], axis=1)              # (nb, h+2, w+2, c4)

    if s == 1:
        def tap(ky, kx):
            return y1p[:, ky:ky + ho, kx:kx + wo, :]
    else:
        # De-interleave rows/columns by parity once; every tap is then a
        # contiguous static slice of one of the four parity slabs.
        slabs = []
        for cpar in _split_even_odd(y1p, axis=2):             # column parity
            slabs.append(_split_even_odd(cpar, axis=1))       # row parity
        # slabs[cp][rp][:, i, j, :] == y1p[:, 2*i + rp, 2*j + cp, :]

        def tap(ky, kx):
            slab = slabs[kx % 2][ky % 2]
            return slab[:, ky // 2:ky // 2 + ho, kx // 2:kx // 2 + wo, :]

    # 9 accumulating dots (K = C4); accumulator stays a value (no VMEM scratch).
    acc = None
    for ky in range(3):
        for kx in range(3):
            part = jnp.dot(tap(ky, kx).reshape(m, c4), w2_ref[ky, kx],
                           preferred_element_type=f32)
            acc = part if acc is None else acc + part
    y2 = jnp.maximum(acc + b2_ref[...], 0.0).astype(bf16)     # (m, c4)

    # ---- conv3: 1x1 + folded BN (no ReLU yet) --------------------------------
    y3 = jnp.dot(y2, w3_ref[...], preferred_element_type=f32) + b3_ref[...]

    # ---- residual branch ------------------------------------------------------
    if downsample:
        xs = x
        if s == 2:
            xs, _ = _split_even_odd(xs, axis=2)               # even columns
            xs, _ = _split_even_odd(xs, axis=1)               # even rows
        res = jnp.dot(xs.reshape(m, cin), wd_ref[...],
                      preferred_element_type=f32) + bd_ref[...]
    else:
        res = x.reshape(m, cout).astype(f32)                  # identity bypass

    out = jnp.maximum(y3 + res, 0.0)
    out_ref[...] = out.reshape(nb, ho, wo, cout).astype(out_ref.dtype)


# ----------------------------------------------------------------------------
# Wrapper
# ----------------------------------------------------------------------------
def _vmem_limit_bytes():
    """VMEM budget with headroom, derived from the device (fallback: 64 MiB)."""
    try:
        if jax.devices()[0].platform == "tpu":
            cap = pltpu.get_tpu_info().vmem_capacity_bytes
            return int(cap * 7 // 8)          # ~56 MiB on v7x, ~112 MiB on v5e/v6e
    except Exception:
        pass
    return 64 * 1024 * 1024


def _pick_images_per_step(n, h, w, ho, wo, cin, c4, cout, vmem_budget):
    """Images per grid step: push matmul M (= nb*ho*wo) toward >=256 rows while
    keeping the per-step working set inside the VMEM budget."""
    want = max(1, -(-256 // max(ho * wo, 1)))
    per_img = (2 * 2 * h * w * cin            # x block (bf16, double-buffered)
               + 2 * 2 * ho * wo * cout       # out block (bf16, double-buffered)
               + 8 * h * w * c4               # y1 + padded copy / parity slabs
               + 4 * ho * wo * c4             # conv2 accumulator (f32)
               + 12 * ho * wo * cout)         # conv3 + residual + sum (f32)
    cap = max(1, (vmem_budget // 2) // max(per_img, 1))
    nb = max(1, min(want, cap, n))
    while n % nb:
        nb -= 1
    return nb


def bottleneck_v1_nhwc(x_nhwc, params, *, stride, downsample):
    """Fast path: x [N, H, W, Cin] -> [N, Ho, Wo, Cout] bfloat16 (NHWC kept for
    chaining blocks without per-block transposes)."""
    N, H, W, Cin = x_nhwc.shape
    w1, w2, w3 = params["w1"], params["w2"], params["w3"]
    C4, Cout = w1.shape[1], w3.shape[1]
    s = stride
    Ho = (H - 1) // s + 1
    Wo = (W - 1) // s + 1
    if not downsample:
        assert s == 1 and Cin == Cout, "identity shortcut needs stride=1, Cin==Cout"

    bf16, f32 = jnp.bfloat16, jnp.float32
    x = x_nhwc.astype(bf16)

    # Fold eval-mode BN scales into the conv weights (biases stay f32).
    w1e = (w1 * params["s1"]).astype(bf16)                    # (Cin, C4)
    w2e = (w2 * params["s2"]).astype(bf16)                    # (3, 3, C4, C4)
    w3e = (w3 * params["s3"]).astype(bf16)                    # (C4, Cout)
    b1 = params["b1"].astype(f32)
    b2 = params["b2"].astype(f32)
    b3 = params["b3"].astype(f32)

    vmem_budget = _vmem_limit_bytes()
    NB = _pick_images_per_step(N, H, W, Ho, Wo, Cin, C4, Cout, vmem_budget)
    grid = (N // NB,)

    kernel = functools.partial(_bottleneck_kernel, stride=s,
                               downsample=downsample)

    def build_and_call(single_buffer_weights):
        def const_spec(shape):
            idx = lambda i: (0,) * len(shape)
            if single_buffer_weights:
                try:
                    # Constant blocks: no need to double-buffer (saves VMEM,
                    # important for v7x late stages with ~12 MB of weights).
                    return pl.BlockSpec(shape, idx, pipeline_mode=pl.Buffered(1))
                except Exception:
                    pass
            return pl.BlockSpec(shape, idx)

        in_specs = [
            pl.BlockSpec((NB, H, W, Cin), lambda i: (i, 0, 0, 0)),   # x chunk
            const_spec((Cin, C4)),                                   # w1 * s1
            const_spec((3, 3, C4, C4)),                              # w2 * s2
            const_spec((C4, Cout)),                                  # w3 * s3
            const_spec((1, C4)), const_spec((1, C4)), const_spec((1, Cout)),
        ]
        args = [x, w1e, w2e, w3e, b1, b2, b3]
        if downsample:
            wde = (params["wd"] * params["sd"]).astype(bf16)
            in_specs += [const_spec((Cin, Cout)), const_spec((1, Cout))]
            args += [wde, params["bd"].astype(f32)]

        return pl.pallas_call(
            kernel,
            out_shape=jax.ShapeDtypeStruct((N, Ho, Wo, Cout), bf16),
            grid=grid,
            in_specs=in_specs,
            out_specs=pl.BlockSpec((NB, Ho, Wo, Cout), lambda i: (i, 0, 0, 0)),
            compiler_params=pltpu.CompilerParams(
                dimension_semantics=("parallel",),
                vmem_limit_bytes=vmem_budget),
        )(*args)

    try:
        return build_and_call(True)
    except Exception:
        # Fallback: default (double-buffered) weight blocks.
        return build_and_call(False)


def bottleneck_v1(x_nchw, params, *, stride, downsample):
    """Drop-in NCHW API matching the PyTorch module (eval-mode BatchNorm).
    x_nchw: [N, Cin, H, W] float32 -> [N, Cout, Ho, Wo] float32."""
    x = jnp.transpose(x_nchw, (0, 2, 3, 1))
    out = bottleneck_v1_nhwc(x, params, stride=stride, downsample=downsample)
    return jnp.transpose(out, (0, 3, 1, 2)).astype(x_nchw.dtype)


# ----------------------------------------------------------------------------
# Parameter construction (deterministic, synthetic) and pure-JAX reference
# ----------------------------------------------------------------------------
def _fold_bn(key, c, eps=1e-5):
    k1, k2, k3, k4 = jax.random.split(key, 4)
    gamma = jax.random.uniform(k1, (c,), jnp.float32, 0.5, 1.5)
    beta = 0.1 * jax.random.normal(k2, (c,), jnp.float32)
    rmean = 0.1 * jax.random.normal(k3, (c,), jnp.float32)
    rvar = jax.random.uniform(k4, (c,), jnp.float32, 0.5, 1.5)
    scale = gamma / jnp.sqrt(rvar + eps)
    bias = beta - rmean * scale
    return scale.reshape(1, c), bias.reshape(1, c)


def make_params(key, in_channels, channels):
    c4, cout = channels // 4, channels
    ks = jax.random.split(key, 8)
    p = {
        "w1": 0.1 * jax.random.normal(ks[0], (in_channels, c4), jnp.float32),
        "w2": 0.1 * jax.random.normal(ks[1], (3, 3, c4, c4), jnp.float32),
        "w3": 0.1 * jax.random.normal(ks[2], (c4, cout), jnp.float32),
        "wd": 0.1 * jax.random.normal(ks[3], (in_channels, cout), jnp.float32),
    }
    p["s1"], p["b1"] = _fold_bn(ks[4], c4)
    p["s2"], p["b2"] = _fold_bn(ks[5], c4)
    p["s3"], p["b3"] = _fold_bn(ks[6], cout)
    p["sd"], p["bd"] = _fold_bn(ks[7], cout)
    return p


def bottleneck_v1_ref(x_nchw, params, *, stride, downsample):
    """Pure-JAX reference (lax convs, NHWC) with the same bf16 rounding of
    weights / intermediate activations as the kernel."""
    f32 = jnp.float32
    rnd = lambda a: a.astype(jnp.bfloat16).astype(f32)
    x = rnd(jnp.transpose(x_nchw, (0, 2, 3, 1)))
    dn = ("NHWC", "HWIO", "NHWC")

    def conv(v, w_hwio, s, pad):
        return jax.lax.conv_general_dilated(v, w_hwio, (s, s), padding=pad,
                                            dimension_numbers=dn)

    cin, c4 = params["w1"].shape
    cout = params["w3"].shape[1]

    y = conv(x, rnd(params["w1"] * params["s1"]).reshape(1, 1, cin, c4), 1,
             [(0, 0), (0, 0)])
    y = rnd(jnp.maximum(y + params["b1"][0], 0.0))
    y = conv(y, rnd(params["w2"] * params["s2"]), stride, [(1, 1), (1, 1)])
    y = rnd(jnp.maximum(y + params["b2"][0], 0.0))
    y = conv(y, rnd(params["w3"] * params["s3"]).reshape(1, 1, c4, cout), 1,
             [(0, 0), (0, 0)])
    y = y + params["b3"][0]
    if downsample:
        r = conv(x, rnd(params["wd"] * params["sd"]).reshape(1, 1, cin, cout),
                 stride, [(0, 0), (0, 0)])
        r = r + params["bd"][0]
    else:
        r = x
    return jnp.transpose(jnp.maximum(y + r, 0.0), (0, 3, 1, 2))


# ----------------------------------------------------------------------------
if __name__ == "__main__":
    key = jax.random.PRNGKey(0)
    N = 2
    configs = [
        # (in_channels, channels, H, W, stride, downsample)
        (64, 64, 16, 16, 1, False),   # identity shortcut block
        (64, 128, 8, 8, 1, True),     # projection shortcut, stride 1 (NB > 1)
        (32, 64, 16, 16, 2, True),    # strided downsample block
        (32, 64, 15, 15, 2, True),    # odd spatial dims, stride 2
    ]
    for cin, ch, H, W, s, use_ds in configs:
        kx_, kp_, key = jax.random.split(key, 3)
        x = jax.random.normal(kx_, (N, cin, H, W), jnp.float32)
        params = make_params(kp_, cin, ch)

        out = jax.block_until_ready(
            bottleneck_v1(x, params, stride=s, downsample=use_ds))
        ref = jax.block_until_ready(
            bottleneck_v1_ref(x, params, stride=s, downsample=use_ds))

        Ho, Wo = (H - 1) // s + 1, (W - 1) // s + 1
        assert out.shape == (N, ch, Ho, Wo), out.shape
        np.testing.assert_allclose(np.asarray(out), np.asarray(ref),
                                   rtol=2e-2, atol=2e-2)
    print("KERNEL_OK")
</pallas_src>

<mosaic_0001>
module attributes {stable_mosaic.version = 11 : i64} {
  func.func @_bottleneck_kernel(%arg0: i32, %arg1: memref<1x16x16x64xbf16, #tpu.memory_space<vmem>>, %arg2: memref<64x16xbf16, #tpu.memory_space<vmem>>, %arg3: memref<3x3x16x16xbf16, #tpu.memory_space<vmem>>, %arg4: memref<16x64xbf16, #tpu.memory_space<vmem>>, %arg5: memref<1x16xf32, #tpu.memory_space<vmem>>, %arg6: memref<1x16xf32, #tpu.memory_space<vmem>>, %arg7: memref<1x64xf32, #tpu.memory_space<vmem>>, %arg8: memref<1x16x16x64xbf16, #tpu.memory_space<vmem>>) attributes {dimension_semantics = [#tpu.dimension_semantics<parallel>], iteration_bounds = array<i64: 2>, scalar_prefetch = 0 : i64, scratch_operands = 0 : i64, tpu.core_type = #tpu.core_type<tc>, window_params = [{transform_indices = @transform_0, window_bounds = array<i64: 1, 16, 16, 64>}, {pipeline_mode = #tpu.pipeline_mode<synchronous>, transform_indices = @transform_1, window_bounds = array<i64: 64, 16>}, {pipeline_mode = #tpu.pipeline_mode<synchronous>, transform_indices = @transform_2, window_bounds = array<i64: 3, 3, 16, 16>}, {pipeline_mode = #tpu.pipeline_mode<synchronous>, transform_indices = @transform_3, window_bounds = array<i64: 16, 64>}, {pipeline_mode = #tpu.pipeline_mode<synchronous>, transform_indices = @transform_4, window_bounds = array<i64: 1, 16>}, {pipeline_mode = #tpu.pipeline_mode<synchronous>, transform_indices = @transform_5, window_bounds = array<i64: 1, 16>}, {pipeline_mode = #tpu.pipeline_mode<synchronous>, transform_indices = @transform_6, window_bounds = array<i64: 1, 64>}, {transform_indices = @transform_7, window_bounds = array<i64: 1, 16, 16, 64>}]} {
    %c0 = arith.constant 0 : index
    %c0_0 = arith.constant 0 : index
    %c0_1 = arith.constant 0 : index
    %c0_2 = arith.constant 0 : index
    %0 = vector.load %arg1[%c0, %c0_0, %c0_1, %c0_2] : memref<1x16x16x64xbf16, #tpu.memory_space<vmem>>, vector<1x16x16x64xbf16>
    %1 = vector.shape_cast %0 : vector<1x16x16x64xbf16> to vector<256x64xbf16>
    %c0_3 = arith.constant 0 : index
    %c0_4 = arith.constant 0 : index
    %2 = vector.load %arg2[%c0_3, %c0_4] : memref<64x16xbf16, #tpu.memory_space<vmem>>, vector<64x16xbf16>
    %cst = arith.constant dense<0.000000e+00> : vector<256x16xf32>
    %3 = tpu.matmul %1, %2, %cst {dimension_numbers = #tpu.dot_dimension_numbers<[1], [0], [0], [1], [0, 0, 1, 1], [], []>} : vector<256x64xbf16>, vector<64x16xbf16>, vector<256x16xf32> -> vector<256x16xf32>
    %c0_5 = arith.constant 0 : index
    %c0_6 = arith.constant 0 : index
    %4 = vector.load %arg5[%c0_5, %c0_6] : memref<1x16xf32, #tpu.memory_space<vmem>>, vector<1x16xf32>
    %5 = vector.broadcast %4 : vector<1x16xf32> to vector<256x16xf32>
    %6 = arith.addf %3, %5 : vector<256x16xf32>
    %cst_7 = arith.constant 0.000000e+00 : f32
    %7 = vector.broadcast %cst_7 : f32 to vector<256x16xf32>
    %8 = arith.maximumf %6, %7 : vector<256x16xf32>
    %9 = arith.truncf %8 : vector<256x16xf32> to vector<256x16xbf16>
    %10 = vector.shape_cast %9 : vector<256x16xbf16> to vector<1x16x16x16xbf16>
    %cst_8 = arith.constant 0.000000e+00 : bf16
    %11 = vector.broadcast %cst_8 : bf16 to vector<1x16x1x16xbf16>
    %12 = tpu.concatenate %11, %10, %11 in 2 : vector<1x16x1x16xbf16>, vector<1x16x16x16xbf16>, vector<1x16x1x16xbf16> -> vector<1x16x18x16xbf16>
    %cst_9 = arith.constant 0.000000e+00 : bf16
    %13 = vector.broadcast %cst_9 : bf16 to vector<1x1x18x16xbf16>
    %14 = tpu.concatenate %13, %12, %13 in 1 : vector<1x1x18x16xbf16>, vector<1x16x18x16xbf16>, vector<1x1x18x16xbf16> -> vector<1x18x18x16xbf16>
    %15 = vector.extract_strided_slice %14 {offsets = [0, 0, 0, 0], sizes = [1, 16, 16, 16], strides = [1, 1, 1, 1]} : vector<1x18x18x16xbf16> to vector<1x16x16x16xbf16>
    %16 = vector.shape_cast %15 : vector<1x16x16x16xbf16> to vector<256x16xbf16>
    %c0_10 = arith.constant 0 : index
    %c0_11 = arith.constant 0 : index
    %c0_12 = arith.constant 0 : index
    %c0_13 = arith.constant 0 : index
    %17 = vector.load %arg3[%c0_10, %c0_11, %c0_12, %c0_13] : memref<3x3x16x16xbf16, #tpu.memory_space<vmem>>, vector<1x1x16x16xbf16>
    %18 = vector.shape_cast %17 : vector<1x1x16x16xbf16> to vector<16x16xbf16>
    %cst_14 = arith.constant dense<0.000000e+00> : vector<256x16xf32>
    %19 = tpu.matmul %16, %18, %cst_14 {dimension_numbers = #tpu.dot_dimension_numbers<[1], [0], [0], [1], [0, 0, 1, 1], [], []>} : vector<256x16xbf16>, vector<16x16xbf16>, vector<256x16xf32> -> vector<256x16xf32>
    %20 = vector.extract_strided_slice %14 {offsets = [0, 0, 1, 0], sizes = [1, 16, 16, 16], strides = [1, 1, 1, 1]} : vector<1x18x18x16xbf16> to vector<1x16x16x16xbf16>
    %21 = vector.shape_cast %20 : vector<1x16x16x16xbf16> to vector<256x16xbf16>
    %c0_15 = arith.constant 0 : index
    %c1 = arith.constant 1 : index
    %c0_16 = arith.constant 0 : index
    %c0_17 = arith.constant 0 : index
    %22 = vector.load %arg3[%c0_15, %c1, %c0_16, %c0_17] : memref<3x3x16x16xbf16, #tpu.memory_space<vmem>>, vector<1x1x16x16xbf16>
    %23 = vector.shape_cast %22 : vector<1x1x16x16xbf16> to vector<16x16xbf16>
    %cst_18 = arith.constant dense<0.000000e+00> : vector<256x16xf32>
    %24 = tpu.matmul %21, %23, %cst_18 {dimension_numbers = #tpu.dot_dimension_numbers<[1], [0], [0], [1], [0, 0, 1, 1], [], []>} : vector<256x16xbf16>, vector<16x16xbf16>, vector<256x16xf32> -> vector<256x16xf32>
    %25 = arith.addf %19, %24 : vector<256x16xf32>
    %26 = vector.extract_strided_slice %14 {offsets = [0, 0, 2, 0], sizes = [1, 16, 16, 16], strides = [1, 1, 1, 1]} : vector<1x18x18x16xbf16> to vector<1x16x16x16xbf16>
    %27 = vector.shape_cast %26 : vector<1x16x16x16xbf16> to vector<256x16xbf16>
    %c0_19 = arith.constant 0 : index
    %c2 = arith.constant 2 : index
    %c0_20 = arith.constant 0 : index
    %c0_21 = arith.constant 0 : index
    %28 = vector.load %arg3[%c0_19, %c2, %c0_20, %c0_21] : memref<3x3x16x16xbf16, #tpu.memory_space<vmem>>, vector<1x1x16x16xbf16>
    %29 = vector.shape_cast %28 : vector<1x1x16x16xbf16> to vector<16x16xbf16>
    %cst_22 = arith.constant dense<0.000000e+00> : vector<256x16xf32>
    %30 = tpu.matmul %27, %29, %cst_22 {dimension_numbers = #tpu.dot_dimension_numbers<[1], [0], [0], [1], [0, 0, 1, 1], [], []>} : vector<256x16xbf16>, vector<16x16xbf16>, vector<256x16xf32> -> vector<256x16xf32>
    %31 = arith.addf %25, %30 : vector<256x16xf32>
    %32 = vector.extract_strided_slice %14 {offsets = [0, 1, 0, 0], sizes = [1, 16, 16, 16], strides = [1, 1, 1, 1]} : vector<1x18x18x16xbf16> to vector<1x16x16x16xbf16>
    %33 = vector.shape_cast %32 : vector<1x16x16x16xbf16> to vector<256x16xbf16>
    %c1_23 = arith.constant 1 : index
    %c0_24 = arith.constant 0 : index
    %c0_25 = arith.constant 0 : index
    %c0_26 = arith.constant 0 : index
    %34 = vector.load %arg3[%c1_23, %c0_24, %c0_25, %c0_26] : memref<3x3x16x16xbf16, #tpu.memory_space<vmem>>, vector<1x1x16x16xbf16>
    %35 = vector.shape_cast %34 : vector<1x1x16x16xbf16> to vector<16x16xbf16>
    %cst_27 = arith.constant dense<0.000000e+00> : vector<256x16xf32>
    %36 = tpu.matmul %33, %35, %cst_27 {dimension_numbers = #tpu.dot_dimension_numbers<[1], [0], [0], [1], [0, 0, 1, 1], [], []>} : vector<256x16xbf16>, vector<16x16xbf16>, vector<256x16xf32> -> vector<256x16xf32>
    %37 = arith.addf %31, %36 : vector<256x16xf32>
    %38 = vector.extract_strided_slice %14 {offsets = [0, 1, 1, 0], sizes = [1, 16, 16, 16], strides = [1, 1, 1, 1]} : vector<1x18x18x16xbf16> to vector<1x16x16x16xbf16>
    %39 = vector.shape_cast %38 : vector<1x16x16x16xbf16> to vector<256x16xbf16>
    %c1_28 = arith.constant 1 : index
    %c1_29 = arith.constant 1 : index
    %c0_30 = arith.constant 0 : index
    %c0_31 = arith.constant 0 : index
    %40 = vector.load %arg3[%c1_28, %c1_29, %c0_30, %c0_31] : memref<3x3x16x16xbf16, #tpu.memory_space<vmem>>, vector<1x1x16x16xbf16>
    %41 = vector.shape_cast %40 : vector<1x1x16x16xbf16> to vector<16x16xbf16>
    %cst_32 = arith.constant dense<0.000000e+00> : vector<256x16xf32>
    %42 = tpu.matmul %39, %41, %cst_32 {dimension_numbers = #tpu.dot_dimension_numbers<[1], [0], [0], [1], [0, 0, 1, 1], [], []>} : vector<256x16xbf16>, vector<16x16xbf16>, vector<256x16xf32> -> vector<256x16xf32>
    %43 = arith.addf %37, %42 : vector<256x16xf32>
    %44 = vector.extract_strided_slice %14 {offsets = [0, 1, 2, 0], sizes = [1, 16, 16, 16], strides = [1, 1, 1, 1]} : vector<1x18x18x16xbf16> to vector<1x16x16x16xbf16>
    %45 = vector.shape_cast %44 : vector<1x16x16x16xbf16> to vector<256x16xbf16>
    %c1_33 = arith.constant 1 : index
    %c2_34 = arith.constant 2 : index
    %c0_35 = arith.constant 0 : index
    %c0_36 = arith.constant 0 : index
    %46 = vector.load %arg3[%c1_33, %c2_34, %c0_35, %c0_36] : memref<3x3x16x16xbf16, #tpu.memory_space<vmem>>, vector<1x1x16x16xbf16>
    %47 = vector.shape_cast %46 : vector<1x1x16x16xbf16> to vector<16x16xbf16>
    %cst_37 = arith.constant dense<0.000000e+00> : vector<256x16xf32>
    %48 = tpu.matmul %45, %47, %cst_37 {dimension_numbers = #tpu.dot_dimension_numbers<[1], [0], [0], [1], [0, 0, 1, 1], [], []>} : vector<256x16xbf16>, vector<16x16xbf16>, vector<256x16xf32> -> vector<256x16xf32>
    %49 = arith.addf %43, %48 : vector<256x16xf32>
    %50 = vector.extract_strided_slice %14 {offsets = [0, 2, 0, 0], sizes = [1, 16, 16, 16], strides = [1, 1, 1, 1]} : vector<1x18x18x16xbf16> to vector<1x16x16x16xbf16>
    %51 = vector.shape_cast %50 : vector<1x16x16x16xbf16> to vector<256x16xbf16>
    %c2_38 = arith.constant 2 : index
    %c0_39 = arith.constant 0 : index
    %c0_40 = arith.constant 0 : index
    %c0_41 = arith.constant 0 : index
    %52 = vector.load %arg3[%c2_38, %c0_39, %c0_40, %c0_41] : memref<3x3x16x16xbf16, #tpu.memory_space<vmem>>, vector<1x1x16x16xbf16>
    %53 = vector.shape_cast %52 : vector<1x1x16x16xbf16> to vector<16x16xbf16>
    %cst_42 = arith.constant dense<0.000000e+00> : vector<256x16xf32>
    %54 = tpu.matmul %51, %53, %cst_42 {dimension_numbers = #tpu.dot_dimension_numbers<[1], [0], [0], [1], [0, 0, 1, 1], [], []>} : vector<256x16xbf16>, vector<16x16xbf16>, vector<256x16xf32> -> vector<256x16xf32>
    %55 = arith.addf %49, %54 : vector<256x16xf32>
    %56 = vector.extract_strided_slice %14 {offsets = [0, 2, 1, 0], sizes = [1, 16, 16, 16], strides = [1, 1, 1, 1]} : vector<1x18x18x16xbf16> to vector<1x16x16x16xbf16>
    %57 = vector.shape_cast %56 : vector<1x16x16x16xbf16> to vector<256x16xbf16>
    %c2_43 = arith.constant 2 : index
    %c1_44 = arith.constant 1 : index
    %c0_45 = arith.constant 0 : index
    %c0_46 = arith.constant 0 : index
    %58 = vector.load %arg3[%c2_43, %c1_44, %c0_45, %c0_46] : memref<3x3x16x16xbf16, #tpu.memory_space<vmem>>, vector<1x1x16x16xbf16>
    %59 = vector.shape_cast %58 : vector<1x1x16x16xbf16> to vector<16x16xbf16>
    %cst_47 = arith.constant dense<0.000000e+00> : vector<256x16xf32>
    %60 = tpu.matmul %57, %59, %cst_47 {dimension_numbers = #tpu.dot_dimension_numbers<[1], [0], [0], [1], [0, 0, 1, 1], [], []>} : vector<256x16xbf16>, vector<16x16xbf16>, vector<256x16xf32> -> vector<256x16xf32>
    %61 = arith.addf %55, %60 : vector<256x16xf32>
    %62 = vector.extract_strided_slice %14 {offsets = [0, 2, 2, 0], sizes = [1, 16, 16, 16], strides = [1, 1, 1, 1]} : vector<1x18x18x16xbf16> to vector<1x16x16x16xbf16>
    %63 = vector.shape_cast %62 : vector<1x16x16x16xbf16> to vector<256x16xbf16>
    %c2_48 = arith.constant 2 : index
    %c2_49 = arith.constant 2 : index
    %c0_50 = arith.constant 0 : index
    %c0_51 = arith.constant 0 : index
    %64 = vector.load %arg3[%c2_48, %c2_49, %c0_50, %c0_51] : memref<3x3x16x16xbf16, #tpu.memory_space<vmem>>, vector<1x1x16x16xbf16>
    %65 = vector.shape_cast %64 : vector<1x1x16x16xbf16> to vector<16x16xbf16>
    %cst_52 = arith.constant dense<0.000000e+00> : vector<256x16xf32>
    %66 = tpu.matmul %63, %65, %cst_52 {dimension_numbers = #tpu.dot_dimension_numbers<[1], [0], [0], [1], [0, 0, 1, 1], [], []>} : vector<256x16xbf16>, vector<16x16xbf16>, vector<256x16xf32> -> vector<256x16xf32>
    %67 = arith.addf %61, %66 : vector<256x16xf32>
    %c0_53 = arith.constant 0 : index
    %c0_54 = arith.constant 0 : index
    %68 = vector.load %arg6[%c0_53, %c0_54] : memref<1x16xf32, #tpu.memory_space<vmem>>, vector<1x16xf32>
    %69 = vector.broadcast %68 : vector<1x16xf32> to vector<256x16xf32>
    %70 = arith.addf %67, %69 : vector<256x16xf32>
    %cst_55 = arith.constant 0.000000e+00 : f32
    %71 = vector.broadcast %cst_55 : f32 to vector<256x16xf32>
    %72 = arith.maximumf %70, %71 : vector<256x16xf32>
    %73 = arith.truncf %72 : vector<256x16xf32> to vector<256x16xbf16>
    %c0_56 = arith.constant 0 : index
    %c0_57 = arith.constant 0 : index
    %74 = vector.load %arg4[%c0_56, %c0_57] : memref<16x64xbf16, #tpu.memory_space<vmem>>, vector<16x64xbf16>
    %cst_58 = arith.constant dense<0.000000e+00> : vector<256x64xf32>
    %75 = tpu.matmul %73, %74, %cst_58 {dimension_numbers = #tpu.dot_dimension_numbers<[1], [0], [0], [1], [0, 0, 1, 1], [], []>} : vector<256x16xbf16>, vector<16x64xbf16>, vector<256x64xf32> -> vector<256x64xf32>
    %c0_59 = arith.constant 0 : index
    %c0_60 = arith.constant 0 : index
    %76 = vector.load %arg7[%c0_59, %c0_60] : memref<1x64xf32, #tpu.memory_space<vmem>>, vector<1x64xf32>
    %77 = vector.broadcast %76 : vector<1x64xf32> to vector<256x64xf32>
    %78 = arith.addf %75, %77 : vector<256x64xf32>
    %79 = vector.shape_cast %0 : vector<1x16x16x64xbf16> to vector<256x64xbf16>
    %80 = arith.extf %79 : vector<256x64xbf16> to vector<256x64xf32>
    %81 = arith.addf %78, %80 : vector<256x64xf32>
    %cst_61 = arith.constant 0.000000e+00 : f32
    %82 = vector.broadcast %cst_61 : f32 to vector<256x64xf32>
    %83 = arith.maximumf %81, %82 : vector<256x64xf32>
    %84 = vector.shape_cast %83 : vector<256x64xf32> to vector<1x16x16x64xf32>
    %85 = arith.truncf %84 : vector<1x16x16x64xf32> to vector<1x16x16x64xbf16>
    %c0_62 = arith.constant 0 : index
    %c0_63 = arith.constant 0 : index
    %c0_64 = arith.constant 0 : index
    %c0_65 = arith.constant 0 : index
    %86 = vector.load %arg8[%c0_62, %c0_63, %c0_64, %c0_65] : memref<1x16x16x64xbf16, #tpu.memory_space<vmem>>, vector<1x16x16x64xbf16>
    tpu.vector_store %arg8[%c0_62, %c0_63, %c0_64, %c0_65], %85 {strides = array<i32>} : memref<1x16x16x64xbf16, #tpu.memory_space<vmem>>, vector<1x16x16x64xbf16>,
    return
  }
  func.func @transform_0(%arg0: i32) -> (i32, i32, i32, i32) {
    %c0_i32 = arith.constant 0 : i32
    %c0_i32_0 = arith.constant 0 : i32
    %c0_i32_1 = arith.constant 0 : i32
    %c0_i32_2 = arith.constant 0 : i32
    return %arg0, %c0_i32, %c0_i32_0, %c0_i32_1 : i32, i32, i32, i32
  }
  func.func @transform_1(%arg0: i32) -> (i32, i32) {
    %c0_i32 = arith.constant 0 : i32
    %c0_i32_0 = arith.constant 0 : i32
    %c0_i32_1 = arith.constant 0 : i32
    return %c0_i32, %c0_i32_0 : i32, i32
  }
  func.func @transform_2(%arg0: i32) -> (i32, i32, i32, i32) {
    %c0_i32 = arith.constant 0 : i32
    %c0_i32_0 = arith.constant 0 : i32
    %c0_i32_1 = arith.constant 0 : i32
    %c0_i32_2 = arith.constant 0 : i32
    %c0_i32_3 = arith.constant 0 : i32
    return %c0_i32, %c0_i32_0, %c0_i32_1, %c0_i32_2 : i32, i32, i32, i32
  }
  func.func @transform_3(%arg0: i32) -> (i32, i32) {
    %c0_i32 = arith.constant 0 : i32
    %c0_i32_0 = arith.constant 0 : i32
    %c0_i32_1 = arith.constant 0 : i32
    return %c0_i32, %c0_i32_0 : i32, i32
  }
  func.func @transform_4(%arg0: i32) -> (i32, i32) {
    %c0_i32 = arith.constant 0 : i32
    %c0_i32_0 = arith.constant 0 : i32
    %c0_i32_1 = arith.constant 0 : i32
    return %c0_i32, %c0_i32_0 : i32, i32
  }
  func.func @transform_5(%arg0: i32) -> (i32, i32) {
    %c0_i32 = arith.constant 0 : i32
    %c0_i32_0 = arith.constant 0 : i32
    %c0_i32_1 = arith.constant 0 : i32
    return %c0_i32, %c0_i32_0 : i32, i32
  }
  func.func @transform_6(%arg0: i32) -> (i32, i32) {
    %c0_i32 = arith.constant 0 : i32
    %c0_i32_0 = arith.constant 0 : i32
    %c0_i32_1 = arith.constant 0 : i32
    return %c0_i32, %c0_i32_0 : i32, i32
  }
  func.func @transform_7(%arg0: i32) -> (i32, i32, i32, i32) {
    %c0_i32 = arith.constant 0 : i32
    %c0_i32_0 = arith.constant 0 : i32
    %c0_i32_1 = arith.constant 0 : i32
    %c0_i32_2 = arith.constant 0 : i32
    return %arg0, %c0_i32, %c0_i32_0, %c0_i32_1 : i32, i32, i32, i32
  }
}

module attributes {stable_mosaic.version = 11 : i64} {
  func.func @_bottleneck_kernel(%arg0: i32, %arg1: memref<1x16x16x64xbf16, #tpu.memory_space<vmem>>, %arg2: memref<64x16xbf16, #tpu.memory_space<vmem>>, %arg3: memref<3x3x16x16xbf16, #tpu.memory_space<vmem>>, %arg4: memref<16x64xbf16, #tpu.memory_space<vmem>>, %arg5: memref<1x16xf32, #tpu.memory_space<vmem>>, %arg6: memref<1x16xf32, #tpu.memory_space<vmem>>, %arg7: memref<1x64xf32, #tpu.memory_space<vmem>>, %arg8: memref<1x16x16x64xbf16, #tpu.memory_space<vmem>>) attributes {dimension_semantics = [#tpu.dimension_semantics<parallel>], iteration_bounds = array<i64: 2>, scalar_prefetch = 0 : i64, scratch_operands = 0 : i64, tpu.core_type = #tpu.core_type<tc>, window_params = [{transform_indices = @transform_0, window_bounds = array<i64: 1, 16, 16, 64>}, {pipeline_mode = #tpu.pipeline_mode<synchronous>, transform_indices = @transform_1, window_bounds = array<i64: 64, 16>}, {pipeline_mode = #tpu.pipeline_mode<synchronous>, transform_indices = @transform_2, window_bounds = array<i64: 3, 3, 16, 16>}, {pipeline_mode = #tpu.pipeline_mode<synchronous>, transform_indices = @transform_3, window_bounds = array<i64: 16, 64>}, {pipeline_mode = #tpu.pipeline_mode<synchronous>, transform_indices = @transform_4, window_bounds = array<i64: 1, 16>}, {pipeline_mode = #tpu.pipeline_mode<synchronous>, transform_indices = @transform_5, window_bounds = array<i64: 1, 16>}, {pipeline_mode = #tpu.pipeline_mode<synchronous>, transform_indices = @transform_6, window_bounds = array<i64: 1, 64>}, {transform_indices = @transform_7, window_bounds = array<i64: 1, 16, 16, 64>}]} {
    %c0 = arith.constant 0 : index
    %c0_0 = arith.constant 0 : index
    %c0_1 = arith.constant 0 : index
    %c0_2 = arith.constant 0 : index
    %0 = vector.load %arg1[%c0, %c0_0, %c0_1, %c0_2] : memref<1x16x16x64xbf16, #tpu.memory_space<vmem>>, vector<1x16x16x64xbf16>
    %1 = vector.shape_cast %0 : vector<1x16x16x64xbf16> to vector<256x64xbf16>
    %c0_3 = arith.constant 0 : index
    %c0_4 = arith.constant 0 : index
    %2 = vector.load %arg2[%c0_3, %c0_4] : memref<64x16xbf16, #tpu.memory_space<vmem>>, vector<64x16xbf16>
    %cst = arith.constant dense<0.000000e+00> : vector<256x16xf32>
    %3 = tpu.matmul %1, %2, %cst {dimension_numbers = #tpu.dot_dimension_numbers<[1], [0], [0], [1], [0, 0, 1, 1], [], []>} : vector<256x64xbf16>, vector<64x16xbf16>, vector<256x16xf32> -> vector<256x16xf32>
    %c0_5 = arith.constant 0 : index
    %c0_6 = arith.constant 0 : index
    %4 = vector.load %arg5[%c0_5, %c0_6] : memref<1x16xf32, #tpu.memory_space<vmem>>, vector<1x16xf32>
    %5 = vector.broadcast %4 : vector<1x16xf32> to vector<256x16xf32>
    %6 = arith.addf %3, %5 : vector<256x16xf32>
    %cst_7 = arith.constant 0.000000e+00 : f32
    %7 = vector.broadcast %cst_7 : f32 to vector<256x16xf32>
    %8 = arith.maximumf %6, %7 : vector<256x16xf32>
    %9 = arith.truncf %8 : vector<256x16xf32> to vector<256x16xbf16>
    %10 = vector.shape_cast %9 : vector<256x16xbf16> to vector<1x16x16x16xbf16>
    %cst_8 = arith.constant 0.000000e+00 : bf16
    %11 = vector.broadcast %cst_8 : bf16 to vector<1x16x1x16xbf16>
    %12 = tpu.concatenate %11, %10, %11 in 2 : vector<1x16x1x16xbf16>, vector<1x16x16x16xbf16>, vector<1x16x1x16xbf16> -> vector<1x16x18x16xbf16>
    %cst_9 = arith.constant 0.000000e+00 : bf16
    %13 = vector.broadcast %cst_9 : bf16 to vector<1x1x18x16xbf16>
    %14 = tpu.concatenate %13, %12, %13 in 1 : vector<1x1x18x16xbf16>, vector<1x16x18x16xbf16>, vector<1x1x18x16xbf16> -> vector<1x18x18x16xbf16>
    %15 = vector.extract_strided_slice %14 {offsets = [0, 0, 0, 0], sizes = [1, 16, 16, 16], strides = [1, 1, 1, 1]} : vector<1x18x18x16xbf16> to vector<1x16x16x16xbf16>
    %16 = vector.shape_cast %15 : vector<1x16x16x16xbf16> to vector<256x16xbf16>
    %c0_10 = arith.constant 0 : index
    %c0_11 = arith.constant 0 : index
    %c0_12 = arith.constant 0 : index
    %c0_13 = arith.constant 0 : index
    %17 = vector.load %arg3[%c0_10, %c0_11, %c0_12, %c0_13] : memref<3x3x16x16xbf16, #tpu.memory_space<vmem>>, vector<1x1x16x16xbf16>
    %18 = vector.shape_cast %17 : vector<1x1x16x16xbf16> to vector<16x16xbf16>
    %cst_14 = arith.constant dense<0.000000e+00> : vector<256x16xf32>
    %19 = tpu.matmul %16, %18, %cst_14 {dimension_numbers = #tpu.dot_dimension_numbers<[1], [0], [0], [1], [0, 0, 1, 1], [], []>} : vector<256x16xbf16>, vector<16x16xbf16>, vector<256x16xf32> -> vector<256x16xf32>
    %20 = vector.extract_strided_slice %14 {offsets = [0, 0, 1, 0], sizes = [1, 16, 16, 16], strides = [1, 1, 1, 1]} : vector<1x18x18x16xbf16> to vector<1x16x16x16xbf16>
    %21 = vector.shape_cast %20 : vector<1x16x16x16xbf16> to vector<256x16xbf16>
    %c0_15 = arith.constant 0 : index
    %c1 = arith.constant 1 : index
    %c0_16 = arith.constant 0 : index
    %c0_17 = arith.constant 0 : index
    %22 = vector.load %arg3[%c0_15, %c1, %c0_16, %c0_17] : memref<3x3x16x16xbf16, #tpu.memory_space<vmem>>, vector<1x1x16x16xbf16>
    %23 = vector.shape_cast %22 : vector<1x1x16x16xbf16> to vector<16x16xbf16>
    %cst_18 = arith.constant dense<0.000000e+00> : vector<256x16xf32>
    %24 = tpu.matmul %21, %23, %cst_18 {dimension_numbers = #tpu.dot_dimension_numbers<[1], [0], [0], [1], [0, 0, 1, 1], [], []>} : vector<256x16xbf16>, vector<16x16xbf16>, vector<256x16xf32> -> vector<256x16xf32>
    %25 = arith.addf %19, %24 : vector<256x16xf32>
    %26 = vector.extract_strided_slice %14 {offsets = [0, 0, 2, 0], sizes = [1, 16, 16, 16], strides = [1, 1, 1, 1]} : vector<1x18x18x16xbf16> to vector<1x16x16x16xbf16>
    %27 = vector.shape_cast %26 : vector<1x16x16x16xbf16> to vector<256x16xbf16>
    %c0_19 = arith.constant 0 : index
    %c2 = arith.constant 2 : index
    %c0_20 = arith.constant 0 : index
    %c0_21 = arith.constant 0 : index
    %28 = vector.load %arg3[%c0_19, %c2, %c0_20, %c0_21] : memref<3x3x16x16xbf16, #tpu.memory_space<vmem>>, vector<1x1x16x16xbf16>
    %29 = vector.shape_cast %28 : vector<1x1x16x16xbf16> to vector<16x16xbf16>
    %cst_22 = arith.constant dense<0.000000e+00> : vector<256x16xf32>
    %30 = tpu.matmul %27, %29, %cst_22 {dimension_numbers = #tpu.dot_dimension_numbers<[1], [0], [0], [1], [0, 0, 1, 1], [], []>} : vector<256x16xbf16>, vector<16x16xbf16>, vector<256x16xf32> -> vector<256x16xf32>
    %31 = arith.addf %25, %30 : vector<256x16xf32>
    %32 = vector.extract_strided_slice %14 {offsets = [0, 1, 0, 0], sizes = [1, 16, 16, 16], strides = [1, 1, 1, 1]} : vector<1x18x18x16xbf16> to vector<1x16x16x16xbf16>
    %33 = vector.shape_cast %32 : vector<1x16x16x16xbf16> to vector<256x16xbf16>
    %c1_23 = arith.constant 1 : index
    %c0_24 = arith.constant 0 : index
    %c0_25 = arith.constant 0 : index
    %c0_26 = arith.constant 0 : index
    %34 = vector.load %arg3[%c1_23, %c0_24, %c0_25, %c0_26] : memref<3x3x16x16xbf16, #tpu.memory_space<vmem>>, vector<1x1x16x16xbf16>
    %35 = vector.shape_cast %34 : vector<1x1x16x16xbf16> to vector<16x16xbf16>
    %cst_27 = arith.constant dense<0.000000e+00> : vector<256x16xf32>
    %36 = tpu.matmul %33, %35, %cst_27 {dimension_numbers = #tpu.dot_dimension_numbers<[1], [0], [0], [1], [0, 0, 1, 1], [], []>} : vector<256x16xbf16>, vector<16x16xbf16>, vector<256x16xf32> -> vector<256x16xf32>
    %37 = arith.addf %31, %36 : vector<256x16xf32>
    %38 = vector.extract_strided_slice %14 {offsets = [0, 1, 1, 0], sizes = [1, 16, 16, 16], strides = [1, 1, 1, 1]} : vector<1x18x18x16xbf16> to vector<1x16x16x16xbf16>
    %39 = vector.shape_cast %38 : vector<1x16x16x16xbf16> to vector<256x16xbf16>
    %c1_28 = arith.constant 1 : index
    %c1_29 = arith.constant 1 : index
    %c0_30 = arith.constant 0 : index
    %c0_31 = arith.constant 0 : index
    %40 = vector.load %arg3[%c1_28, %c1_29, %c0_30, %c0_31] : memref<3x3x16x16xbf16, #tpu.memory_space<vmem>>, vector<1x1x16x16xbf16>
    %41 = vector.shape_cast %40 : vector<1x1x16x16xbf16> to vector<16x16xbf16>
    %cst_32 = arith.constant dense<0.000000e+00> : vector<256x16xf32>
    %42 = tpu.matmul %39, %41, %cst_32 {dimension_numbers = #tpu.dot_dimension_numbers<[1], [0], [0], [1], [0, 0, 1, 1], [], []>} : vector<256x16xbf16>, vector<16x16xbf16>, vector<256x16xf32> -> vector<256x16xf32>
    %43 = arith.addf %37, %42 : vector<256x16xf32>
    %44 = vector.extract_strided_slice %14 {offsets = [0, 1, 2, 0], sizes = [1, 16, 16, 16], strides = [1, 1, 1, 1]} : vector<1x18x18x16xbf16> to vector<1x16x16x16xbf16>
    %45 = vector.shape_cast %44 : vector<1x16x16x16xbf16> to vector<256x16xbf16>
    %c1_33 = arith.constant 1 : index
    %c2_34 = arith.constant 2 : index
    %c0_35 = arith.constant 0 : index
    %c0_36 = arith.constant 0 : index
    %46 = vector.load %arg3[%c1_33, %c2_34, %c0_35, %c0_36] : memref<3x3x16x16xbf16, #tpu.memory_space<vmem>>, vector<1x1x16x16xbf16>
    %47 = vector.shape_cast %46 : vector<1x1x16x16xbf16> to vector<16x16xbf16>
    %cst_37 = arith.constant dense<0.000000e+00> : vector<256x16xf32>
    %48 = tpu.matmul %45, %47, %cst_37 {dimension_numbers = #tpu.dot_dimension_numbers<[1], [0], [0], [1], [0, 0, 1, 1], [], []>} : vector<256x16xbf16>, vector<16x16xbf16>, vector<256x16xf32> -> vector<256x16xf32>
    %49 = arith.addf %43, %48 : vector<256x16xf32>
    %50 = vector.extract_strided_slice %14 {offsets = [0, 2, 0, 0], sizes = [1, 16, 16, 16], strides = [1, 1, 1, 1]} : vector<1x18x18x16xbf16> to vector<1x16x16x16xbf16>
    %51 = vector.shape_cast %50 : vector<1x16x16x16xbf16> to vector<256x16xbf16>
    %c2_38 = arith.constant 2 : index
    %c0_39 = arith.constant 0 : index
    %c0_40 = arith.constant 0 : index
    %c0_41 = arith.constant 0 : index
    %52 = vector.load %arg3[%c2_38, %c0_39, %c0_40, %c0_41] : memref<3x3x16x16xbf16, #tpu.memory_space<vmem>>, vector<1x1x16x16xbf16>
    %53 = vector.shape_cast %52 : vector<1x1x16x16xbf16> to vector<16x16xbf16>
    %cst_42 = arith.constant dense<0.000000e+00> : vector<256x16xf32>
    %54 = tpu.matmul %51, %53, %cst_42 {dimension_numbers = #tpu.dot_dimension_numbers<[1], [0], [0], [1], [0, 0, 1, 1], [], []>} : vector<256x16xbf16>, vector<16x16xbf16>, vector<256x16xf32> -> vector<256x16xf32>
    %55 = arith.addf %49, %54 : vector<256x16xf32>
    %56 = vector.extract_strided_slice %14 {offsets = [0, 2, 1, 0], sizes = [1, 16, 16, 16], strides = [1, 1, 1, 1]} : vector<1x18x18x16xbf16> to vector<1x16x16x16xbf16>
    %57 = vector.shape_cast %56 : vector<1x16x16x16xbf16> to vector<256x16xbf16>
    %c2_43 = arith.constant 2 : index
    %c1_44 = arith.constant 1 : index
    %c0_45 = arith.constant 0 : index
    %c0_46 = arith.constant 0 : index
    %58 = vector.load %arg3[%c2_43, %c1_44, %c0_45, %c0_46] : memref<3x3x16x16xbf16, #tpu.memory_space<vmem>>, vector<1x1x16x16xbf16>
    %59 = vector.shape_cast %58 : vector<1x1x16x16xbf16> to vector<16x16xbf16>
    %cst_47 = arith.constant dense<0.000000e+00> : vector<256x16xf32>
    %60 = tpu.matmul %57, %59, %cst_47 {dimension_numbers = #tpu.dot_dimension_numbers<[1], [0], [0], [1], [0, 0, 1, 1], [], []>} : vector<256x16xbf16>, vector<16x16xbf16>, vector<256x16xf32> -> vector<256x16xf32>
    %61 = arith.addf %55, %60 : vector<256x16xf32>
    %62 = vector.extract_strided_slice %14 {offsets = [0, 2, 2, 0], sizes = [1, 16, 16, 16], strides = [1, 1, 1, 1]} : vector<1x18x18x16xbf16> to vector<1x16x16x16xbf16>
    %63 = vector.shape_cast %62 : vector<1x16x16x16xbf16> to vector<256x16xbf16>
    %c2_48 = arith.constant 2 : index
    %c2_49 = arith.constant 2 : index
    %c0_50 = arith.constant 0 : index
    %c0_51 = arith.constant 0 : index
    %64 = vector.load %arg3[%c2_48, %c2_49, %c0_50, %c0_51] : memref<3x3x16x16xbf16, #tpu.memory_space<vmem>>, vector<1x1x16x16xbf16>
    %65 = vector.shape_cast %64 : vector<1x1x16x16xbf16> to vector<16x16xbf16>
    %cst_52 = arith.constant dense<0.000000e+00> : vector<256x16xf32>
    %66 = tpu.matmul %63, %65, %cst_52 {dimension_numbers = #tpu.dot_dimension_numbers<[1], [0], [0], [1], [0, 0, 1, 1], [], []>} : vector<256x16xbf16>, vector<16x16xbf16>, vector<256x16xf32> -> vector<256x16xf32>
    %67 = arith.addf %61, %66 : vector<256x16xf32>
    %c0_53 = arith.constant 0 : index
    %c0_54 = arith.constant 0 : index
    %68 = vector.load %arg6[%c0_53, %c0_54] : memref<1x16xf32, #tpu.memory_space<vmem>>, vector<1x16xf32>
    %69 = vector.broadcast %68 : vector<1x16xf32> to vector<256x16xf32>
    %70 = arith.addf %67, %69 : vector<256x16xf32>
    %cst_55 = arith.constant 0.000000e+00 : f32
    %71 = vector.broadcast %cst_55 : f32 to vector<256x16xf32>
    %72 = arith.maximumf %70, %71 : vector<256x16xf32>
    %73 = arith.truncf %72 : vector<256x16xf32> to vector<256x16xbf16>
    %c0_56 = arith.constant 0 : index
    %c0_57 = arith.constant 0 : index
    %74 = vector.load %arg4[%c0_56, %c0_57] : memref<16x64xbf16, #tpu.memory_space<vmem>>, vector<16x64xbf16>
    %cst_58 = arith.constant dense<0.000000e+00> : vector<256x64xf32>
    %75 = tpu.matmul %73, %74, %cst_58 {dimension_numbers = #tpu.dot_dimension_numbers<[1], [0], [0], [1], [0, 0, 1, 1], [], []>} : vector<256x16xbf16>, vector<16x64xbf16>, vector<256x64xf32> -> vector<256x64xf32>
    %c0_59 = arith.constant 0 : index
    %c0_60 = arith.constant 0 : index
    %76 = vector.load %arg7[%c0_59, %c0_60] : memref<1x64xf32, #tpu.memory_space<vmem>>, vector<1x64xf32>
    %77 = vector.broadcast %76 : vector<1x64xf32> to vector<256x64xf32>
    %78 = arith.addf %75, %77 : vector<256x64xf32>
    %79 = vector.shape_cast %0 : vector<1x16x16x64xbf16> to vector<256x64xbf16>
    %80 = arith.extf %79 : vector<256x64xbf16> to vector<256x64xf32>
    %81 = arith.addf %78, %80 : vector<256x64xf32>
    %cst_61 = arith.constant 0.000000e+00 : f32
    %82 = vector.broadcast %cst_61 : f32 to vector<256x64xf32>
    %83 = arith.maximumf %81, %82 : vector<256x64xf32>
    %84 = vector.shape_cast %83 : vector<256x64xf32> to vector<1x16x16x64xf32>
    %85 = arith.truncf %84 : vector<1x16x16x64xf32> to vector<1x16x16x64xbf16>
    %c0_62 = arith.constant 0 : index
    %c0_63 = arith.constant 0 : index
    %c0_64 = arith.constant 0 : index
    %c0_65 = arith.constant 0 : index
    %86 = vector.load %arg8[%c0_62, %c0_63, %c0_64, %c0_65] : memref<1x16x16x64xbf16, #tpu.memory_space<vmem>>, vector<1x16x16x64xbf16>
    tpu.vector_store %arg8[%c0_62, %c0_63, %c0_64, %c0_65], %85 {strides = array<i32>} : memref<1x16x16x64xbf16, #tpu.memory_space<vmem>>, vector<1x16x16x64xbf16>,
    return
  }
  func.func @transform_0(%arg0: i32) -> (i32, i32, i32, i32) {
    %c0_i32 = arith.constant 0 : i32
    %c0_i32_0 = arith.constant 0 : i32
    %c0_i32_1 = arith.constant 0 : i32
    %c0_i32_2 = arith.constant 0 : i32
    return %arg0, %c0_i32, %c0_i32_0, %c0_i32_1 : i32, i32, i32, i32
  }
  func.func @transform_1(%arg0: i32) -> (i32, i32) {
    %c0_i32 = arith.constant 0 : i32
    %c0_i32_0 = arith.constant 0 : i32
    %c0_i32_1 = arith.constant 0 : i32
    return %c0_i32, %c0_i32_0 : i32, i32
  }
  func.func @transform_2(%arg0: i32) -> (i32, i32, i32, i32) {
    %c0_i32 = arith.constant 0 : i32
    %c0_i32_0 = arith.constant 0 : i32
    %c0_i32_1 = arith.constant 0 : i32
    %c0_i32_2 = arith.constant 0 : i32
    %c0_i32_3 = arith.constant 0 : i32
    return %c0_i32, %c0_i32_0, %c0_i32_1, %c0_i32_2 : i32, i32, i32, i32
  }
  func.func @transform_3(%arg0: i32) -> (i32, i32) {
    %c0_i32 = arith.constant 0 : i32
    %c0_i32_0 = arith.constant 0 : i32
    %c0_i32_1 = arith.constant 0 : i32
    return %c0_i32, %c0_i32_0 : i32, i32
  }
  func.func @transform_4(%arg0: i32) -> (i32, i32) {
    %c0_i32 = arith.constant 0 : i32
    %c0_i32_0 = arith.constant 0 : i32
    %c0_i32_1 = arith.constant 0 : i32
    return %c0_i32, %c0_i32_0 : i32, i32
  }
  func.func @transform_5(%arg0: i32) -> (i32, i32) {
    %c0_i32 = arith.constant 0 : i32
    %c0_i32_0 = arith.constant 0 : i32
    %c0_i32_1 = arith.constant 0 : i32
    return %c0_i32, %c0_i32_0 : i32, i32
  }
  func.func @transform_6(%arg0: i32) -> (i32, i32) {
    %c0_i32 = arith.constant 0 : i32
    %c0_i32_0 = arith.constant 0 : i32
    %c0_i32_1 = arith.constant 0 : i32
    return %c0_i32, %c0_i32_0 : i32, i32
  }
  func.func @transform_7(%arg0: i32) -> (i32, i32, i32, i32) {
    %c0_i32 = arith.constant 0 : i32
    %c0_i32_0 = arith.constant 0 : i32
    %c0_i32_1 = arith.constant 0 : i32
    %c0_i32_2 = arith.constant 0 : i32
    return %arg0, %c0_i32, %c0_i32_0, %c0_i32_1 : i32, i32, i32, i32
  }
}

</mosaic_0001>

<bundles_post_ra>
// kernel: tpu_custom_call.1
= control target key start
LH: loop header
LB: loop body
LE: loop exit
PB: predicated region body
PF: predicated region fallthrough
CT: control target
= control target key end

     0   :  { %s6703_s0 = inlined_call_operand.hbm [shape: bf16[2,16,16,64], index: 0, kind: input, shape index: {}]   ;;  %s6704_s1 = inlined_call_operand.vmem [shape: bf16[64,16], index: 1, kind: input, shape index: {}]   ;;  %s6705_s2 = inlined_call_operand.hbm [shape: bf16[3,3,16,16], index: 2, kind: input, shape index: {}]   ;;  %s6706_s3 = inlined_call_operand.vmem [shape: bf16[16,64], index: 3, kind: input, shape index: {}]   ;;  %s6707_s4 = inlined_call_operand.vmem [shape: f32[1,16], index: 4, kind: input, shape index: {}]   ;;  %s6708_s5 = inlined_call_operand.vmem [shape: f32[1,16], index: 5, kind: input, shape index: {}]   ;;  %s6709_s6 = inlined_call_operand.vmem [shape: f32[1,64], index: 6, kind: input, shape index: {}]   ;;  %s6710_s7 = inlined_call_operand.hbm [shape: bf16[2,16,16,64], index: 7, kind: output, shape index: {}]  }
   0x1   :  { %6721 = sst [smem:[#allocation27_spill]] %s6705_s2 }
   0x2   :  { %12 = vsyncpa [#allocation3], 0 }
   0x3   :  { %14 = vsyncpa [#allocation3 + $0x1], 0 }
   0x4   :  { %15 = vsyncpa [#allocation6], 0 }
   0x5   :  { %16 = vsyncpa [#allocation4], 0 }
   0x6   :  { %18 = vsyncpa [#allocation4 + $0x1], 0  ;;  %s4898_s24 = smov 0   ;;  %s4900_s25 = smov 0  }
   0x7   :  { %s4902_s26 = smov 0   ;;  %s4904_s27 = smov 0  }
   0x8 LB: > { %s4919_s28 = sadd.s32 4294967295, %s4848_s27   ;;  %s3741_s29 = sadd.s32 4294967294, %s4848_s27   ;;  %s4848_s27 = sphi %s4904_s27, %s6811_s27   ;;  %s4844_s26 = sphi %s4902_s26, %s6810_s26   ;;  %s4840_s25 = sphi %s4900_s25, %s6809_s25   ;;  %s4836_s24 = sphi %s4898_s24, %s6808_s24  }
   0x9   : > { %p44_p0 = scmp.ne.s32.totalorder %s4840_s25, %s4836_s24  ;;  %p6712_p1 = scmp.eq.s32.totalorder %s4919_s28, 0 }
   0xa   : > { %p200_p3 = scmp.eq.s32.totalorder %s3741_s29, 1  ;;  %p3742_p5 = scmp.ge.s32.totalorder %s4848_s27, 1 }
   0xb   : > { %p4928_p4 = por %p6712_p1, %p44_p0  ;;  %p207_p7 = scmp.lt.s32.totalorder %s4848_s27, 3 }
   0xc   : > { %p4933_p6 = por %p200_p3, %p44_p0  ;;  %s4850_s10 = smov [#allocation5]  }
   0xd   : > { %s6722_s30 = scalar_select %p4928_p4, 1, 0 }
   0xe   : > { %s6723_s8 = scalar_select %p4933_p6, 1, 0 }
   0xf   : > { %p4938_p8 = pnand %p3742_p5, %p207_p7  ;;  %s222_s11 = sshll.u32 %s4850_s10, 4  ;;  %s223_s11 = int_to_ptr.vmem [resolvable:$true] %s222_s11 }
  0x10   : > { %s4952_s13 = sadd.s32 1, %s4848_s27   ;;  %s31_s14 = sadd.s32 1, %s4844_s26 }
  0x11   : > { %s6724_s9 = scalar_select %p4938_p8, 1, 0 }
  0x12   : > { %p4610_p9 = pneg %p4938_p8  ;;  %s28_s15 = ssub.s32 %s4848_s27, %s4952_s13 }
  0x13   : > { %s4737_s16 = scalar_lea.vmem %s223_s11, 1152  ;;  %p4745_p5 = scmp.lt.s32.totalorder %s223_s11, %s223_s11 }
  0x14   : > { %p4947_p11 = pnand %p4610_p9, %p6712_p1  ;;  %p4738_p13 = scmp.ne.s32.totalorder %s223_s11, %s4737_s16 }
  0x15   : > { %p4746_p7 = scmp.lt.s32.totalorder %s4737_s16, %s4737_s16 }
  0x16   : > { %p4728_p12 = pneg %p4947_p11 }
  0x17   : > { %p4747_p10 = por %p4746_p7, %p4745_p5 }
  0x18   : > { %p4740_p0 = pnand %p4738_p13, %p4728_p12 }
  0x1a   : > { %p4741_p3 = pneg %p4740_p0 }
  0x1c   : > { %p4748_p2 = pnand %p4747_p10, %p4741_p3 }
  0x1e   : > { %4751 = shalt.err (!%p4748_p2)
}
  0x1f   : > { %s6711_s17 = smov 64   ;;  %s6713_s18 = smov 4  }
  0x20   : > { %s6726_s2 = sld [smem:[#allocation27_spill]]  ;;  %p29_p2 = scmp.eq.s32.totalorder %s28_s15, 0 }
  0x21   : > { %p38_p9 = scmp.ne.s32.totalorder %s4844_s26, %s4840_s25  ;;  %p39_p10 = scmp.eq.s32.totalorder %s4848_s27, 0 }
  0x22   : > { %p4623_p12 = scmp.lt.s32.totalorder %s4848_s27, 2  ;;  %p6727_p0 = scmp.eq.s32.totalorder %s4919_s28, 1 }
  0x23   : > { %s4972_s21 = scalar_select %p29_p2, %s4844_s26, %s31_s14  }
  0x24   : > { %p40_p13 = por %p39_p10, %p38_p9  ;;  %p4976_p3 = por %p6727_p0, %p38_p9 }
  0x25   : > { %s248_s23 = sand.u32 1, %s4844_s26   ;;  %s3996_s29 = sshll.u32 %s4848_s27, 11 }
  0x26   : > { %4613 = dma.hbm_to_vmem [thread:$0]  (!%p4947_p11), %s6726_s2, 1152, %s223_s11, [#allocation6], %s6711_s17, %s6711_s17, %s6713_s18  }
  0x27   : > { %s6728_s22 = scalar_select %p4976_p3, 1, 0 }
  0x28   : > { %s3745_s10 = sshll.u32 %s248_s23, 7  ;;  %s4985_s19 = scalar_lea.hbm %s6703_s0, %s3996_s29 }
  0x29   : > { %s252_s11 = scalar_lea.vmem [#allocation2], %s3745_s10  ;;  %p4987_p11 = pnand %p4623_p12, %p40_p13 }
  0x2a   : > { %s259_s14 = sshll.u32 %s252_s11, 4  ;;  %s4993_s20 = scalar_lea.sflag [#allocation3], %s248_s23  ;;  %s4991_s14 = int_to_ptr.vmem [resolvable:$true] %s259_s14 }
  0x2b   : > { %s4752_s17 = scalar_lea.hbm %s4985_s19, 2048  ;;  %p4754_p7 = pneg %p4987_p11 }
  0x2c   : > { %p4753_p5 = scmp.ne.s32.totalorder %s4985_s19, %s4752_s17  ;;  %s4757_s10 = scalar_lea.hbm %s6703_s0, 4096 }
  0x2d   : > { %p4758_p10 = scmp.lt.s32.totalorder %s4985_s19, %s6703_s0  ;;  %p4759_p12 = scmp.lt.s32.totalorder %s4757_s10, %s4752_s17 }
  0x2e   : > { %p4755_p2 = pnand %p4754_p7, %p4753_p5 }
  0x2f   : > { %p4760_p13 = por %p4759_p12, %p4758_p10 }
  0x30   : > { %p4756_p9 = pneg %p4755_p2 }
  0x32   : > { %p4761_p0 = pnand %p4760_p13, %p4756_p9 }
  0x34   : > { %4764 = shalt.err (!%p4761_p0)
}
  0x35   : > { %s4765_s23 = scalar_lea.vmem %s4991_s14, 2048  ;;  %s4853_s18 = smov [#allocation2]  }
  0x36   : > { %p4766_p1 = scmp.ne.s32.totalorder %s4991_s14, %s4765_s23  ;;  %s4770_s2 = sshll.u32 %s4853_s18, 4  ;;  %s4771_s2 = int_to_ptr.vmem [resolvable:$false] %s4770_s2 }
  0x37   : > { %s4772_s29 = scalar_lea.vmem %s4771_s2, 4096  ;;  %p4773_p2 = scmp.lt.s32.totalorder %s4991_s14, %s4771_s2 }
  0x38   : > { %p4768_p6 = pnand %p4766_p1, %p4754_p7  ;;  %p4774_p3 = scmp.lt.s32.totalorder %s4772_s29, %s4765_s23 }
  0x3a   : > { %p4769_p5 = pneg %p4768_p6  ;;  %p4775_p4 = por %p4774_p3, %p4773_p2 }
  0x3c   : > { %p4776_p8 = pnand %p4775_p4, %p4769_p5 }
  0x3e   : > { %4779 = shalt.err (!%p4776_p8)
}
  0x3f   : > { %s6730_s17 = smov 4   ;;  %s6731_s12 = smov 64  }
  0x40   : > { %4617 = dma.hbm_to_vmem [thread:$0]  (!%p4987_p11), %s4985_s19, 2048, %s4991_s14, %s4993_s20, %s6731_s12, %s6731_s12, %s6730_s17  }
  0x41   : > { %p6732_p1 = scmp.ne.s32.totalorder %s6724_s9, 0 }
  0x43   : > { %271 = sbr.rel (%p6732_p1) target bundleno = 1068 (0x42c), region = 48 }
  0x48   : > { %s5020_s18 = sand.u32 1, %s4840_s25   ;;  %p6733_p4 = scmp.ne.s32.totalorder %s6722_s30, 0 }
  0x49   : > { %s3749_s2 = sshll.u32 %s5020_s18, 7  ;;  %s274_s10 = scalar_lea.sflag [#allocation3], %s5020_s18 }
  0x4a   : > { %s5026_s15 = scalar_lea.vmem [#allocation2], %s3749_s2 }
  0x4b   : > { %4823 = dma.done.wait (%p6733_p4), %s274_s10, 2048  }
  0x4c   : > { %4825 = vsyncadd (%p6733_p4), %s274_s10, 4294965248  ;;  %p6734_p6 = scmp.eq.s32.totalorder %s4919_s28, 0 }
  0x4e   : > { %4827 = dma.done.wait (%p6734_p6), [#allocation6], 1152   ;;  %p6735_p8 = pmov %p6734_p6 }
  0x4f   : > { %v4664_v0 = vld [vmem:[%s6704_s1 + $0x18] sm:$0xff]   ;;  %v4665_v1 = vld [vmem:[%s6704_s1 + $0x10] sm:$0xff]   ;;  %v4666_v2 = vld [vmem:[%s6704_s1 + $0x8] sm:$0xff]   ;;  %vm464_vm0 = vcmask 523264   ;;  %v6717_v21 = vmov 0   ;;  %vm1101_vm1 = vcmask 130048  }
  0x50   : > { %4829 = vsyncadd (%p6735_p8), [#allocation6], 4294966144  ;;  %4220 = vmatprep.subr.bf16.mxu0 %v4664_v0  ;;  %v313_v3 = vld [vmem:[%s5026_s15] sm:$0xff]   ;;  %v315_v5 = vld [vmem:[%s5026_s15 + $0x8] sm:$0xff]   ;;  %v5081_v22 = vrot.slane %v6717_v21, 1  ;;  %vm866_vm2 = vcmask 1040384  }
  0x51   : > { %4221 = vmatpush3.bf16.msra.mxu0 %v4664_v0  ;;  %4228 = vmatprep.mubr.msk.bf16.mxu0 %vm464_vm0, %v313_v3  ;;  %v4667_v4 = vld [vmem:[%s6704_s1] sm:$0xff]   ;;  %v317_v6 = vld [vmem:[%s5026_s15 + $0x10] sm:$0xff]   ;;  %v319_v7 = vld [vmem:[%s5026_s15 + $0x18] sm:$0xff]   ;;  %vm867_vm3 = vsmask.f32 256  ;;  %vm1541_vm6 = vcmask 1046528  }
  0x52   : > { %4222 = vmatprep.subr.bf16.mxu0 %v4665_v1  ;;  %v321_v8 = vld [vmem:[%s5026_s15 + $0x20] sm:$0xff]   ;;  %v323_v9 = vld [vmem:[%s5026_s15 + $0x28] sm:$0xff]   ;;  %v325_v10 = vld [vmem:[%s5026_s15 + $0x30] sm:$0xff]   ;;  %vm903_vm5 = vsmask.f32 7424  ;;  %vm3611_vm7 = vcmask 519168  }
  0x53   : > { %v327_v11 = vld [vmem:[%s5026_s15 + $0x38] sm:$0xff]   ;;  %v329_v12 = vld [vmem:[%s5026_s15 + $0x40] sm:$0xff]   ;;  %v331_v13 = vld [vmem:[%s5026_s15 + $0x48] sm:$0xff]   ;;  %s6547_s30 = scalar_lea.vmem [#allocation7], %s3749_s2  ;;  %s4029_s2 = sshll.u32 %s4919_s28, 11 }
  0x54   : > { %v333_v14 = vld [vmem:[%s5026_s15 + $0x50] sm:$0xff]   ;;  %v335_v15 = vld [vmem:[%s5026_s15 + $0x58] sm:$0xff]   ;;  %v337_v16 = vld [vmem:[%s5026_s15 + $0x60] sm:$0xff]   ;;  %s6654_s23 = scalar_lea.hbm %s6710_s7, %s4029_s2  ;;  %s3645_s28 = scalar_lea.sflag [#allocation4], %s5020_s18 }
  0x55   : > { %4223 = vmatpush3.bf16.msra.mxu0 %v4665_v1  ;;  %v339_v17 = vld [vmem:[%s5026_s15 + $0x68] sm:$0xff]   ;;  %v341_v18 = vld [vmem:[%s5026_s15 + $0x70] sm:$0xff]   ;;  %v343_v19 = vld [vmem:[%s5026_s15 + $0x78] sm:$0xff]   ;;  %p6805_p11 = scmp.ne.s32.totalorder %s6728_s22, 0  ;;  %s4855_s17 = smov [#allocation7]  }
  0x56   : > { %4224 = vmatprep.subr.bf16.mxu0 %v4666_v2  ;;  %v4684_v20 = vld [vmem:[#allocation5 + $0x8] sm:$0xff]   ;;  %v5085_v23 = vld [vmem:[#allocation5 + $0x10] sm:$0xff]   ;;  %v5088_v24 = vld [vmem:[#allocation5] sm:$0xff]   ;;  %s4784_s12 = sshll.u32 %s4855_s17, 4  ;;  %s4785_s12 = int_to_ptr.vmem [resolvable:$false] %s4784_s12 }
  0x57   : > { %4600 = vmatprep.subr.bf16.mxu1 %v4684_v20  ;;  %v5094_v26 = vld [vmem:[%s6707_s4] ss:$0 sm:$0xff]  ;;  %vm5102_vm4 = vmand %vm866_vm2, %vm867_vm3  ;;  %s4786_s10 = scalar_lea.vmem %s4785_s12, 4096 }
  0x58   : > { %4601 = vmatpush3.bf16.msra.mxu1 %v4684_v20 }
  0x59   : > { %4225 = vmatpush3.bf16.msra.mxu0 %v4666_v2  ;;  %4294 = vmatprep.subr.bf16.mxu1 %v5088_v24 }
  0x5a   : > { %4226 = vmatprep.subr.bf16.mxu0 %v4667_v4 }
  0x5d   : > { %4227 = vmatpush3.bf16.msra.mxu0 %v4667_v4 }
  0x5e   : > { %4260 = vmatprep.subr.bf16.mxu0 %v4684_v20 }
  0x60   : > { %4229 = vmatmul.mubr.msk.bf16.vlgmr.msra.gmra.mxu0 %vm464_vm0, %v315_v5 }
  0x61   : > { %4232 = vmatprep.mubr.msk.bf16.mxu0 %vm464_vm0, %v317_v6  ;;  %4261 = vmatpush3.bf16.msra.mxu0 %v4684_v20 }
  0x62   : > { %4328 = vmatprep.subr.bf16.mxu0 %v5085_v23 }
  0x68   : > { %4233 = vmatmul.mubr.msk.bf16.gmra.mxu0 %vm464_vm0, %v319_v7 }
  0x69   : > { %4236 = vmatprep.mubr.msk.bf16.mxu0 %vm464_vm0, %v321_v8 }
  0x70   : > { %4237 = vmatmul.mubr.msk.bf16.gmra.mxu0 %vm464_vm0, %v323_v9 }
  0x71   : > { %4240 = vmatprep.mubr.msk.bf16.mxu0 %vm464_vm0, %v325_v10 }
  0x78   : > { %4241 = vmatmul.mubr.msk.bf16.gmra.mxu0 %vm464_vm0, %v327_v11 }
  0x79   : > { %4244 = vmatprep.mubr.msk.bf16.mxu0 %vm464_vm0, %v329_v12 }
  0x80   : > { %4245 = vmatmul.mubr.msk.bf16.gmra.mxu0 %vm464_vm0, %v331_v13 }
  0x81   : > { %4248 = vmatprep.mubr.msk.bf16.mxu0 %vm464_vm0, %v333_v14 }
  0x88   : > { %4249 = vmatmul.mubr.msk.bf16.gmra.mxu0 %vm464_vm0, %v335_v15 }
  0x89   : > { %4252 = vmatprep.mubr.msk.bf16.mxu0 %vm464_vm0, %v337_v16 }
  0x90   : > { %4253 = vmatmul.mubr.msk.bf16.gmra.mxu0 %vm464_vm0, %v339_v17 }
  0x91   : > { %4256 = vmatprep.mubr.msk.bf16.mxu0 %vm464_vm0, %v341_v18 }
  0x98   : > { %4257 = vmatmul.mubr.msk.bf16.gmra.mxu0 %vm464_vm0, %v343_v19 }
  0x99   : > { %4262 = vmatprep.mubr.msk.bf16.mxu0 %vm1101_vm1, %v5081_v22 }
 0x120   : > { %v4230_v25 = vpop.f32.mrf.mxu0 }
 0x121   : > { %v556_v28 = vadd.f32 %v4230_v25, %v5094_v26 }
 0x122   : > { %v547_v27 = vpop.f32.mrf.mxu0 }
 0x123   : > { %v548_v30 = vadd.f32 %v5094_v26, %v547_v27  ;;  %v676_v33 = vmax.f32 %v556_v28, 0.0 }
 0x124   : > { %v4231_v29 = vpop.f32.mrf.mxu0 }
 0x125   : > { %v559_v31 = vadd.f32 %v4231_v29, %v5094_v26  ;;  %v674_v37 = vmax.f32 %v548_v30, 0.0 }
 0x126   : > { %v550_v32 = vpop.f32.mrf.mxu0 }
 0x127   : > { %v677_v34 = vmax.f32 %v559_v31, 0.0  ;;  %v551_v35 = vadd.f32 %v5094_v26, %v550_v32 }
 0x128   : > { %v4234_v36 = vpop.f32.mrf.mxu0 }
 0x129   : > { %v707_v38 = vpack.c.bf16 %v677_v34, %v676_v33  ;;  %v675_v39 = vmax.f32 %v551_v35, 0.0  ;;  %v572_v40 = vadd.f32 %v4234_v36, %v5094_v26 }
 0x12a   : > { %v563_v41 = vpop.f32.mrf.mxu0 }
 0x12b   : > { %v730_v42 = vshrl.u32 %v707_v38, 16  ;;  %v706_v43 = vpack.c.bf16 %v675_v39, %v674_v37  ;;  %v733_v46 = vshll.u32 %v707_v38, 16  ;;  %v680_v50 = vmax.f32 %v572_v40, 0.0 }
 0x12c   : > { %v4235_v44 = vpop.f32.mrf.mxu0  ;;  %v564_v51 = vadd.f32 %v5094_v26, %v563_v41 }
 0x12d   : > { %v732_v45 = vrot.slane %v730_v42, 7  ;;  %v723_v47 = vshrl.u32 %v706_v43, 16  ;;  %v575_v48 = vadd.f32 %v4235_v44, %v5094_v26  ;;  %v726_v55 = vshll.u32 %v706_v43, 16 }
 0x12e   : > { %v566_v52 = vpop.f32.mrf.mxu0  ;;  %v678_v0 = vmax.f32 %v564_v51, 0.0 }
 0x12f   : > { %v735_v53 = vor.u32 %v733_v46, %v732_v45  ;;  %v725_v54 = vrot.slane %v723_v47, 7  ;;  %v681_v56 = vmax.f32 %v575_v48, 0.0  ;;  %v567_v57 = vadd.f32 %v5094_v26, %v566_v52  ;;  %v5139_v47 = vld [vmem:[#allocation5 + $0x20] sm:$0xff]  }
 0x130   : > { %v4238_v58 = vpop.f32.mrf.mxu0  ;;  %v5110_v59 = vsel %vm5102_vm4, %v732_v45, 0 }
 0x131   : > { %v728_v60 = vor.u32 %v726_v55, %v725_v54  ;;  %v5114_v61 = vsel %vm5102_vm4, %v725_v54, 0  ;;  %v709_v62 = vpack.c.bf16 %v681_v56, %v680_v50  ;;  %v679_v1 = vmax.f32 %v567_v57, 0.0 }
 0x132   : > { %v920_v63 = vshll.u32 %v5114_v61, 16  ;;  %v588_v2 = vadd.f32 %v4238_v58, %v5094_v26  ;;  %v579_v3 = vpop.f32.mrf.mxu0  ;;  %v5120_v4 = vsel %vm5102_vm4, 0, %v735_v53  ;;  %v932_v10 = vshll.u32 %v5110_v59, 16 }
 0x133   : > { %v5124_v5 = vsel %vm5102_vm4, 0, %v728_v60  ;;  %v744_v6 = vshrl.u32 %v709_v62, 16  ;;  %v747_v7 = vshll.u32 %v709_v62, 16  ;;  %v708_v8 = vpack.c.bf16 %v679_v1, %v678_v0 }
 0x134   : > { %v4239_v9 = vpop.f32.mrf.mxu0  ;;  %v580_v12 = vadd.f32 %v5094_v26, %v579_v3  ;;  %v915_v14 = vshll.u32 %v5124_v5, 16  ;;  %v922_v15 = vrot.slane %v920_v63, 1  ;;  %v684_v17 = vmax.f32 %v588_v2, 0.0 }
 0x135   : > { %v746_v11 = vrot.slane %v744_v6, 7  ;;  %v591_v13 = vadd.f32 %v4239_v9, %v5094_v26  ;;  %v737_v16 = vshrl.u32 %v708_v8, 16  ;;  %v927_v19 = vshll.u32 %v5120_v4, 16 }
 0x136   : > { %v582_v18 = vpop.f32.mrf.mxu0  ;;  %v740_v20 = vshll.u32 %v708_v8, 16  ;;  %v913_v28 = vshrl.u32 %v5124_v5, 16  ;;  %v917_v31 = vrot.slane %v915_v14, 1  ;;  %v925_v32 = vshrl.u32 %v5120_v4, 16 }
 0x137   : > { %v685_v25 = vmax.f32 %v591_v13, 0.0  ;;  %v583_v27 = vadd.f32 %v5094_v26, %v582_v18  ;;  %v739_v29 = vrot.slane %v737_v16, 7  ;;  %v929_v33 = vrot.slane %v927_v19, 1 }
 0x138   : > { %v4242_v30 = vpop.f32.mrf.mxu0  ;;  %v749_v34 = vor.u32 %v747_v7, %v746_v11  ;;  %v682_v35 = vmax.f32 %v580_v12, 0.0  ;;  %v918_v40 = vor.u32 %v917_v31, %v913_v28  ;;  %v934_v42 = vrot.slane %v932_v10, 1 }
 0x139   : > { %v711_v36 = vpack.c.bf16 %v685_v25, %v684_v17  ;;  %v683_v37 = vmax.f32 %v583_v27, 0.0  ;;  %v742_v38 = vor.u32 %v740_v20, %v739_v29  ;;  %v930_v41 = vor.u32 %v929_v33, %v925_v32 }
 0x13a   : > { %v595_v39 = vpop.f32.mrf.mxu0  ;;  %v5136_v43 = vsel %vm5102_vm4, %v739_v29, 0  ;;  %v604_v46 = vadd.f32 %v4242_v30, %v5094_v26  ;;  %v5143_v48 = vsel %vm5102_vm4, %v746_v11, 0  ;;  %v5151_v52 = vsel %vm903_vm5, %v918_v40, %v922_v15 }
 0x13b   : > { %v758_v44 = vshrl.u32 %v711_v36, 16  ;;  %v710_v45 = vpack.c.bf16 %v683_v37, %v682_v35  ;;  %v5147_v50 = vsel %vm5102_vm4, 0, %v742_v38  ;;  %v596_v51 = vadd.f32 %v5094_v26, %v595_v39  ;;  %4263 = vmatmul.mubr.msk.bf16.vlgmr.msra.gmra.mxu0 %vm1101_vm1, %v5151_v52 }
 0x13c   : > { %v4243_v53 = vpop.f32.mrf.mxu0  ;;  %v5157_v57 = vsel %vm903_vm5, %v930_v41, %v934_v42  ;;  %v5161_v58 = vsel %vm5102_vm4, 0, %v749_v34  ;;  %v761_v60 = vshll.u32 %v711_v36, 16  ;;  %v939_v63 = vshll.u32 %v5147_v50, 16  ;;  %4329 = vmatpush3.bf16.msra.mxu0 %v5085_v23 }
 0x13d   : > { %v760_v54 = vrot.slane %v758_v44, 7  ;;  %v751_v55 = vshrl.u32 %v710_v45, 16  ;;  %v607_v56 = vadd.f32 %v4243_v53, %v5094_v26  ;;  %4266 = vmatprep.mubr.msk.bf16.mxu0 %vm1101_vm1, %v5157_v57  ;;  %v944_v0 = vshll.u32 %v5136_v43, 16  ;;  %4396 = vmatprep.subr.bf16.mxu0 %v5139_v47 }
 0x13e   : > { %v598_v62 = vpop.f32.mrf.mxu0  ;;  %v754_v2 = vshll.u32 %v710_v45, 16  ;;  %v688_v3 = vmax.f32 %v604_v46, 0.0  ;;  %v937_v10 = vshrl.u32 %v5147_v50, 16  ;;  %v941_v11 = vrot.slane %v939_v63, 1 }
 0x13f   : > { %v753_v1 = vrot.slane %v751_v55, 7  ;;  %v689_v6 = vmax.f32 %v607_v56, 0.0  ;;  %v763_v7 = vor.u32 %v761_v60, %v760_v54  ;;  %v599_v8 = vadd.f32 %v5094_v26, %v598_v62 }
 0x140   : > { %v4246_v9 = vpop.f32.mrf.mxu0  ;;  %v686_v13 = vmax.f32 %v596_v51, 0.0  ;;  %v946_v15 = vrot.slane %v944_v0, 1  ;;  %v942_v18 = vor.u32 %v941_v11, %v937_v10  ;;  %v951_v19 = vshll.u32 %v5161_v58, 16 }
 0x141   : > { %v756_v12 = vor.u32 %v754_v2, %v753_v1  ;;  %v713_v14 = vpack.c.bf16 %v689_v6, %v688_v3  ;;  %v687_v16 = vmax.f32 %v599_v8, 0.0  ;;  %v620_v23 = vadd.f32 %v4246_v9, %v5094_v26 }
 0x142   : > { %v611_v17 = vpop.f32.mrf.mxu0  ;;  %v5175_v20 = vsel %vm5102_vm4, %v760_v54, 0  ;;  %v949_v27 = vshrl.u32 %v5161_v58, 16  ;;  %v1548_v28 = vrot.slane %v5110_v59, 1  ;;  %v5181_v29 = vsel %vm5102_vm4, 0, %v763_v7 }
 0x143   : > { %v772_v25 = vshrl.u32 %v713_v14, 16  ;;  %v712_v30 = vpack.c.bf16 %v687_v16, %v686_v13  ;;  %v5184_v31 = vsel %vm903_vm5, %v942_v18, %v946_v15  ;;  %v953_v33 = vrot.slane %v951_v19, 1 }
 0x144   : > { %v4247_v32 = vpop.f32.mrf.mxu0  ;;  %v5188_v34 = vsel %vm5102_vm4, %v753_v1, 0  ;;  %v612_v35 = vadd.f32 %v5094_v26, %v611_v17  ;;  %4267 = vmatmul.mubr.msk.bf16.gmra.mxu0 %vm1101_vm1, %v5184_v31  ;;  %v956_v37 = vshll.u32 %v5143_v48, 16  ;;  %v5197_v38 = vsel %vm5102_vm4, 0, %v756_v12 }
 0x145   : > { %v623_v36 = vadd.f32 %v4247_v32, %v5094_v26  ;;  %v765_v39 = vshrl.u32 %v712_v30, 16  ;;  %v692_v40 = vmax.f32 %v620_v23, 0.0  ;;  %v954_v41 = vor.u32 %v953_v33, %v949_v27 }
 0x146   : > { %v614_v42 = vpop.f32.mrf.mxu0  ;;  %v774_v44 = vrot.slane %v772_v25, 7  ;;  %v768_v45 = vshll.u32 %v712_v30, 16  ;;  %v958_v51 = vrot.slane %v956_v37, 1  ;;  %v975_v56 = vshll.u32 %v5181_v29, 16 }
 0x147   : > { %v693_v46 = vmax.f32 %v623_v36, 0.0  ;;  %v767_v53 = vrot.slane %v765_v39, 7  ;;  %v615_v54 = vadd.f32 %v5094_v26, %v614_v42  ;;  %v980_v60 = vshll.u32 %v5175_v20, 16 }
 0x148   : > { %v4250_v55 = vpop.f32.mrf.mxu0  ;;  %v775_v62 = vshll.u32 %v713_v14, 16  ;;  %v690_v63 = vmax.f32 %v612_v35, 0.0  ;;  %v5203_v1 = vsel %vm903_vm5, %v954_v41, %v958_v51  ;;  %v973_v6 = vshrl.u32 %v5181_v29, 16 }
 0x149   : > { %v715_v0 = vpack.c.bf16 %v693_v46, %v692_v40  ;;  %v770_v2 = vor.u32 %v768_v45, %v767_v53  ;;  %4270 = vmatprep.mubr.msk.bf16.mxu0 %vm1101_vm1, %v5203_v1  ;;  %v691_v3 = vmax.f32 %v615_v54, 0.0  ;;  %v977_v7 = vrot.slane %v975_v56, 1 }
 0x14a   : > { %v627_v8 = vpop.f32.mrf.mxu0  ;;  %v1545_v9 = vrot.slane %v5114_v61, 1  ;;  %v777_v10 = vor.u32 %v775_v62, %v774_v44  ;;  %v5211_v11 = vsel %vm5102_vm4, %v774_v44, 0  ;;  %v636_v14 = vadd.f32 %v4250_v55, %v5094_v26 }
 0x14b   : > { %v786_v12 = vshrl.u32 %v715_v0, 16  ;;  %v714_v13 = vpack.c.bf16 %v691_v3, %v690_v63  ;;  %v978_v15 = vor.u32 %v977_v7, %v973_v6  ;;  %v982_v16 = vrot.slane %v980_v60, 1 }
 0x14c   : > { %v4251_v23 = vpop.f32.mrf.mxu0  ;;  %v789_v18 = vshll.u32 %v715_v0, 16  ;;  %v963_v19 = vshll.u32 %v5197_v38, 16  ;;  %v968_v25 = vshll.u32 %v5188_v34, 16  ;;  %v5218_v27 = vsel %vm5102_vm4, 0, %v770_v2 }
 0x14d   : > { %v788_v17 = vrot.slane %v786_v12, 7  ;;  %v779_v30 = vshrl.u32 %v714_v13, 16  ;;  %v5221_v32 = vsel %vm903_vm5, %v978_v15, %v982_v16  ;;  %v628_v33 = vadd.f32 %v5094_v26, %v627_v8 }
 0x14e   : > { %v630_v35 = vpop.f32.mrf.mxu0  ;;  %v5226_v36 = vsel %vm5102_vm4, 0, %v777_v10  ;;  %v5230_v37 = vsel %vm5102_vm4, %v767_v53, 0  ;;  %4274 = vmatprep.mubr.msk.bf16.mxu1 %vm1101_vm1, %v5221_v32  ;;  %v961_v39 = vshrl.u32 %v5197_v38, 16  ;;  %v965_v40 = vrot.slane %v963_v19, 1 }
 0x14f   : > { %v791_v41 = vor.u32 %v789_v18, %v788_v17  ;;  %v696_v42 = vmax.f32 %v636_v14, 0.0  ;;  %v639_v44 = vadd.f32 %v4251_v23, %v5094_v26  ;;  %v631_v45 = vadd.f32 %v5094_v26, %v630_v35 }
 0x150   : > { %v4254_v46 = vpop.f32.mrf.mxu0  ;;  %v781_v51 = vrot.slane %v779_v30, 7  ;;  %v966_v54 = vor.u32 %v965_v40, %v961_v39  ;;  %v970_v55 = vrot.slane %v968_v25, 1  ;;  %v987_v56 = vshll.u32 %v5218_v27, 16 }
 0x151   : > { %v694_v53 = vmax.f32 %v628_v33, 0.0  ;;  %v697_v60 = vmax.f32 %v639_v44, 0.0  ;;  %v695_v62 = vmax.f32 %v631_v45, 0.0  ;;  %v652_v63 = vadd.f32 %v4254_v46, %v5094_v26 }
 0x152   : > { %v643_v0 = vpop.f32.mrf.mxu0  ;;  %v782_v2 = vshll.u32 %v714_v13, 16  ;;  %v5240_v3 = vsel %vm903_vm5, %v966_v54, %v970_v55  ;;  %v985_v6 = vshrl.u32 %v5218_v27, 16  ;;  %v989_v7 = vrot.slane %v987_v56, 1  ;;  %v5261_v55 = vld [vmem:[#allocation5 + $0x18] sm:$0xff]  }
 0x153   : > { %v5245_v8 = vsel %vm5102_vm4, %v788_v17, 0  ;;  %4271 = vmatmul.mubr.msk.bf16.gmra.mxu0 %vm1101_vm1, %v5240_v3  ;;  %v717_v10 = vpack.c.bf16 %v697_v60, %v696_v42  ;;  %v716_v12 = vpack.c.bf16 %v695_v62, %v694_v53  ;;  %v992_v14 = vshll.u32 %v5230_v37, 16 }
 0x154   : > { %v4255_v15 = vpop.f32.mrf.mxu0  ;;  %v5252_v13 = vsel %vm5102_vm4, 0, %v791_v41  ;;  %v784_v16 = vor.u32 %v782_v2, %v781_v51  ;;  %4330 = vmatprep.mubr.msk.bf16.mxu0 %vm1101_vm1, %v5081_v22  ;;  %v990_v23 = vor.u32 %v989_v7, %v985_v6  ;;  %v700_v25 = vmax.f32 %v652_v63, 0.0 }
 0x155   : > { %v655_v17 = vadd.f32 %v4255_v15, %v5094_v26  ;;  %v800_v18 = vshrl.u32 %v717_v10, 16  ;;  %v793_v19 = vshrl.u32 %v716_v12, 16  ;;  %v1544_v30 = vrot.slane %v5124_v5, 1 }
 0x156   : > { %v646_v33 = vpop.f32.mrf.mxu0  ;;  %v803_v35 = vshll.u32 %v717_v10, 16  ;;  %v644_v39 = vadd.f32 %v5094_v26, %v643_v0  ;;  %v994_v40 = vrot.slane %v992_v14, 1  ;;  %v999_v45 = vshll.u32 %v5226_v36, 16  ;;  %v5283_v10 = vld [vmem:[#allocation5 + $0x30] sm:$0xff]  }
 0x157   : > { %v701_v42 = vmax.f32 %v655_v17, 0.0  ;;  %v802_v41 = vrot.slane %v800_v18, 7  ;;  %v795_v44 = vrot.slane %v793_v19, 7  ;;  %v1004_v46 = vshll.u32 %v5211_v11, 16 }
 0x158   : > { %v4258_v54 = vpop.f32.mrf.mxu0  ;;  %v5264_v56 = vsel %vm903_vm5, %v990_v23, %v994_v40  ;;  %v1547_v60 = vrot.slane %v5120_v4, 1  ;;  %v647_v62 = vadd.f32 %v5094_v26, %v646_v33  ;;  %v5270_v63 = vsel %vm5102_vm4, 0, %v784_v16 }
 0x159   : > { %v719_v53 = vpack.c.bf16 %v701_v42, %v700_v25  ;;  %v5274_v0 = vsel %vm5102_vm4, %v781_v51, 0  ;;  %v796_v2 = vshll.u32 %v716_v12, 16  ;;  %4275 = vmatmul.mubr.msk.bf16.vlgmr.msra.gmra.mxu1 %vm1101_vm1, %v5264_v56  ;;  %v5281_v6 = vsel %vm1541_vm6, %v1544_v30, %v1545_v9 }
 0x15a   : > { %v659_v7 = vpop.f32.mrf.mxu0  ;;  %v805_v14 = vor.u32 %v803_v35, %v802_v41  ;;  %4295 = vmatpush3.bf16.msra.mxu1 %v5088_v24  ;;  %v997_v16 = vshrl.u32 %v5226_v36, 16  ;;  %v1001_v51 = vrot.slane %v999_v45, 1  ;;  %v698_v12 = vmax.f32 %v644_v39, 0.0 }
 0x15b   : > { %v814_v15 = vshrl.u32 %v719_v53, 16  ;;  %v798_v23 = vor.u32 %v796_v2, %v795_v44  ;;  %4331 = vmatmul.mubr.msk.bf16.vlgmr.msra.gmra.mxu0 %vm1101_vm1, %v5281_v6  ;;  %v5292_v61 = vsel %vm1541_vm6, %v1547_v60, %v1548_v28  ;;  %v699_v9 = vmax.f32 %v647_v62, 0.0  ;;  %4362 = vmatprep.subr.bf16.mxu1 %v5261_v55 }
 0x15c   : > { %v5297_v24 = vsel %vm5102_vm4, %v802_v41, 0  ;;  %v1002_v18 = vor.u32 %v1001_v51, %v997_v16  ;;  %v1006_v19 = vrot.slane %v1004_v46, 1  ;;  %4334 = vmatprep.mubr.msk.bf16.mxu0 %vm1101_vm1, %v5292_v61  ;;  %4397 = vmatpush3.bf16.msra.mxu0 %v5139_v47  ;;  %v668_v59 = vadd.f32 %v4258_v54, %v5094_v26  ;;  %v4259_v33 = vpop.f32.mrf.mxu0 }
 0x15d   : > { %v816_v17 = vrot.slane %v814_v15, 7  ;;  %v718_v25 = vpack.c.bf16 %v699_v9, %v698_v12  ;;  %v1011_v28 = vshll.u32 %v5270_v63, 16  ;;  %v1016_v30 = vshll.u32 %v5274_v0, 16  ;;  %4464 = vmatprep.subr.bf16.mxu0 %v5283_v10 }
 0x15e   : > { %v5308_v35 = vsel %vm5102_vm4, 0, %v805_v14  ;;  %v5312_v39 = vsel %vm5102_vm4, %v795_v44, 0  ;;  %v817_v40 = vshll.u32 %v719_v53, 16  ;;  %v5315_v47 = vsel %vm903_vm5, %v1002_v18, %v1006_v19  ;;  %v662_v16 = vpop.f32.mrf.mxu0 }
 0x15f   : > { %v5319_v42 = vsel %vm5102_vm4, 0, %v798_v23  ;;  %4278 = vmatprep.mubr.msk.bf16.mxu1 %vm1101_vm1, %v5315_v47  ;;  %v807_v41 = vshrl.u32 %v718_v25, 16  ;;  %v1009_v45 = vshrl.u32 %v5270_v63, 16  ;;  %v1013_v46 = vrot.slane %v1011_v28, 1 }
 0x160   : > { %v819_v54 = vor.u32 %v817_v40, %v816_v17  ;;  %v660_v60 = vadd.f32 %v5094_v26, %v659_v7  ;;  %v1550_v44 = vrot.slane %v5147_v50, 1  ;;  %v1551_v53 = vrot.slane %v5136_v43, 1 }
 0x161   : > { %v704_v62 = vmax.f32 %v668_v59, 0.0  ;;  %v1014_v2 = vor.u32 %v1013_v46, %v1009_v45  ;;  %v1018_v14 = vrot.slane %v1016_v30, 1  ;;  %v671_v15 = vadd.f32 %v4259_v33, %v5094_v26 }
 0x162   : > { %v5329_v51 = vsel %vm1541_vm6, %v1550_v44, %v1551_v53  ;;  %v1023_v23 = vshll.u32 %v5252_v13, 16  ;;  %v1028_v12 = vshll.u32 %v5245_v8, 16  ;;  %v1553_v9 = vrot.slane %v5161_v58, 1 }
 0x163   : > { %v809_v7 = vrot.slane %v807_v41, 7  ;;  %v810_v18 = vshll.u32 %v718_v25, 16  ;;  %v5335_v19 = vsel %vm903_vm5, %v1014_v2, %v1018_v14  ;;  %4335 = vmatmul.mubr.msk.bf16.gmra.mxu0 %vm1101_vm1, %v5329_v51  ;;  %v705_v43 = vmax.f32 %v671_v15, 0.0 }
 0x164   : > { %4279 = vmatmul.mubr.msk.bf16.gmra.mxu1 %vm1101_vm1, %v5335_v19  ;;  %v1021_v59 = vshrl.u32 %v5252_v13, 16  ;;  %v1025_v28 = vrot.slane %v1023_v23, 1  ;;  %v1554_v30 = vrot.slane %v5143_v48, 1  ;;  %v663_v33 = vadd.f32 %v5094_v26, %v662_v16 }
 0x165   : > { %v702_v40 = vmax.f32 %v660_v60, 0.0  ;;  %v721_v41 = vpack.c.bf16 %v705_v43, %v704_v62  ;;  %v1030_v25 = vrot.slane %v1028_v12, 1  ;;  %v1035_v45 = vshll.u32 %v5319_v42, 16 }
 0x166   : > { %v1026_v46 = vor.u32 %v1025_v28, %v1021_v59  ;;  %v5346_v44 = vsel %vm1541_vm6, %v1553_v9, %v1554_v30  ;;  %v703_v53 = vmax.f32 %v663_v33, 0.0  ;;  %v1040_v2 = vshll.u32 %v5312_v39, 16 }
 0x167   : > { %v812_v14 = vor.u32 %v810_v18, %v809_v7  ;;  %4338 = vmatprep.mubr.msk.bf16.mxu0 %vm1101_vm1, %v5346_v44  ;;  %v1033_v48 = vshrl.u32 %v5319_v42, 16  ;;  %v1037_v15 = vrot.slane %v1035_v45, 1  ;;  %v1556_v26 = vrot.slane %v5197_v38, 1 }
 0x168   : > { %v5355_v60 = vsel %vm5102_vm4, %v816_v17, 0  ;;  %v5358_v62 = vsel %vm903_vm5, %v1026_v46, %v1030_v25  ;;  %v720_v16 = vpack.c.bf16 %v703_v53, %v702_v40  ;;  %v1557_v23 = vrot.slane %v5188_v34, 1 }
 0x169   : > { %v5363_v12 = vsel %vm5102_vm4, %v809_v7, 0  ;;  %4282 = vmatprep.mubr.msk.bf16.mxu1 %vm1101_vm1, %v5358_v62  ;;  %v1038_v9 = vor.u32 %v1037_v15, %v1033_v48  ;;  %v1042_v18 = vrot.slane %v1040_v2, 1  ;;  %v1047_v43 = vshll.u32 %v5308_v35, 16 }
 0x16a   : > { %v828_v59 = vshrl.u32 %v721_v41, 16  ;;  %v821_v17 = vshrl.u32 %v720_v16, 16  ;;  %v5369_v28 = vsel %vm1541_vm6, %v1556_v26, %v1557_v23  ;;  %v1052_v30 = vshll.u32 %v5297_v24, 16 }
 0x16b   : > { %v5374_v34 = vsel %vm5102_vm4, 0, %v812_v14  ;;  %v5377_v7 = vsel %vm903_vm5, %v1038_v9, %v1042_v18  ;;  %4339 = vmatmul.mubr.msk.bf16.gmra.mxu0 %vm1101_vm1, %v5369_v28  ;;  %v1045_v33 = vshrl.u32 %v5308_v35, 16  ;;  %v1049_v40 = vrot.slane %v1047_v43, 1 }
 0x16c   : > { %v5384_v25 = vsel %vm5102_vm4, 0, %v819_v54  ;;  %v823_v45 = vrot.slane %v821_v17, 7  ;;  %v824_v46 = vshll.u32 %v720_v16, 16  ;;  %4283 = vmatmul.mubr.msk.bf16.gmra.mxu1 %vm1101_vm1, %v5377_v7  ;;  %v1559_v53 = vrot.slane %v5181_v29, 1 }
 0x16d   : > { %v831_v2 = vshll.u32 %v721_v41, 16  ;;  %v1050_v14 = vor.u32 %v1049_v40, %v1045_v33  ;;  %v1054_v48 = vrot.slane %v1052_v30, 1  ;;  %v1560_v15 = vrot.slane %v5175_v20, 1 }
 0x16e   : > { %v830_v26 = vrot.slane %v828_v59, 7  ;;  %v826_v23 = vor.u32 %v824_v46, %v823_v45  ;;  %v1059_v9 = vshll.u32 %v5374_v34, 16  ;;  %v1064_v18 = vshll.u32 %v5363_v12, 16 }
 0x16f   : > { %v5393_v54 = vsel %vm903_vm5, %v1050_v14, %v1054_v48  ;;  %v5396_v16 = vsel %vm1541_vm6, %v1559_v53, %v1560_v15  ;;  %v1057_v43 = vshrl.u32 %v5374_v34, 16  ;;  %v1562_v41 = vrot.slane %v5218_v27, 1 }
 0x170   : > { %v5402_v17 = vsel %vm5102_vm4, 0, %v826_v23  ;;  %v5406_v20 = vsel %vm5102_vm4, %v823_v45, 0  ;;  %4286 = vmatprep.mubr.msk.bf16.mxu1 %vm1101_vm1, %v5393_v54  ;;  %4342 = vmatprep.mubr.msk.bf16.mxu0 %vm1101_vm1, %v5396_v16  ;;  %v1061_v59 = vrot.slane %v1059_v9, 1  ;;  %v1563_v30 = vrot.slane %v5230_v37, 1 }
 0x171   : > { %v1066_v33 = vrot.slane %v1064_v18, 1  ;;  %v1071_v40 = vshll.u32 %v5384_v25, 16  ;;  %v1076_v46 = vshll.u32 %v5355_v60, 16  ;;  %v1565_v53 = vrot.slane %v5226_v36, 1 }
 0x172   : > { %v1062_v14 = vor.u32 %v1061_v59, %v1057_v43  ;;  %v5417_v45 = vsel %vm1541_vm6, %v1562_v41, %v1563_v30  ;;  %v1566_v48 = vrot.slane %v5211_v11, 1  ;;  %v1083_v15 = vshll.u32 %v5402_v17, 16 }
 0x173   : > { %v833_v23 = vor.u32 %v831_v2, %v830_v26  ;;  %4343 = vmatmul.mubr.msk.bf16.gmra.mxu0 %vm1101_vm1, %v5417_v45  ;;  %v1069_v37 = vshrl.u32 %v5384_v25, 16  ;;  %v1073_v9 = vrot.slane %v1071_v40, 1  ;;  %v1081_v18 = vshrl.u32 %v5402_v17, 16 }
 0x174   : > { %v5426_v21 = vsel %vm903_vm5, %v1062_v14, %v1066_v33  ;;  %v5429_v43 = vsel %vm1541_vm6, %v1565_v53, %v1566_v48  ;;  %v1085_v41 = vrot.slane %v1083_v15, 1  ;;  %v1088_v11 = vshll.u32 %v5406_v20, 16 }
 0x175   : > { %4287 = vmatmul.mubr.msk.bf16.gmra.mxu1 %vm1101_vm1, %v5426_v21  ;;  %v1074_v2 = vor.u32 %v1073_v9, %v1069_v37  ;;  %v1078_v59 = vrot.slane %v1076_v46, 1  ;;  %4346 = vmatprep.mubr.msk.bf16.mxu0 %vm1101_vm1, %v5429_v43  ;;  %v1568_v40 = vrot.slane %v5270_v63, 1  ;;  %v1571_v53 = vrot.slane %v5252_v13, 1 }
 0x176   : > { %v1086_v30 = vor.u32 %v1085_v41, %v1081_v18  ;;  %v5443_v14 = vsel %vm5102_vm4, 0, %v833_v23  ;;  %v5447_v48 = vsel %vm5102_vm4, %v830_v26, 0  ;;  %v1090_v46 = vrot.slane %v1088_v11, 1 }
 0x177   : > { %v5438_v33 = vsel %vm903_vm5, %v1074_v2, %v1078_v59  ;;  %v1569_v15 = vrot.slane %v5274_v0, 1  ;;  %v1572_v37 = vrot.slane %v5245_v8, 1  ;;  %v2263_v23 = vrot.slane %v5447_v48, 1 }
 0x178   : > { %4290 = vmatprep.mubr.msk.bf16.mxu1 %vm1101_vm1, %v5438_v33  ;;  %v5454_v9 = vsel %vm903_vm5, %v1086_v30, %v1090_v46  ;;  %v2262_v26 = vrot.slane %v5443_v14, 1  ;;  %v6739_v0 = vmov 0   ;;  %v1574_v41 = vrot.slane %v5319_v42, 1 }
 0x179   : > { %6738 = vst [vmem:[#allocation11_spill] sm:$0xff] %v5454_v9  ;;  %v5457_v18 = vsel %vm1541_vm6, %v1568_v40, %v1569_v15  ;;  %v5463_v49 = vsel %vm1541_vm6, %v1571_v53, %v1572_v37  ;;  %v1577_v11 = vrot.slane %v5308_v35, 1  ;;  %v1575_v2 = vrot.slane %v5312_v39, 1  ;;  %v4689_v53 = vld [vmem:[#allocation5 + $0x28] sm:$0xff]  }
 0x17a   : > { %v5471_v8 = vsel %vm1541_vm6, %v2262_v26, %v2263_v23  ;;  %v1578_v59 = vrot.slane %v5297_v24, 1  ;;  %v1580_v24 = vrot.slane %v5374_v34, 1  ;;  %v1583_v39 = vrot.slane %v5384_v25, 1  ;;  %v4692_v26 = vld [vmem:[#allocation5 + $0x40] sm:$0xff]  }
 0x17b   : > { %4347 = vmatmul.mubr.msk.bf16.gmra.mxu0 %vm1101_vm1, %v5457_v18  ;;  %v5479_v30 = vsel %vm1541_vm6, %v1574_v41, %v1575_v2  ;;  %v1581_v46 = vrot.slane %v5363_v12, 1  ;;  %v1584_v15 = vrot.slane %v5355_v60, 1  ;;  %v1586_v60 = vrot.slane %v5402_v17, 1 }
 0x17c   : > { %4350 = vmatprep.mubr.msk.bf16.mxu0 %vm1101_vm1, %v5463_v49  ;;  %v5484_v40 = vsel %vm1541_vm6, %v1577_v11, %v1578_v59  ;;  %v1587_v12 = vrot.slane %v5406_v20, 1  ;;  %v2051_v41 = vshll.u32 %v5447_v48, 16 }
 0x17d   : > { %4291 = vmatmul.mubr.msk.bf16.gmra.mxu1 %vm1101_vm1, %v5454_v9  ;;  %v5498_v37 = vsel %vm1541_vm6, %v1580_v24, %v1581_v46 }
 0x17e   : > { %4296 = vmatprep.mubr.bf16.mxu1 %v6739_v0  ;;  %v5514_v23 = vsel %vm1541_vm6, %v1586_v60, %v1587_v12  ;;  %v2053_v2 = vrot.slane %v2051_v41, 1 }
 0x183   : > { %4351 = vmatmul.mubr.msk.bf16.gmra.mxu0 %vm1101_vm1, %v5479_v30 }
 0x184   : > { %4354 = vmatprep.mubr.msk.bf16.mxu0 %vm1101_vm1, %v5484_v40 }
 0x185   : > { %4297 = vmatmul.mubr.msk.bf16.vlgmr.msra.gmra.mxu1 %vm1101_vm1, %v5124_v5 }
 0x186   : > { %4363 = vmatpush3.bf16.msra.mxu1 %v5261_v55  ;;  %4300 = vmatprep.mubr.msk.bf16.mxu1 %vm1101_vm1, %v5120_v4  ;;  %v5503_v55 = vsel %vm1541_vm6, %v1583_v39, %v1584_v15 }
 0x187   : > { %4430 = vmatprep.subr.bf16.mxu1 %v4689_v53 }
 0x18b   : > { %4355 = vmatmul.mubr.msk.bf16.gmra.mxu0 %vm1101_vm1, %v5498_v37 }
 0x18c   : > { %4358 = vmatprep.mubr.msk.bf16.mxu0 %vm1101_vm1, %v5503_v55 }
 0x18d   : > { %4301 = vmatmul.mubr.msk.bf16.gmra.mxu1 %vm1101_vm1, %v5147_v50 }
 0x18e   : > { %4304 = vmatprep.mubr.msk.bf16.mxu1 %vm1101_vm1, %v5161_v58 }
 0x193   : > { %4359 = vmatmul.mubr.msk.bf16.gmra.mxu0 %vm1101_vm1, %v5514_v23 }
 0x194   : > { %4398 = vmatprep.mubr.msk.bf16.mxu0 %vm1101_vm1, %v5151_v52  ;;  %v4691_v52 = vld [vmem:[#allocation5 + $0x38] sm:$0xff]  }
 0x195   : > { %4305 = vmatmul.mubr.msk.bf16.gmra.mxu1 %vm1101_vm1, %v5197_v38 }
 0x196   : > { %4308 = vmatprep.mubr.msk.bf16.mxu1 %vm1101_vm1, %v5181_v29 }
 0x19b   : > { %4399 = vmatmul.mubr.msk.bf16.vlgmr.msra.gmra.mxu0 %vm1101_vm1, %v5157_v57 }
 0x19c   : > { %4402 = vmatprep.mubr.msk.bf16.mxu0 %vm1101_vm1, %v5184_v31  ;;  %4465 = vmatpush3.bf16.msra.mxu0 %v5283_v10  ;;  %v2046_v10 = vshll.u32 %v5443_v14, 16 }
 0x19d   : > { %4309 = vmatmul.mubr.msk.bf16.gmra.mxu1 %vm1101_vm1, %v5218_v27  ;;  %4532 = vmatprep.subr.bf16.mxu0 %v4692_v26 }
 0x19e   : > { %4312 = vmatprep.mubr.msk.bf16.mxu1 %vm1101_vm1, %v5226_v36  ;;  %v2048_v20 = vrot.slane %v2046_v10, 1 }
 0x1a3   : > { %4403 = vmatmul.mubr.msk.bf16.gmra.mxu0 %vm1101_vm1, %v5203_v1 }
 0x1a4   : > { %4406 = vmatprep.mubr.msk.bf16.mxu0 %vm1101_vm1, %v5240_v3 }
 0x1a5   : > { %4313 = vmatmul.mubr.msk.bf16.gmra.mxu1 %vm1101_vm1, %v5270_v63 }
 0x1a6   : > { %4316 = vmatprep.mubr.msk.bf16.mxu1 %vm1101_vm1, %v5252_v13 }
 0x1ab   : > { %4407 = vmatmul.mubr.msk.bf16.gmra.mxu0 %vm1101_vm1, %v5221_v32 }
 0x1ac   : > { %4410 = vmatprep.mubr.msk.bf16.mxu0 %vm1101_vm1, %v5264_v56 }
 0x1ad   : > { %4317 = vmatmul.mubr.msk.bf16.gmra.mxu1 %vm1101_vm1, %v5319_v42 }
 0x1ae   : > { %4320 = vmatprep.mubr.msk.bf16.mxu1 %vm1101_vm1, %v5308_v35 }
 0x1b3   : > { %4411 = vmatmul.mubr.msk.bf16.gmra.mxu0 %vm1101_vm1, %v5315_v47 }
 0x1b4   : > { %4414 = vmatprep.mubr.msk.bf16.mxu0 %vm1101_vm1, %v5335_v19 }
 0x1b5   : > { %4321 = vmatmul.mubr.msk.bf16.gmra.mxu1 %vm1101_vm1, %v5374_v34 }
 0x1b6   : > { %4324 = vmatprep.mubr.msk.bf16.mxu1 %vm1101_vm1, %v5384_v25 }
 0x1bb   : > { %4415 = vmatmul.mubr.msk.bf16.gmra.mxu0 %vm1101_vm1, %v5358_v62 }
 0x1bc   : > { %4418 = vmatprep.mubr.msk.bf16.mxu0 %vm1101_vm1, %v5377_v7 }
 0x1bd   : > { %4325 = vmatmul.mubr.msk.bf16.gmra.mxu1 %vm1101_vm1, %v5402_v17 }
 0x1be   : > { %4364 = vmatprep.mubr.msk.bf16.mxu1 %vm1101_vm1, %v5124_v5  ;;  %v2044_v5 = vshrl.u32 %v5443_v14, 16 }
 0x1c0   : > { %v2049_v11 = vor.u32 %v2048_v20, %v2044_v5 }
 0x1c2   : > { %v5585_v59 = vsel %vm903_vm5, %v2049_v11, %v2053_v2 }
 0x1c3   : > { %4419 = vmatmul.mubr.msk.bf16.gmra.mxu0 %vm1101_vm1, %v5393_v54  ;;  %6740 = vst [vmem:[#allocation12_spill] sm:$0xff] %v5585_v59 }
 0x1c4   : > { %4422 = vmatprep.mubr.msk.bf16.mxu0 %vm1101_vm1, %v5426_v21 }
 0x1c5   : > { %4365 = vmatmul.mubr.msk.bf16.vlgmr.msra.gmra.mxu1 %vm1101_vm1, %v5120_v4 }
 0x1c6   : > { %4431 = vmatpush3.bf16.msra.mxu1 %v4689_v53  ;;  %4368 = vmatprep.mubr.msk.bf16.mxu1 %vm1101_vm1, %v5147_v50 }
 0x1c7   : > { %4498 = vmatprep.subr.bf16.mxu1 %v4691_v52 }
 0x1cb   : > { %4423 = vmatmul.mubr.msk.bf16.gmra.mxu0 %vm1101_vm1, %v5438_v33 }
 0x1cc   : > { %4426 = vmatprep.mubr.msk.bf16.mxu0 %vm1101_vm1, %v5454_v9 }
 0x1cd   : > { %4369 = vmatmul.mubr.msk.bf16.gmra.mxu1 %vm1101_vm1, %v5161_v58 }
 0x1ce   : > { %4372 = vmatprep.mubr.msk.bf16.mxu1 %vm1101_vm1, %v5197_v38 }
 0x1d3   : > { %4427 = vmatmul.mubr.msk.bf16.gmra.mxu0 %vm1101_vm1, %v5585_v59 }
 0x1d4   : > { %4466 = vmatprep.mubr.msk.bf16.mxu0 %vm1101_vm1, %v5120_v4 }
 0x1d5   : > { %4373 = vmatmul.mubr.msk.bf16.gmra.mxu1 %vm1101_vm1, %v5181_v29 }
 0x1d6   : > { %4376 = vmatprep.mubr.msk.bf16.mxu1 %vm1101_vm1, %v5218_v27 }
 0x1db   : > { %4467 = vmatmul.mubr.msk.bf16.vlgmr.msra.gmra.mxu0 %vm1101_vm1, %v5147_v50 }
 0x1dc   : > { %4470 = vmatprep.mubr.msk.bf16.mxu0 %vm1101_vm1, %v5161_v58  ;;  %4533 = vmatpush3.bf16.msra.mxu0 %v4692_v26 }
 0x1dd   : > { %4377 = vmatmul.mubr.msk.bf16.gmra.mxu1 %vm1101_vm1, %v5226_v36 }
 0x1de   : > { %4380 = vmatprep.mubr.msk.bf16.mxu1 %vm1101_vm1, %v5270_v63 }
 0x1e3   : > { %4471 = vmatmul.mubr.msk.bf16.gmra.mxu0 %vm1101_vm1, %v5197_v38 }
 0x1e4   : > { %4474 = vmatprep.mubr.msk.bf16.mxu0 %vm1101_vm1, %v5181_v29 }
 0x1e5   : > { %4381 = vmatmul.mubr.msk.bf16.gmra.mxu1 %vm1101_vm1, %v5252_v13 }
 0x1e6   : > { %4384 = vmatprep.mubr.msk.bf16.mxu1 %vm1101_vm1, %v5319_v42 }
 0x1eb   : > { %4475 = vmatmul.mubr.msk.bf16.gmra.mxu0 %vm1101_vm1, %v5218_v27 }
 0x1ec   : > { %4478 = vmatprep.mubr.msk.bf16.mxu0 %vm1101_vm1, %v5226_v36 }
 0x1ed   : > { %4385 = vmatmul.mubr.msk.bf16.gmra.mxu1 %vm1101_vm1, %v5308_v35 }
 0x1ee   : > { %4388 = vmatprep.mubr.msk.bf16.mxu1 %vm1101_vm1, %v5374_v34 }
 0x1f3   : > { %4479 = vmatmul.mubr.msk.bf16.gmra.mxu0 %vm1101_vm1, %v5270_v63 }
 0x1f4   : > { %4482 = vmatprep.mubr.msk.bf16.mxu0 %vm1101_vm1, %v5252_v13 }
 0x1f5   : > { %4389 = vmatmul.mubr.msk.bf16.gmra.mxu1 %vm1101_vm1, %v5384_v25 }
 0x1f6   : > { %4392 = vmatprep.mubr.msk.bf16.mxu1 %vm1101_vm1, %v5402_v17 }
 0x1fb   : > { %4483 = vmatmul.mubr.msk.bf16.gmra.mxu0 %vm1101_vm1, %v5319_v42  ;;  %v5631_v4 = vpop.f32.mrf.mxu0 }
 0x1fc   : > { %4486 = vmatprep.mubr.msk.bf16.mxu0 %vm1101_vm1, %v5308_v35 }
 0x1fd   : > { %4393 = vmatmul.mubr.msk.bf16.gmra.mxu1 %vm1101_vm1, %v5443_v14  ;;  %v5637_v50 = vpop.f32.mrf.mxu0 }
 0x1fe   : > { %4432 = vmatprep.mubr.msk.bf16.mxu1 %vm1101_vm1, %v5281_v6 }
 0x1ff   : > { %v5639_v58 = vpop.f32.mrf.mxu0 }
 0x201   : > { %v5641_v29 = vpop.f32.mrf.mxu0 }
 0x203   : > { %4487 = vmatmul.mubr.msk.bf16.gmra.mxu0 %vm1101_vm1, %v5374_v34 }
 0x204   : > { %4490 = vmatprep.mubr.msk.bf16.mxu0 %vm1101_vm1, %v5384_v25  ;;  %v5647_v38 = vpop.f32.mrf.mxu0 }
 0x205   : > { %4433 = vmatmul.mubr.msk.bf16.vlgmr.msra.gmra.mxu1 %vm1101_vm1, %v5292_v61 }
 0x206   : > { %4499 = vmatpush3.bf16.msra.mxu1 %v4691_v52  ;;  %4436 = vmatprep.mubr.msk.bf16.mxu1 %vm1101_vm1, %v5329_v51  ;;  %v5653_v27 = vpop.f32.mrf.mxu0 }
 0x208   : > { %v5657_v36 = vpop.f32.mrf.mxu0 }
 0x20a   : > { %v5665_v13 = vpop.f32.mrf.mxu0 }
 0x20b   : > { %4491 = vmatmul.mubr.msk.bf16.gmra.mxu0 %vm1101_vm1, %v5402_v17 }
 0x20c   : > { %4494 = vmatprep.mubr.msk.bf16.mxu0 %vm1101_vm1, %v5443_v14 }
 0x20d   : > { %4437 = vmatmul.mubr.msk.bf16.gmra.mxu1 %vm1101_vm1, %v5346_v44 }
 0x20e   : > { %4440 = vmatprep.mubr.msk.bf16.mxu1 %vm1101_vm1, %v5369_v28 }
 0x213   : > { %v5667_v63 = vpop.f32.mrf.mxu0  ;;  %4495 = vmatmul.mubr.bf16.gmra.mxu0 %v6739_v0 }
 0x214   : > { %4534 = vmatprep.mubr.msk.bf16.mxu0 %vm1101_vm1, %v5292_v61 }
 0x215   : > { %4441 = vmatmul.mubr.msk.bf16.gmra.mxu1 %vm1101_vm1, %v5396_v16  ;;  %v5674_v6 = vpop.f32.mrf.mxu0 }
 0x216   : > { %4444 = vmatprep.mubr.msk.bf16.mxu1 %vm1101_vm1, %v5417_v45 }
 0x217   : > { %v5678_v35 = vpop.f32.mrf.mxu0 }
 0x219   : > { %v5680_v42 = vpop.f32.mrf.mxu0  ;;  %v5682_v34 = vpop.f32.mrf.mxu1 }
 0x21b   : > { %v5684_v25 = vpop.f32.mrf.mxu0  ;;  %4535 = vmatmul.mubr.msk.bf16.vlgmr.msra.gmra.mxu0 %vm1101_vm1, %v5329_v51  ;;  %v5688_v61 = vpop.f32.mrf.mxu1 }
 0x21c   : > { %4538 = vmatprep.mubr.msk.bf16.mxu0 %vm1101_vm1, %v5346_v44 }
 0x21d   : > { %4445 = vmatmul.mubr.msk.bf16.gmra.mxu1 %vm1101_vm1, %v5429_v43  ;;  %v5694_v17 = vpop.f32.mrf.mxu0  ;;  %v5696_v14 = vpop.f32.mrf.mxu1 }
 0x21e   : > { %4448 = vmatprep.mubr.msk.bf16.mxu1 %vm1101_vm1, %v5457_v18 }
 0x21f   : > { %v5700_v48 = vpop.f32.mrf.mxu0  ;;  %v5702_v0 = vpop.f32.mrf.mxu1 }
 0x221   : > { %v5704_v51 = vpop.f32.mrf.mxu0 }
 0x223   : > { %v5706_v53 = vpop.f32.mrf.mxu0  ;;  %4539 = vmatmul.mubr.msk.bf16.gmra.mxu0 %vm1101_vm1, %v5369_v28 }
 0x224   : > { %v5710_v44 = vpop.f32.mrf.mxu1  ;;  %4542 = vmatprep.mubr.msk.bf16.mxu0 %vm1101_vm1, %v5396_v16 }
 0x225   : > { %4449 = vmatmul.mubr.msk.bf16.gmra.mxu1 %vm1101_vm1, %v5463_v49  ;;  %v5716_v24 = vpop.f32.mrf.mxu0 }
 0x226   : > { %4452 = vmatprep.mubr.msk.bf16.mxu1 %vm1101_vm1, %v5479_v30  ;;  %v5720_v39 = vpop.f32.mrf.mxu1 }
 0x227   : > { %v5722_v46 = vpop.f32.mrf.mxu0 }
 0x228   : > { %v5724_v15 = vpop.f32.mrf.mxu1 }
 0x229   : > { %v5726_v28 = vpop.f32.mrf.mxu0 }
 0x22a   : > { %v5728_v60 = vpop.f32.mrf.mxu1 }
 0x22b   : > { %v5730_v12 = vpop.f32.mrf.mxu0  ;;  %4543 = vmatmul.mubr.msk.bf16.gmra.mxu0 %vm1101_vm1, %v5417_v45 }
 0x22c   : > { %v5734_v16 = vpop.f32.mrf.mxu1  ;;  %4546 = vmatprep.mubr.msk.bf16.mxu0 %vm1101_vm1, %v5429_v43 }
 0x22d   : > { %4453 = vmatmul.mubr.msk.bf16.gmra.mxu1 %vm1101_vm1, %v5484_v40  ;;  %v5740_v26 = vpop.f32.mrf.mxu0 }
 0x22e   : > { %4456 = vmatprep.mubr.msk.bf16.mxu1 %vm1101_vm1, %v5498_v37  ;;  %v5744_v52 = vpop.f32.mrf.mxu1 }
 0x22f   : > { %6741 = vst [vmem:[#allocation13_spill] sm:$0xff] %v5744_v52  ;;  %v5746_v10 = vpop.f32.mrf.mxu0 }
 0x230   : > { %v5748_v20 = vpop.f32.mrf.mxu1 }
 0x231   : > { %6742 = vst [vmem:[#allocation14_spill] sm:$0xff] %v5748_v20  ;;  %v5750_v45 = vpop.f32.mrf.mxu0 }
 0x232   : > { %v5752_v5 = vpop.f32.mrf.mxu1 }
 0x233   : > { %6743 = vst [vmem:[#allocation15_spill] sm:$0xff] %v5752_v5  ;;  %v5754_v41 = vpop.f32.mrf.mxu0  ;;  %4547 = vmatmul.mubr.msk.bf16.gmra.mxu0 %vm1101_vm1, %v5457_v18 }
 0x234   : > { %4550 = vmatprep.mubr.msk.bf16.mxu0 %vm1101_vm1, %v5463_v49 }
 0x235   : > { %v5760_v43 = vpop.f32.mrf.mxu1  ;;  %4457 = vmatmul.mubr.msk.bf16.gmra.mxu1 %vm1101_vm1, %v5503_v55  ;;  %v5764_v11 = vpop.f32.mrf.mxu0 }
 0x236   : > { %6744 = vst [vmem:[#allocation16_spill] sm:$0xff] %v5760_v43  ;;  %4460 = vmatprep.mubr.msk.bf16.mxu1 %vm1101_vm1, %v5514_v23 }
 0x237   : > { %v5768_v2 = vpop.f32.mrf.mxu1  ;;  %v5770_v59 = vpop.f32.mrf.mxu0 }
 0x238   : > { %6745 = vst [vmem:[#allocation17_spill] sm:$0xff] %v5768_v2 }
 0x239   : > { %v5772_v9 = vpop.f32.mrf.mxu1  ;;  %v5774_v18 = vpop.f32.mrf.mxu0 }
 0x23a   : > { %6746 = vst [vmem:[#allocation18_spill] sm:$0xff] %v5772_v9 }
 0x23b   : > { %v5776_v5 = vpop.f32.mrf.mxu1  ;;  %v5778_v49 = vpop.f32.mrf.mxu0  ;;  %4551 = vmatmul.mubr.msk.bf16.gmra.mxu0 %vm1101_vm1, %v5479_v30 }
 0x23c   : > { %6747 = vst [vmem:[#allocation19_spill] sm:$0xff] %v5776_v5  ;;  %4554 = vmatprep.mubr.msk.bf16.mxu0 %vm1101_vm1, %v5484_v40 }
 0x23d   : > { %v5784_v43 = vpop.f32.mrf.mxu1  ;;  %4461 = vmatmul.mubr.msk.bf16.gmra.mxu1 %vm1101_vm1, %v5471_v8  ;;  %v5788_v2 = vpop.f32.mrf.mxu0 }
 0x23e   : > { %6748 = vst [vmem:[#allocation20_spill] sm:$0xff] %v5784_v43  ;;  %4500 = vmatprep.mubr.msk.bf16.mxu1 %vm1101_vm1, %v5157_v57 }
 0x23f   : > { %v5792_v9 = vpop.f32.mrf.mxu1  ;;  %v5794_v5 = vpop.f32.mrf.mxu0 }
 0x240   : > { %6749 = vst [vmem:[#allocation21_spill] sm:$0xff] %v5792_v9 }
 0x241   : > { %v5796_v20 = vpop.f32.mrf.mxu1  ;;  %v5798_v30 = vpop.f32.mrf.mxu0 }
 0x242   : > { %6750 = vst [vmem:[#allocation22_spill] sm:$0xff] %v5796_v20  ;;  %6751 = vst [vmem:[#allocation23_spill] sm:$0xff] %v5798_v30 }
 0x243   : > { %v5800_v52 = vpop.f32.mrf.mxu1  ;;  %v5802_v40 = vpop.f32.mrf.mxu0  ;;  %4555 = vmatmul.mubr.msk.bf16.gmra.mxu0 %vm1101_vm1, %v5498_v37 }
 0x244   : > { %6752 = vst [vmem:[#allocation24_spill] sm:$0xff] %v5800_v52  ;;  %6753 = vst [vmem:[#allocation25_spill] sm:$0xff] %v5802_v40  ;;  %4558 = vmatprep.mubr.msk.bf16.mxu0 %vm1101_vm1, %v5503_v55 }
 0x245   : > { %v4298_v43 = vpop.f32.mrf.mxu1  ;;  %4501 = vmatmul.mubr.msk.bf16.vlgmr.msra.gmra.mxu1 %vm1101_vm1, %v5184_v31  ;;  %v5810_v57 = vpop.f32.mrf.mxu0 }
 0x246   : > { %6754 = vst [vmem:[#allocation26_spill] sm:$0xff] %v5810_v57  ;;  %v1392_v20 = vadd.f32 %v4298_v43, %v5631_v4  ;;  %4504 = vmatprep.mubr.msk.bf16.mxu1 %vm1101_vm1, %v5203_v1 }
 0x247   : > { %v1383_v52 = vpop.f32.mrf.mxu1  ;;  %v5815_v9 = vpop.f32.mrf.mxu0 }
 0x248   : > { %v1384_v40 = vadd.f32 %v1383_v52, %v5637_v50  ;;  %v5819_v37 = vadd.f32 %v5684_v25, %v1392_v20 }
 0x249   : > { %v4299_v55 = vpop.f32.mrf.mxu1  ;;  %v5821_v30 = vpop.f32.mrf.mxu0 }
 0x24a   : > { %v1395_v31 = vadd.f32 %v4299_v55, %v5639_v58  ;;  %v5825_v57 = vadd.f32 %v5694_v17, %v1384_v40 }
 0x24b   : > { %v1386_v4 = vpop.f32.mrf.mxu1  ;;  %v5827_v43 = vpop.f32.mrf.mxu0  ;;  %4559 = vmatmul.mubr.msk.bf16.gmra.mxu0 %vm1101_vm1, %v5514_v23 }
 0x24c   : > { %v1387_v1 = vadd.f32 %v1386_v4, %v5641_v29  ;;  %4562 = vmatprep.mubr.msk.bf16.mxu0 %vm1101_vm1, %v5471_v8  ;;  %v5835_v50 = vadd.f32 %v5700_v48, %v1395_v31 }
 0x24d   : > { %v4302_v25 = vpop.f32.mrf.mxu1  ;;  %4505 = vmatmul.mubr.msk.bf16.gmra.mxu1 %vm1101_vm1, %v5240_v3  ;;  %v5839_v58 = vpop.f32.mrf.mxu0 }
 0x24e   : > { %v1408_v17 = vadd.f32 %v4302_v25, %v5647_v38  ;;  %4508 = vmatprep.mubr.msk.bf16.mxu1 %vm1101_vm1, %v5221_v32  ;;  %v5845_v23 = vadd.f32 %v5704_v51, %v1387_v1 }
 0x24f   : > { %v1399_v29 = vpop.f32.mrf.mxu1  ;;  %v5847_v52 = vpop.f32.mrf.mxu0 }
 0x250   : > { %v1400_v8 = vadd.f32 %v1399_v29, %v5653_v27  ;;  %v5851_v48 = vadd.f32 %v5706_v53, %v1408_v17 }
 0x251   : > { %v4303_v20 = vpop.f32.mrf.mxu1  ;;  %v5853_v3 = vpop.f32.mrf.mxu0 }
 0x252   : > { %v1411_v40 = vadd.f32 %v4303_v20, %v5657_v36  ;;  %v5857_v38 = vadd.f32 %v5716_v24, %v1400_v8 }
 0x253   : > { %v1402_v32 = vpop.f32.mrf.mxu1  ;;  %v5859_v55 = vpop.f32.mrf.mxu0  ;;  %4563 = vmatmul.mubr.msk.bf16.gmra.mxu0 %vm1101_vm1, %v5081_v22 }
 0x254   : > { %v1403_v51 = vadd.f32 %v1402_v32, %v5665_v13  ;;  %v5865_v27 = vadd.f32 %v5722_v46, %v1411_v40  ;;  %v4693_v13 = vld [vmem:[%s6706_s3] sm:$0xff]  }
 0x255   : > { %v4306_v53 = vpop.f32.mrf.mxu1  ;;  %4509 = vmatmul.mubr.msk.bf16.gmra.mxu1 %vm1101_vm1, %v5264_v56  ;;  %v5869_v31 = vpop.f32.mrf.mxu0  ;;  %4566 = vmatprep.subr.bf16.mxu1 %v4693_v13 }
 0x256   : > { %v1424_v36 = vadd.f32 %v4306_v53, %v5667_v63  ;;  %4512 = vmatprep.mubr.msk.bf16.mxu1 %vm1101_vm1, %v5315_v47  ;;  %v5875_v24 = vadd.f32 %v5726_v28, %v1403_v51  ;;  %4567 = vmatpush3.bf16.msra.mxu1 %v4693_v13 }
 0x257   : > { %v1415_v46 = vpop.f32.mrf.mxu1  ;;  %v5880_v4 = vpop.f32.mrf.mxu0 }
 0x258   : > { %v1416_v1 = vadd.f32 %v1415_v46, %v5674_v6  ;;  %v5884_v56 = vadd.f32 %v5730_v12, %v1424_v36 }
 0x259   : > { %v4307_v63 = vpop.f32.mrf.mxu1  ;;  %v5886_v25 = vpop.f32.mrf.mxu0 }
 0x25a   : > { %v1427_v47 = vadd.f32 %v4307_v63, %v5678_v35  ;;  %v5890_v28 = vadd.f32 %v5740_v26, %v1416_v1 }
 0x25b   : > { %v1418_v17 = vpop.f32.mrf.mxu1  ;;  %v5892_v29 = vpop.f32.mrf.mxu0 }
 0x25c   : > { %v1419_v8 = vadd.f32 %v1418_v17, %v5680_v42  ;;  %v5896_v6 = vadd.f32 %v5746_v10, %v1427_v47 }
 0x25d   : > { %v4310_v12 = vpop.f32.mrf.mxu1  ;;  %4513 = vmatmul.mubr.msk.bf16.gmra.mxu1 %vm1101_vm1, %v5335_v19  ;;  %v5900_v20 = vpop.f32.mrf.mxu0 }
 0x25e   : > { %v1440_v40 = vadd.f32 %v4310_v12, %v5682_v34  ;;  %4516 = vmatprep.mubr.msk.bf16.mxu1 %vm1101_vm1, %v5358_v62  ;;  %v5906_v35 = vadd.f32 %v5750_v45, %v1419_v8 }
 0x25f   : > { %v1431_v26 = vpop.f32.mrf.mxu1  ;;  %v5908_v32 = vpop.f32.mrf.mxu0 }
 0x260   : > { %v1432_v42 = vadd.f32 %v1431_v26, %v5688_v61  ;;  %v5912_v10 = vadd.f32 %v5754_v41, %v1440_v40 }
 0x261   : > { %v4311_v51 = vpop.f32.mrf.mxu1  ;;  %v5914_v19 = vpop.f32.mrf.mxu0 }
 0x262   : > { %v1443_v53 = vadd.f32 %v4311_v51, %v5696_v14  ;;  %v5918_v34 = vadd.f32 %v5764_v11, %v1432_v42  ;;  %v6757_v42 = vld [vmem:[#allocation25_spill] sm:$0xff] }
 0x263   : > { %v1434_v62 = vpop.f32.mrf.mxu1  ;;  %v5920_v36 = vpop.f32.mrf.mxu0 }
 0x264   : > { %v1435_v45 = vadd.f32 %v1434_v62, %v5702_v0  ;;  %v5924_v13 = vadd.f32 %v5770_v59, %v1443_v53  ;;  %v6758_v62 = vld [vmem:[#allocation14_spill] sm:$0xff] }
 0x265   : > { %v4314_v61 = vpop.f32.mrf.mxu1  ;;  %4517 = vmatmul.mubr.msk.bf16.gmra.mxu1 %vm1101_vm1, %v5377_v7  ;;  %v5928_v41 = vpop.f32.mrf.mxu0 }
 0x266   : > { %v1456_v46 = vadd.f32 %v4314_v61, %v5710_v44  ;;  %4520 = vmatprep.mubr.msk.bf16.mxu1 %vm1101_vm1, %v5393_v54  ;;  %v5934_v14 = vadd.f32 %v5774_v18, %v1435_v45 }
 0x267   : > { %v1447_v11 = vpop.f32.mrf.mxu1  ;;  %v5936_v1 = vpop.f32.mrf.mxu0 }
 0x268   : > { %v1448_v59 = vadd.f32 %v1447_v11, %v5720_v39  ;;  %v5940_v0 = vadd.f32 %v5778_v49, %v1456_v46  ;;  %v6760_v11 = vld [vmem:[#allocation15_spill] sm:$0xff] }
 0x269   : > { %v4315_v63 = vpop.f32.mrf.mxu1  ;;  %v5942_v7 = vpop.f32.mrf.mxu0 }
 0x26a   : > { %v1459_v47 = vadd.f32 %v4315_v63, %v5724_v15  ;;  %v5946_v44 = vadd.f32 %v5788_v2, %v1448_v59  ;;  %v6755_v15 = vld [vmem:[#allocation23_spill] sm:$0xff] }
 0x26b   : > { %v1450_v54 = vpop.f32.mrf.mxu1  ;;  %v5948_v17 = vpop.f32.mrf.mxu0 }
 0x26c   : > { %v1451_v18 = vadd.f32 %v1450_v54, %v5728_v60  ;;  %v5952_v8 = vadd.f32 %v5794_v5, %v1459_v47  ;;  %v6756_v60 = vld [vmem:[#allocation13_spill] sm:$0xff]  ;;  %v6761_v54 = vld [vmem:[#allocation11_spill] sm:$0xff] }
 0x26d   : > { %v4318_v39 = vpop.f32.mrf.mxu1  ;;  %4521 = vmatmul.mubr.msk.bf16.gmra.mxu1 %vm1101_vm1, %v5426_v21  ;;  %v5956_v49 = vpop.f32.mrf.mxu0 }
 0x26e   : > { %v1472_v12 = vadd.f32 %v4318_v39, %v5734_v16  ;;  %4524 = vmatprep.mubr.msk.bf16.mxu1 %vm1101_vm1, %v5438_v33  ;;  %v5962_v2 = vadd.f32 %v6755_v15, %v1451_v18  ;;  %v6759_v16 = vld [vmem:[#allocation26_spill] sm:$0xff]  ;;  %v6762_v39 = vld [vmem:[#allocation16_spill] sm:$0xff] }
 0x26f   : > { %v1463_v40 = vpop.f32.mrf.mxu1  ;;  %v5964_v26 = vpop.f32.mrf.mxu0  ;;  %v6763_v15 = vld [vmem:[#allocation12_spill] sm:$0xff] }
 0x270   : > { %v1464_v5 = vadd.f32 %v1463_v40, %v6756_v60  ;;  %v5968_v51 = vadd.f32 %v6757_v42, %v1472_v12  ;;  %v6764_v42 = vld [vmem:[#allocation17_spill] sm:$0xff] }
 0x271   : > { %v4319_v53 = vpop.f32.mrf.mxu1  ;;  %v5970_v21 = vpop.f32.mrf.mxu0 }
 0x272   : > { %v1475_v45 = vadd.f32 %v4319_v53, %v6758_v62  ;;  %v5974_v61 = vadd.f32 %v6759_v16, %v1464_v5  ;;  %v6765_v16 = vld [vmem:[#allocation18_spill] sm:$0xff] }
 0x273   : > { %v1466_v33 = vpop.f32.mrf.mxu1  ;;  %v5976_v46 = vpop.f32.mrf.mxu0 }
 0x274   : > { %v1467_v59 = vadd.f32 %v1466_v33, %v6760_v11  ;;  %v5980_v63 = vadd.f32 %v5815_v9, %v1475_v45 }
 0x275   : > { %v4322_v47 = vpop.f32.mrf.mxu1  ;;  %4525 = vmatmul.mubr.msk.bf16.gmra.mxu1 %vm1101_vm1, %v6761_v54  ;;  %v5984_v18 = vpop.f32.mrf.mxu0 }
 0x276   : > { %v1488_v12 = vadd.f32 %v4322_v47, %v6762_v39  ;;  %4528 = vmatprep.mubr.msk.bf16.mxu1 %vm1101_vm1, %v6763_v15  ;;  %v5990_v40 = vadd.f32 %v5821_v30, %v1467_v59  ;;  %v6766_v30 = vld [vmem:[#allocation19_spill] sm:$0xff] }
 0x277   : > { %v1479_v60 = vpop.f32.mrf.mxu1  ;;  %v5992_v5 = vpop.f32.mrf.mxu0 }
 0x278   : > { %v1480_v9 = vadd.f32 %v1479_v60, %v6764_v42  ;;  %v5996_v53 = vadd.f32 %v5827_v43, %v1488_v12  ;;  %v6768_v12 = vld [vmem:[#allocation20_spill] sm:$0xff] }
 0x279   : > { %v4323_v62 = vpop.f32.mrf.mxu1  ;;  %v5998_v45 = vpop.f32.mrf.mxu0 }
 0x27a   : > { %v1491_v33 = vadd.f32 %v4323_v62, %v6765_v16  ;;  %v6002_v11 = vadd.f32 %v5839_v58, %v1480_v9  ;;  %v6770_v62 = vld [vmem:[#allocation21_spill] sm:$0xff] }
 0x27b   : > { %v1482_v47 = vpop.f32.mrf.mxu1  ;;  %v6004_v54 = vpop.f32.mrf.mxu0 }
 0x27c   : > { %v1483_v59 = vadd.f32 %v1482_v47, %v6766_v30  ;;  %v6008_v39 = vadd.f32 %v5847_v52, %v1491_v33  ;;  %v6771_v30 = vld [vmem:[#allocation22_spill] sm:$0xff] }
 0x27d   : > { %v4326_v15 = vpop.f32.mrf.mxu1  ;;  %4529 = vmatmul.mubr.msk.bf16.gmra.mxu1 %vm1101_vm1, %v5081_v22  ;;  %v6012_v43 = vpop.f32.mrf.mxu0 }
 0x27e   : > { %6767 = vst [vmem:[#allocation23_spill] sm:$0xff] %v6008_v39  ;;  %v1504_v60 = vadd.f32 %v4326_v15, %v6768_v12  ;;  %v6016_v42 = vadd.f32 %v5853_v3, %v1483_v59  ;;  %v6772_v3 = vld [vmem:[#allocation24_spill] sm:$0xff] }
 0x27f   : > { %v1495_v58 = vpop.f32.mrf.mxu1  ;;  %v6018_v9 = vpop.f32.mrf.mxu0 }
 0x280   : > { %6769 = vst [vmem:[#allocation13_spill] sm:$0xff] %v6016_v42  ;;  %v1496_v16 = vadd.f32 %v1495_v58, %v6770_v62  ;;  %v6022_v47 = vadd.f32 %v5859_v55, %v1504_v60 }
 0x281   : > { %v4327_v52 = vpop.f32.mrf.mxu1  ;;  %v6024_v33 = vpop.f32.mrf.mxu0 }
 0x282   : > { %v1507_v22 = vadd.f32 %v4327_v52, %v6771_v30  ;;  %v6028_v39 = vadd.f32 %v5869_v31, %v1496_v16 }
 0x283   : > { %v1498_v15 = vpop.f32.mrf.mxu1  ;;  %v6030_v12 = vpop.f32.mrf.mxu0 }
 0x284   : > { %v1499_v59 = vadd.f32 %v1498_v15, %v6772_v3  ;;  %v6034_v42 = vadd.f32 %v5880_v4, %v1507_v22 }
 0x285   : > { %v4366_v58 = vpop.f32.mrf.mxu1  ;;  %v6036_v62 = vpop.f32.mrf.mxu0 }
 0x286   : > { %v2014_v55 = vadd.f32 %v4366_v58, %v5819_v37  ;;  %v6040_v60 = vadd.f32 %v5886_v25, %v1499_v59 }
 0x287   : > { %v1885_v52 = vpop.f32.mrf.mxu1  ;;  %v6042_v30 = vpop.f32.mrf.mxu0 }
 0x288   : > { %v2012_v31 = vadd.f32 %v1885_v52, %v5825_v57  ;;  %v6046_v16 = vadd.f32 %v5892_v29, %v2014_v55 }
 0x289   : > { %v4367_v15 = vpop.f32.mrf.mxu1  ;;  %v6048_v3 = vpop.f32.mrf.mxu0 }
 0x28a   : > { %v2015_v4 = vadd.f32 %v4367_v15, %v5835_v50  ;;  %v6052_v22 = vadd.f32 %v5900_v20, %v2012_v31 }
 0x28b   : > { %v1888_v37 = vpop.f32.mrf.mxu1  ;;  %v6054_v58 = vpop.f32.mrf.mxu0 }
 0x28c   : > { %v2013_v25 = vadd.f32 %v1888_v37, %v5845_v23  ;;  %v6058_v59 = vadd.f32 %v5908_v32, %v2015_v4 }
 0x28d   : > { %v4370_v57 = vpop.f32.mrf.mxu1  ;;  %v6060_v52 = vpop.f32.mrf.mxu0 }
 0x28e   : > { %v2018_v29 = vadd.f32 %v4370_v57, %v5851_v48  ;;  %v6064_v55 = vadd.f32 %v5914_v19, %v2013_v25 }
 0x28f   : > { %v1901_v50 = vpop.f32.mrf.mxu1  ;;  %v6066_v15 = vpop.f32.mrf.mxu0 }
 0x290   : > { %v2016_v20 = vadd.f32 %v1901_v50, %v5857_v38  ;;  %v6070_v31 = vadd.f32 %v5920_v36, %v2018_v29 }
 0x291   : > { %v4371_v23 = vpop.f32.mrf.mxu1  ;;  %v6072_v37 = vpop.f32.mrf.mxu0 }
 0x292   : > { %v2019_v32 = vadd.f32 %v4371_v23, %v5865_v27  ;;  %v6076_v4 = vadd.f32 %v5928_v41, %v2016_v20 }
 0x293   : > { %v1904_v48 = vpop.f32.mrf.mxu1  ;;  %v6078_v57 = vpop.f32.mrf.mxu0 }
 0x294   : > { %v2017_v19 = vadd.f32 %v1904_v48, %v5875_v24  ;;  %v6082_v25 = vadd.f32 %v5936_v1, %v2019_v32 }
 0x295   : > { %v4374_v38 = vpop.f32.mrf.mxu1  ;;  %v6084_v50 = vpop.f32.mrf.mxu0 }
 0x296   : > { %v2022_v36 = vadd.f32 %v4374_v38, %v5884_v56  ;;  %v6088_v29 = vadd.f32 %v5942_v7, %v2017_v19 }
 0x297   : > { %v1917_v27 = vpop.f32.mrf.mxu1  ;;  %v6090_v23 = vpop.f32.mrf.mxu0 }
 0x298   : > { %v2020_v41 = vadd.f32 %v1917_v27, %v5890_v28  ;;  %v6094_v20 = vadd.f32 %v5948_v17, %v2022_v36 }
 0x299   : > { %v4375_v24 = vpop.f32.mrf.mxu1  ;;  %v6096_v48 = vpop.f32.mrf.mxu0 }
 0x29a   : > { %v2023_v1 = vadd.f32 %v4375_v24, %v5896_v6  ;;  %v6100_v32 = vadd.f32 %v5956_v49, %v2020_v41 }
 0x29b   : > { %v1920_v56 = vpop.f32.mrf.mxu1  ;;  %v6102_v38 = vpop.f32.mrf.mxu0 }
 0x29c   : > { %v2021_v7 = vadd.f32 %v1920_v56, %v5906_v35  ;;  %v6106_v19 = vadd.f32 %v5964_v26, %v2023_v1 }
 0x29d   : > { %v4378_v28 = vpop.f32.mrf.mxu1  ;;  %v6108_v27 = vpop.f32.mrf.mxu0 }
 0x29e   : > { %v2026_v17 = vadd.f32 %v4378_v28, %v5912_v10  ;;  %v6112_v36 = vadd.f32 %v5970_v21, %v2021_v7 }
 0x29f   : > { %v1933_v6 = vpop.f32.mrf.mxu1  ;;  %v6114_v24 = vpop.f32.mrf.mxu0 }
 0x2a0   : > { %v2024_v49 = vadd.f32 %v1933_v6, %v5918_v34  ;;  %v6118_v41 = vadd.f32 %v5976_v46, %v2026_v17 }
 0x2a1   : > { %v4379_v35 = vpop.f32.mrf.mxu1  ;;  %v6120_v56 = vpop.f32.mrf.mxu0 }
 0x2a2   : > { %v2027_v26 = vadd.f32 %v4379_v35, %v5924_v13  ;;  %v6124_v1 = vadd.f32 %v5984_v18, %v2024_v49 }
 0x2a3   : > { %v1936_v10 = vpop.f32.mrf.mxu1  ;;  %v6126_v28 = vpop.f32.mrf.mxu0 }
 0x2a4   : > { %v2025_v21 = vadd.f32 %v1936_v10, %v5934_v14  ;;  %v6130_v7 = vadd.f32 %v5992_v5, %v2027_v26 }
 0x2a5   : > { %v4382_v34 = vpop.f32.mrf.mxu1  ;;  %v6132_v6 = vpop.f32.mrf.mxu0 }
 0x2a6   : > { %v2030_v46 = vadd.f32 %v4382_v34, %v5940_v0  ;;  %v6136_v17 = vadd.f32 %v5998_v45, %v2025_v21 }
 0x2a7   : > { %v1949_v13 = vpop.f32.mrf.mxu1  ;;  %v6138_v35 = vpop.f32.mrf.mxu0 }
 0x2a8   : > { %6773 = vst [vmem:[#allocation25_spill] sm:$0xff] %v6136_v17  ;;  %v2028_v18 = vadd.f32 %v1949_v13, %v5946_v44  ;;  %v6142_v49 = vadd.f32 %v6004_v54, %v2030_v46 }
 0x2a9   : > { %v4383_v14 = vpop.f32.mrf.mxu1  ;;  %v6144_v10 = vpop.f32.mrf.mxu0 }
 0x2aa   : > { %v2031_v5 = vadd.f32 %v4383_v14, %v5952_v8  ;;  %v6148_v26 = vadd.f32 %v6012_v43, %v2028_v18 }
 0x2ab   : > { %v1952_v0 = vpop.f32.mrf.mxu1  ;;  %v6150_v34 = vpop.f32.mrf.mxu0 }
 0x2ac   : > { %v2029_v45 = vadd.f32 %v1952_v0, %v5962_v2  ;;  %v6154_v21 = vadd.f32 %v6018_v9, %v2031_v5 }
 0x2ad   : > { %v4386_v44 = vpop.f32.mrf.mxu1  ;;  %v6156_v13 = vpop.f32.mrf.mxu0 }
 0x2ae   : > { %v2034_v54 = vadd.f32 %v4386_v44, %v5968_v51  ;;  %v6160_v46 = vadd.f32 %v6024_v33, %v2029_v45 }
 0x2af   : > { %v1965_v8 = vpop.f32.mrf.mxu1  ;;  %v6162_v14 = vpop.f32.mrf.mxu0 }
 0x2b0   : > { %6774 = vst [vmem:[#allocation14_spill] sm:$0xff] %v6160_v46  ;;  %v2032_v43 = vadd.f32 %v1965_v8, %v5974_v61  ;;  %v6166_v18 = vadd.f32 %v6030_v12, %v2034_v54 }
 0x2b1   : > { %v4387_v2 = vpop.f32.mrf.mxu1  ;;  %v6168_v0 = vpop.f32.mrf.mxu0 }
 0x2b2   : > { %6775 = vst [vmem:[#allocation26_spill] sm:$0xff] %v6168_v0  ;;  %v2035_v9 = vadd.f32 %v4387_v2, %v5980_v63  ;;  %v6172_v5 = vadd.f32 %v6036_v62, %v2032_v43 }
 0x2b3   : > { %v1968_v51 = vpop.f32.mrf.mxu1  ;;  %v6174_v44 = vpop.f32.mrf.mxu0 }
 0x2b4   : > { %v2033_v33 = vadd.f32 %v1968_v51, %v5990_v40  ;;  %v6178_v45 = vadd.f32 %v6042_v30, %v2035_v9  ;;  %v6778_v30 = vld [vmem:[#allocation23_spill] sm:$0xff] }
 0x2b5   : > { %v4390_v61 = vpop.f32.mrf.mxu1  ;;  %v6180_v8 = vpop.f32.mrf.mxu0 }
 0x2b6   : > { %v2038_v12 = vadd.f32 %v4390_v61, %v5996_v53  ;;  %v6184_v54 = vadd.f32 %v6048_v3, %v2033_v33  ;;  %v6779_v3 = vld [vmem:[#allocation13_spill] sm:$0xff] }
 0x2b7   : > { %v1981_v63 = vpop.f32.mrf.mxu1  ;;  %v6186_v2 = vpop.f32.mrf.mxu0 }
 0x2b8   : > { %6776 = vst [vmem:[#allocation15_spill] sm:$0xff] %v6184_v54  ;;  %v2036_v62 = vadd.f32 %v1981_v63, %v6002_v11  ;;  %v6190_v43 = vadd.f32 %v6054_v58, %v2038_v12 }
 0x2b9   : > { %v4391_v40 = vpop.f32.mrf.mxu1  ;;  %v6192_v51 = vpop.f32.mrf.mxu0 }
 0x2ba   : > { %6777 = vst [vmem:[#allocation11_spill] sm:$0xff] %v6192_v51  ;;  %v2039_v9 = vadd.f32 %v4391_v40, %v6778_v30  ;;  %v6196_v46 = vadd.f32 %v6060_v52, %v2036_v62 }
 0x2bb   : > { %v1984_v53 = vpop.f32.mrf.mxu1  ;;  %v6198_v61 = vpop.f32.mrf.mxu0 }
 0x2bc   : > { %v2037_v33 = vadd.f32 %v1984_v53, %v6779_v3  ;;  %v6202_v54 = vadd.f32 %v6066_v15, %v2039_v9 }
 0x2bd   : > { %v4394_v11 = vpop.f32.mrf.mxu1  ;;  %v6204_v63 = vpop.f32.mrf.mxu0 }
 0x2be   : > { %v2042_v58 = vadd.f32 %v4394_v11, %v6022_v47  ;;  %v6208_v12 = vadd.f32 %v6072_v37, %v2037_v33 }
 0x2bf   : > { %v1997_v40 = vpop.f32.mrf.mxu1  ;;  %v6210_v30 = vpop.f32.mrf.mxu0 }
 0x2c0   : > { %6780 = vst [vmem:[#allocation16_spill] sm:$0xff] %v6208_v12  ;;  %v2040_v52 = vadd.f32 %v1997_v40, %v6028_v39  ;;  %v6214_v62 = vadd.f32 %v6078_v57, %v2042_v58 }
 0x2c1   : > { %v4395_v53 = vpop.f32.mrf.mxu1  ;;  %v6216_v3 = vpop.f32.mrf.mxu0 }
 0x2c2   : > { %6781 = vst [vmem:[#allocation12_spill] sm:$0xff] %v6216_v3  ;;  %v2043_v15 = vadd.f32 %v4395_v53, %v6034_v42  ;;  %v6220_v9 = vadd.f32 %v6084_v50, %v2040_v52 }
 0x2c3   : > { %v2000_v47 = vpop.f32.mrf.mxu1  ;;  %v6222_v11 = vpop.f32.mrf.mxu0 }
 0x2c4   : > { %v2041_v37 = vadd.f32 %v2000_v47, %v6040_v60  ;;  %v6226_v33 = vadd.f32 %v6090_v23, %v2043_v15 }
 0x2c5   : > { %v4434_v39 = vpop.f32.mrf.mxu1  ;;  %v6228_v40 = vpop.f32.mrf.mxu0 }
 0x2c6   : > { %v2440_v57 = vadd.f32 %v4434_v39, %v6046_v16  ;;  %v6232_v58 = vadd.f32 %v6096_v48, %v2041_v37 }
 0x2c7   : > { %v2311_v42 = vpop.f32.mrf.mxu1  ;;  %v6234_v53 = vpop.f32.mrf.mxu0 }
 0x2c8   : > { %6782 = vst [vmem:[#allocation17_spill] sm:$0xff] %v6232_v58  ;;  %v2438_v50 = vadd.f32 %v2311_v42, %v6052_v22  ;;  %v6238_v52 = vadd.f32 %v6102_v38, %v2440_v57 }
 0x2c9   : > { %v6240_v60 = vpop.f32.mrf.mxu1  ;;  %v6242_v23 = vpop.f32.mrf.mxu0 }
 0x2ca   : > { %6783 = vst [vmem:[#allocation18_spill] sm:$0xff] %v6242_v23  ;;  %v6245_v15 = vadd.f32 %v6108_v27, %v2438_v50 }
 0x2cb   : > { %v6247_v47 = vpop.f32.mrf.mxu1  ;;  %v6249_v16 = vpop.f32.mrf.mxu0 }
 0x2cd   : > { %v4438_v48 = vpop.f32.mrf.mxu1  ;;  %v6251_v37 = vpop.f32.mrf.mxu0 }
 0x2ce   : > { %v2444_v39 = vadd.f32 %v4438_v48, %v6070_v31 }
 0x2cf   : > { %v2327_v22 = vpop.f32.mrf.mxu1  ;;  %v6254_v42 = vpop.f32.mrf.mxu0 }
 0x2d0   : > { %v2442_v38 = vadd.f32 %v2327_v22, %v6076_v4  ;;  %v6258_v57 = vadd.f32 %v6126_v28, %v2444_v39 }
 0x2d1   : > { %v6260_v58 = vpop.f32.mrf.mxu1  ;;  %v6262_v27 = vpop.f32.mrf.mxu0 }
 0x2d2   : > { %6784 = vst [vmem:[#allocation19_spill] sm:$0xff] %v6262_v27  ;;  %v6265_v50 = vadd.f32 %v6132_v6, %v2442_v38 }
 0x2d3   : > { %v6267_v12 = vpop.f32.mrf.mxu1  ;;  %v6269_v23 = vpop.f32.mrf.mxu0 }
 0x2d5   : > { %v4442_v31 = vpop.f32.mrf.mxu1  ;;  %v6271_v48 = vpop.f32.mrf.mxu0 }
 0x2d6   : > { %v2448_v3 = vadd.f32 %v4442_v31, %v6094_v20 }
 0x2d7   : > { %v2343_v4 = vpop.f32.mrf.mxu1  ;;  %v6274_v22 = vpop.f32.mrf.mxu0 }
 0x2d8   : > { %v2446_v28 = vadd.f32 %v2343_v4, %v6100_v32  ;;  %v6278_v39 = vadd.f32 %v6150_v34, %v2448_v3 }
 0x2d9   : > { %v4443_v27 = vpop.f32.mrf.mxu1  ;;  %v6280_v6 = vpop.f32.mrf.mxu0 }
 0x2da   : > { %6785 = vst [vmem:[#allocation20_spill] sm:$0xff] %v6280_v6  ;;  %v2449_v38 = vadd.f32 %v4443_v27, %v6106_v19  ;;  %v6284_v51 = vadd.f32 %v6156_v13, %v2446_v28 }
 0x2db   : > { %v6286_v17 = vpop.f32.mrf.mxu1  ;;  %v6288_v0 = vpop.f32.mrf.mxu0 }
 0x2dc   : > { %v6291_v20 = vadd.f32 %v6162_v14, %v2449_v38 }
 0x2dd   : > { %v4446_v31 = vpop.f32.mrf.mxu1  ;;  %v6293_v32 = vpop.f32.mrf.mxu0 }
 0x2de   : > { %6786 = vst [vmem:[#allocation21_spill] sm:$0xff] %v6291_v20  ;;  %v2452_v34 = vadd.f32 %v4446_v31, %v6118_v41 }
 0x2df   : > { %v2359_v3 = vpop.f32.mrf.mxu1  ;;  %v6296_v4 = vpop.f32.mrf.mxu0 }
 0x2e0   : > { %v2450_v19 = vadd.f32 %v2359_v3, %v6124_v1  ;;  %v6300_v13 = vadd.f32 %v6174_v44, %v2452_v34 }
 0x2e1   : > { %v4447_v27 = vpop.f32.mrf.mxu1  ;;  %v6302_v28 = vpop.f32.mrf.mxu0 }
 0x2e2   : > { %v2453_v6 = vadd.f32 %v4447_v27, %v6130_v7  ;;  %v6306_v14 = vadd.f32 %v6180_v8, %v2450_v19 }
 0x2e3   : > { %v6308_v38 = vpop.f32.mrf.mxu1  ;;  %v6310_v20 = vpop.f32.mrf.mxu0 }
 0x2e4   : > { %6787 = vst [vmem:[#allocation22_spill] sm:$0xff] %v6306_v14  ;;  %v6313_v41 = vadd.f32 %v6186_v2, %v2453_v6 }
 0x2e5   : > { %v4450_v31 = vpop.f32.mrf.mxu1  ;;  %v6315_v1 = vpop.f32.mrf.mxu0 }
 0x2e6   : > { %6788 = vst [vmem:[#allocation24_spill] sm:$0xff] %v6313_v41  ;;  %v2456_v44 = vadd.f32 %v4450_v31, %v6142_v49 }
 0x2e7   : > { %v2375_v34 = vpop.f32.mrf.mxu1  ;;  %v6318_v3 = vpop.f32.mrf.mxu0 }
 0x2e8   : > { %v2454_v7 = vadd.f32 %v2375_v34, %v6148_v26  ;;  %v6322_v8 = vadd.f32 %v6198_v61, %v2456_v44 }
 0x2e9   : > { %v4451_v19 = vpop.f32.mrf.mxu1  ;;  %v6324_v27 = vpop.f32.mrf.mxu0 }
 0x2ea   : > { %v2457_v14 = vadd.f32 %v4451_v19, %v6154_v21  ;;  %v6328_v2 = vadd.f32 %v6204_v63, %v2454_v7 }
 0x2eb   : > { %v6330_v6 = vpop.f32.mrf.mxu1  ;;  %v6332_v41 = vpop.f32.mrf.mxu0 }
 0x2ec   : > { %6789 = vst [vmem:[#allocation23_spill] sm:$0xff] %v6328_v2  ;;  %v6335_v49 = vadd.f32 %v6210_v30, %v2457_v14 }
 0x2ed   : > { %v4454_v31 = vpop.f32.mrf.mxu1  ;;  %v6338_v44 = vpop.f32.mrf.mxu0 }
 0x2ee   : > { %v2460_v26 = vadd.f32 %v4454_v31, %v6166_v18 }
 0x2ef   : > { %v2391_v61 = vpop.f32.mrf.mxu1  ;;  %v6348_v2 = vpop.f32.mrf.mxu0 }
 0x2f0   : > { %v2458_v34 = vadd.f32 %v2391_v61, %v6172_v5  ;;  %v6342_v21 = vadd.f32 %v6222_v11, %v2460_v26 }
 0x2f1   : > { %v4455_v63 = vpop.f32.mrf.mxu1  ;;  %v6356_v5 = vpop.f32.mrf.mxu0 }
 0x2f2   : > { %v2461_v7 = vadd.f32 %v4455_v63, %v6178_v45  ;;  %v6346_v19 = vadd.f32 %v6228_v40, %v2458_v34 }
 0x2f3   : > { %v6350_v30 = vpop.f32.mrf.mxu1  ;;  %v6366_v63 = vpop.f32.mrf.mxu0 }
 0x2f4   : > { %v6353_v18 = vadd.f32 %v6234_v53, %v2461_v7 }
 0x2f5   : > { %v4458_v14 = vpop.f32.mrf.mxu1 }
 0x2f6   : > { %v2464_v31 = vadd.f32 %v4458_v14, %v6190_v43 }
 0x2f7   : > { %v2407_v11 = vpop.f32.mrf.mxu1 }
 0x2f8   : > { %v2462_v26 = vadd.f32 %v2407_v11, %v6196_v46  ;;  %v6360_v45 = vadd.f32 %v6249_v16, %v2464_v31  ;;  %v6374_v46 = vpop.f32.mrf.mxu0 }
 0x2f9   : > { %v4459_v40 = vpop.f32.mrf.mxu1 }
 0x2fa   : > { %v2465_v61 = vadd.f32 %v4459_v40, %v6202_v54  ;;  %v6364_v34 = vadd.f32 %v6251_v37, %v2462_v26  ;;  %v6384_v40 = vpop.f32.mrf.mxu0 }
 0x2fb   : > { %v6368_v53 = vpop.f32.mrf.mxu1 }
 0x2fc   : > { %v6371_v43 = vadd.f32 %v6254_v42, %v2465_v61 }
 0x2fd   : > { %v4462_v7 = vpop.f32.mrf.mxu1 }
 0x2fe   : > { %v2468_v14 = vadd.f32 %v4462_v7, %v6214_v62  ;;  %v2441_v62 = vadd.f32 %v6240_v60, %v6058_v59  ;;  %v6404_v59 = vld [vmem:[%s6708_s5] ss:$0 sm:$0xff] }
 0x2ff   : > { %v2423_v16 = vpop.f32.mrf.mxu1 }
 0x300   : > { %v2466_v31 = vadd.f32 %v2423_v16, %v6220_v9  ;;  %v6378_v54 = vadd.f32 %v6269_v23, %v2468_v14  ;;  %v2439_v23 = vadd.f32 %v6247_v47, %v6064_v55 }
 0x301   : > { %v4463_v37 = vpop.f32.mrf.mxu1 }
 0x302   : > { %v2469_v11 = vadd.f32 %v4463_v37, %v6226_v33  ;;  %v6382_v26 = vadd.f32 %v6271_v48, %v2466_v31  ;;  %v6396_v33 = vpop.f32.mrf.mxu0  ;;  %v2643_v31 = vadd.f32 %v6114_v24, %v2441_v62  ;;  %v2445_v24 = vadd.f32 %v6260_v58, %v6082_v25 }
 0x303   : > { %v6386_v42 = vpop.f32.mrf.mxu1  ;;  %v2443_v62 = vadd.f32 %v6267_v12, %v6088_v29 }
 0x304   : > { %v6391_v61 = vadd.f32 %v6274_v22, %v2469_v11  ;;  %v6408_v47 = vpop.f32.mrf.mxu0  ;;  %v2647_v12 = vadd.f32 %v6138_v35, %v2445_v24 }
 0x305   : > { %v4502_v9 = vpop.f32.mrf.mxu1 }
 0x306   : > { %v2844_v7 = vadd.f32 %v4502_v9, %v6238_v52  ;;  %v2641_v52 = vadd.f32 %v6120_v56, %v2439_v23 }
 0x307   : > { %v2715_v48 = vpop.f32.mrf.mxu1 }
 0x308   : > { %v3046_v14 = vadd.f32 %v6288_v0, %v2844_v7  ;;  %v2842_v16 = vadd.f32 %v2715_v48, %v6245_v15  ;;  %v6420_v48 = vpop.f32.mrf.mxu0 }
 0x309   : > { %v4503_v60 = vpop.f32.mrf.mxu1 }
 0x30a   : > { %v3044_v22 = vadd.f32 %v6293_v32, %v2842_v16  ;;  %v2845_v55 = vadd.f32 %v4503_v60, %v2643_v31  ;;  %v3085_v0 = vadd.f32 %v6404_v59, %v3046_v14  ;;  %v2645_v60 = vadd.f32 %v6144_v10, %v2443_v62 }
 0x30b   : > { %v2718_v37 = vpop.f32.mrf.mxu1 }
 0x30c   : > { %v3047_v15 = vadd.f32 %v6296_v4, %v2845_v55  ;;  %v2843_v11 = vadd.f32 %v2718_v37, %v2641_v52  ;;  %v3083_v32 = vadd.f32 %v6404_v59, %v3044_v22  ;;  %v3117_v4 = vmax.f32 %v3085_v0, 0.0  ;;  %v6428_v52 = vpop.f32.mrf.mxu0 }
 0x30d   : > { %v4506_v9 = vpop.f32.mrf.mxu1 }
 0x30e   : > { %v3086_v7 = vadd.f32 %v6404_v59, %v3047_v15  ;;  %v3045_v56 = vadd.f32 %v6302_v28, %v2843_v11  ;;  %v2848_v23 = vadd.f32 %v4506_v9, %v6258_v57  ;;  %v3115_v22 = vmax.f32 %v3083_v32, 0.0  ;;  %v6438_v62 = vpop.f32.mrf.mxu0 }
 0x30f   : > { %v2731_v14 = vpop.f32.mrf.mxu1 }
 0x310   : > { %v3118_v16 = vmax.f32 %v3086_v7, 0.0  ;;  %v3084_v31 = vadd.f32 %v6404_v59, %v3045_v56  ;;  %v2846_v25 = vadd.f32 %v2731_v14, %v6265_v50  ;;  %v3050_v29 = vadd.f32 %v6310_v20, %v2848_v23 }
 0x311   : > { %v4507_v58 = vpop.f32.mrf.mxu1 }
 0x312   : > { %v3148_v28 = vpack.c.bf16 %v3118_v16, %v3117_v4  ;;  %v3116_v55 = vmax.f32 %v3084_v31, 0.0  ;;  %v3048_v57 = vadd.f32 %v6315_v1, %v2846_v25  ;;  %v2849_v37 = vadd.f32 %v4507_v58, %v2647_v12  ;;  %v6790_v31 = vld [vmem:[#allocation21_spill] sm:$0xff]  ;;  %v6791_v12 = vld [vmem:[#allocation26_spill] sm:$0xff] }
 0x313   : > { %v2734_v0 = vpop.f32.mrf.mxu1  ;;  %v3089_v50 = vadd.f32 %v6404_v59, %v3050_v29  ;;  %v2447_v1 = vadd.f32 %v6286_v17, %v6112_v36  ;;  %v6446_v17 = vpop.f32.mrf.mxu0 }
 0x314   : > { %v3147_v15 = vpack.c.bf16 %v3116_v55, %v3115_v22  ;;  %v2847_v11 = vadd.f32 %v2734_v0, %v2645_v60  ;;  %v3051_v20 = vadd.f32 %v6318_v3, %v2849_v37  ;;  %v3087_v35 = vadd.f32 %v6404_v59, %v3048_v57  ;;  %v6792_v57 = vld [vmem:[#allocation25_spill] sm:$0xff] }
 0x315   : > { %v4510_v9 = vpop.f32.mrf.mxu1  ;;  %v3121_v23 = vmax.f32 %v3089_v50, 0.0  ;;  %v2649_v58 = vadd.f32 %v6791_v12, %v2447_v1  ;;  %v2451_v37 = vadd.f32 %v6308_v38, %v6792_v57  ;;  %v6793_v38 = vld [vmem:[#allocation22_spill] sm:$0xff] }
 0x316   : > { %v3049_v10 = vadd.f32 %v6324_v27, %v2847_v11  ;;  %v2852_v24 = vadd.f32 %v4510_v9, %v6278_v39  ;;  %4568 = vmatprep.mubr.msk.bf16.mxu1 %vm1101_vm1, %v3147_v15  ;;  %v3090_v32 = vadd.f32 %v6404_v59, %v3051_v20  ;;  %v3119_v4 = vmax.f32 %v3087_v35, 0.0 }
 0x317   : > { %v2747_v7 = vpop.f32.mrf.mxu1  ;;  %4569 = vmatmul.mubr.msk.bf16.vlgmr.msra.gmra.mxu1 %vm1101_vm1, %v3148_v28 }
 0x318   : > { %v3088_v3 = vadd.f32 %v6404_v59, %v3049_v10  ;;  %v3054_v56 = vadd.f32 %v6332_v41, %v2852_v24  ;;  %v2850_v27 = vadd.f32 %v2747_v7, %v6284_v51  ;;  %v3122_v39 = vmax.f32 %v3090_v32, 0.0  ;;  %v6794_v7 = vld [vmem:[#allocation24_spill] sm:$0xff] }
 0x319   : > { %v4511_v14 = vpop.f32.mrf.mxu1 }
 0x31a   : > { %v3120_v16 = vmax.f32 %v3088_v3, 0.0  ;;  %v2853_v36 = vadd.f32 %v4511_v14, %v6790_v31  ;;  %v3150_v25 = vpack.c.bf16 %v3122_v39, %v3121_v23  ;;  %v3052_v29 = vadd.f32 %v6338_v44, %v2850_v27  ;;  %v6457_v44 = vpop.f32.mrf.mxu0  ;;  %v6796_v31 = vld [vmem:[#allocation14_spill] sm:$0xff] }
 0x31b   : > { %v2750_v60 = vpop.f32.mrf.mxu1  ;;  %v3093_v41 = vadd.f32 %v6404_v59, %v3054_v56  ;;  %v6795_v56 = vld [vmem:[#allocation11_spill] sm:$0xff] }
 0x31c   : > { %v3149_v22 = vpack.c.bf16 %v3120_v16, %v3119_v4  ;;  %v3055_v51 = vadd.f32 %v6348_v2, %v2853_v36  ;;  %v2851_v28 = vadd.f32 %v2750_v60, %v2649_v58  ;;  %v3091_v11 = vadd.f32 %v6404_v59, %v3052_v29 }
 0x31d   : > { %v4514_v55 = vpop.f32.mrf.mxu1  ;;  %v3125_v2 = vmax.f32 %v3093_v41, 0.0  ;;  %v2653_v27 = vadd.f32 %v6795_v56, %v2451_v37  ;;  %v2455_v36 = vadd.f32 %v6330_v6, %v6796_v31 }
 0x31e   : > { %v3094_v0 = vadd.f32 %v6404_v59, %v3055_v51  ;;  %v2856_v15 = vadd.f32 %v4514_v55, %v6300_v13  ;;  %4572 = vmatprep.mubr.msk.bf16.mxu1 %vm1101_vm1, %v3149_v22  ;;  %v3053_v50 = vadd.f32 %v6356_v5, %v2851_v28  ;;  %v4557_v5 = vpop.f32.mrf.mxu0  ;;  %v3123_v23 = vmax.f32 %v3091_v11, 0.0  ;;  %v6797_v55 = vld [vmem:[#allocation23_spill] sm:$0xff] }
 0x31f   : > { %v2763_v20 = vpop.f32.mrf.mxu1  ;;  %4573 = vmatmul.mubr.msk.bf16.gmra.mxu1 %vm1101_vm1, %v3150_v25 }
 0x320   : > { %v3126_v9 = vmax.f32 %v3094_v0, 0.0  ;;  %v3058_v35 = vadd.f32 %v6366_v63, %v2856_v15  ;;  %v2854_v10 = vadd.f32 %v2763_v20, %v6793_v38  ;;  %v3092_v24 = vadd.f32 %v6404_v59, %v3053_v50  ;;  %v3000_v22 = vpop.f32.mrf.mxu0  ;;  %v6798_v0 = vld [vmem:[#allocation12_spill] sm:$0xff] }
 0x321   : > { %v4515_v13 = vpop.f32.mrf.mxu1  ;;  %v2657_v15 = vadd.f32 %v6798_v0, %v2455_v36  ;;  %v6800_v36 = vld [vmem:[#allocation18_spill] sm:$0xff] }
 0x322   : > { %v3152_v1 = vpack.c.bf16 %v3126_v9, %v3125_v2  ;;  %v3056_v32 = vadd.f32 %v6374_v46, %v2854_v10  ;;  %v2857_v3 = vadd.f32 %v4515_v13, %v6794_v7  ;;  %v3124_v39 = vmax.f32 %v3092_v24, 0.0  ;;  %v4560_v20 = vpop.f32.mrf.mxu0 }
 0x323   : > { %v2766_v14 = vpop.f32.mrf.mxu1  ;;  %v3097_v4 = vadd.f32 %v6404_v59, %v3058_v35 }
 0x324   : > { %v3059_v63 = vadd.f32 %v6384_v40, %v2857_v3  ;;  %v2855_v16 = vadd.f32 %v2766_v14, %v2653_v27  ;;  %v3151_v25 = vpack.c.bf16 %v3124_v39, %v3123_v23  ;;  %v3095_v46 = vadd.f32 %v6404_v59, %v3056_v32 }
 0x325   : > { %v4518_v29 = vpop.f32.mrf.mxu1  ;;  %v3129_v51 = vmax.f32 %v3097_v4, 0.0 }
 0x326   : > { %v3098_v12 = vadd.f32 %v6404_v59, %v3059_v63  ;;  %v3057_v58 = vadd.f32 %v6396_v33, %v2855_v16  ;;  %v2860_v60 = vadd.f32 %v4518_v29, %v6322_v8  ;;  %4576 = vmatprep.mubr.msk.bf16.mxu1 %vm1101_vm1, %v3151_v25  ;;  %v3127_v33 = vmax.f32 %v3095_v46, 0.0 }
 0x327   : > { %v2779_v41 = vpop.f32.mrf.mxu1  ;;  %4577 = vmatmul.mubr.msk.bf16.gmra.mxu1 %vm1101_vm1, %v3152_v1 }
 0x328   : > { %v3130_v40 = vmax.f32 %v3098_v12, 0.0  ;;  %v3096_v28 = vadd.f32 %v6404_v59, %v3057_v58  ;;  %v2858_v6 = vadd.f32 %v2779_v41, %v6797_v55  ;;  %v3062_v57 = vadd.f32 %v6408_v47, %v2860_v60  ;;  %v6801_v60 = vld [vmem:[#allocation16_spill] sm:$0xff] }
 0x329   : > { %v4519_v37 = vpop.f32.mrf.mxu1  ;;  %v2463_v41 = vadd.f32 %v6368_v53, %v6801_v60 }
 0x32a   : > { %v3154_v11 = vpack.c.bf16 %v3130_v40, %v3129_v51  ;;  %v3128_v8 = vmax.f32 %v3096_v28, 0.0  ;;  %v3060_v50 = vadd.f32 %v6420_v48, %v2858_v6  ;;  %v2861_v2 = vadd.f32 %v4519_v37, %v6335_v49  ;;  %v6799_v48 = vld [vmem:[#allocation15_spill] sm:$0xff]  ;;  %v3013_v49 = vpop.f32.mrf.mxu0 }
 0x32b   : > { %v2782_v9 = vpop.f32.mrf.mxu1  ;;  %v3101_v10 = vadd.f32 %v6404_v59, %v3062_v57  ;;  %v2459_v7 = vadd.f32 %v6350_v30, %v6799_v48 }
 0x32c   : > { %v3153_v35 = vpack.c.bf16 %v3128_v8, %v3127_v33  ;;  %v2859_v38 = vadd.f32 %v2782_v9, %v2657_v15  ;;  %v3063_v24 = vadd.f32 %v6428_v52, %v2861_v2  ;;  %v3099_v47 = vadd.f32 %v6404_v59, %v3060_v50  ;;  %v4561_v30 = vpop.f32.mrf.mxu0  ;;  %v6802_v8 = vld [vmem:[#allocation19_spill] sm:$0xff] }
 0x32d   : > { %v4522_v13 = vpop.f32.mrf.mxu1  ;;  %v2661_v25 = vadd.f32 %v6800_v36, %v2459_v7  ;;  %v2665_v50 = vadd.f32 %v6802_v8, %v2463_v41 }
 0x32e   : > { %v3061_v1 = vadd.f32 %v6438_v62, %v2859_v38  ;;  %v2864_v32 = vadd.f32 %v4522_v13, %v6342_v21  ;;  %4580 = vmatprep.mubr.msk.bf16.mxu1 %vm1101_vm1, %v3153_v35  ;;  %v3102_v3 = vadd.f32 %v6404_v59, %v3063_v24  ;;  %v3133_v62 = vmax.f32 %v3101_v10, 0.0  ;;  %v3016_v40 = vpop.f32.mrf.mxu0 }
 0x32f   : > { %v2795_v56 = vpop.f32.mrf.mxu1  ;;  %4581 = vmatmul.mubr.msk.bf16.gmra.mxu1 %vm1101_vm1, %v3154_v11  ;;  %v3131_v14 = vmax.f32 %v3099_v47, 0.0 }
 0x330   : > { %v3100_v27 = vadd.f32 %v6404_v59, %v3061_v1  ;;  %v3066_v52 = vadd.f32 %v6446_v17, %v2864_v32  ;;  %v2862_v23 = vadd.f32 %v2795_v56, %v6346_v19  ;;  %v3134_v39 = vmax.f32 %v3102_v3, 0.0  ;;  %v4564_v15 = vpop.f32.mrf.mxu0 }
 0x331   : > { %v4523_v21 = vpop.f32.mrf.mxu1 }
 0x332   : > { %v3132_v4 = vmax.f32 %v3100_v27, 0.0  ;;  %v2865_v63 = vadd.f32 %v4523_v21, %v6353_v18  ;;  %v3156_v16 = vpack.c.bf16 %v3134_v39, %v3133_v62  ;;  %v3064_v31 = vadd.f32 %v6457_v44, %v2862_v23  ;;  %v3029_v13 = vpop.f32.mrf.mxu0  ;;  %v6804_v62 = vld [vmem:[#allocation20_spill] sm:$0xff] }
 0x333   : > { %v2798_v29 = vpop.f32.mrf.mxu1  ;;  %v3105_v17 = vadd.f32 %v6404_v59, %v3066_v52 }
 0x334   : > { %v3155_v46 = vpack.c.bf16 %v3132_v4, %v3131_v14  ;;  %v3067_v19 = vadd.f32 %v4557_v5, %v2865_v63  ;;  %v2863_v12 = vadd.f32 %v2798_v29, %v2661_v25  ;;  %v3103_v44 = vadd.f32 %v6404_v59, %v3064_v31  ;;  %v4565_v52 = vpop.f32.mrf.mxu0 }
 0x335   : > { %v4526_v58 = vpop.f32.mrf.mxu1  ;;  %v3137_v6 = vmax.f32 %v3105_v17, 0.0 }
 0x336   : > { %v3106_v51 = vadd.f32 %v6404_v59, %v3067_v19  ;;  %v2868_v18 = vadd.f32 %v4526_v58, %v6360_v45  ;;  %4584 = vmatprep.mubr.msk.bf16.mxu1 %vm1101_vm1, %v3155_v46  ;;  %v3065_v28 = vadd.f32 %v3000_v22, %v2863_v12  ;;  %v3135_v2 = vmax.f32 %v3103_v44, 0.0  ;;  %v3032_v25 = vpop.f32.mrf.mxu0 }
 0x337   : > { %v2811_v55 = vpop.f32.mrf.mxu1  ;;  %4585 = vmatmul.mubr.msk.bf16.gmra.mxu1 %vm1101_vm1, %v3156_v16 }
 0x338   : > { %v3138_v57 = vmax.f32 %v3106_v51, 0.0  ;;  %v3070_v37 = vadd.f32 %v4560_v20, %v2868_v18  ;;  %v2866_v5 = vadd.f32 %v2811_v55, %v6364_v34  ;;  %v3104_v53 = vadd.f32 %v6404_v59, %v3065_v28  ;;  %v6803_v34 = vld [vmem:[#allocation17_spill] sm:$0xff]  ;;  %v6535_v18 = vld [vmem:[%s6709_s6] ss:$0 sm:$0xff] }
 0x339   : > { %v4527_v0 = vpop.f32.mrf.mxu1  ;;  %v2467_v10 = vadd.f32 %v6386_v42, %v6803_v34  ;;  %v4711_v28 = vld [vmem:[%s5026_s15] sm:$0xff]   ;;  %v4713_v34 = vld [vmem:[%s5026_s15 + $0x10] sm:$0xff]  }
 0x33a   : > { %v3158_v33 = vpack.c.bf16 %v3138_v57, %v3137_v6  ;;  %v3068_v45 = vadd.f32 %v3013_v49, %v2866_v5  ;;  %v2869_v11 = vadd.f32 %v4527_v0, %v6371_v43  ;;  %v3136_v22 = vmax.f32 %v3104_v53, 0.0 }
 0x33b   : > { %v2814_v9 = vpop.f32.mrf.mxu1  ;;  %v3109_v35 = vadd.f32 %v6404_v59, %v3070_v37  ;;  %v2669_v39 = vadd.f32 %v6804_v62, %v2467_v10  ;;  %v3387_v55 = vunpack.c.l.bf16 %v4711_v28  ;;  %v3391_v10 = vunpack.c.l.bf16 %v4713_v34 }
 0x33c   : > { %v3071_v20 = vadd.f32 %v4561_v30, %v2869_v11  ;;  %v2867_v38 = vadd.f32 %v2814_v9, %v2665_v50  ;;  %v3157_v24 = vpack.c.bf16 %v3136_v22, %v3135_v2  ;;  %v3107_v1 = vadd.f32 %v6404_v59, %v3068_v45  ;;  %v4712_v50 = vld [vmem:[%s5026_s15 + $0x18] sm:$0xff]  }
 0x33d   : > { %v4530_v47 = vpop.f32.mrf.mxu1  ;;  %v3141_v49 = vmax.f32 %v3109_v35, 0.0  ;;  %v3393_v2 = vunpack.c.l.bf16 %v4712_v50 }
 0x33e   : > { %v3110_v32 = vadd.f32 %v6404_v59, %v3071_v20  ;;  %v3069_v43 = vadd.f32 %v3016_v40, %v2867_v38  ;;  %v2872_v48 = vadd.f32 %v4530_v47, %v6378_v54  ;;  %4588 = vmatprep.mubr.msk.bf16.mxu1 %vm1101_vm1, %v3157_v24  ;;  %v3139_v21 = vmax.f32 %v3107_v1, 0.0  ;;  %v4710_v40 = vld [vmem:[%s5026_s15 + $0x8] sm:$0xff]  }
 0x33f   : > { %v2827_v7 = vpop.f32.mrf.mxu1  ;;  %4589 = vmatmul.mubr.msk.bf16.gmra.mxu1 %vm1101_vm1, %v3158_v33  ;;  %v3389_v44 = vunpack.c.l.bf16 %v4710_v40  ;;  %v3390_v53 = vunpack.c.h.bf16 %v4710_v40 }
 0x340   : > { %v3142_v3 = vmax.f32 %v3110_v32, 0.0  ;;  %v3108_v56 = vadd.f32 %v6404_v59, %v3069_v43  ;;  %v2870_v27 = vadd.f32 %v2827_v7, %v6382_v26  ;;  %v3074_v42 = vadd.f32 %v4564_v15, %v2872_v48 }
 0x341   : > { %v4531_v23 = vpop.f32.mrf.mxu1  ;;  %v3388_v15 = vunpack.c.h.bf16 %v4711_v28  ;;  %v3394_v43 = vunpack.c.h.bf16 %v4712_v50 }
 0x342   : > { %v3160_v14 = vpack.c.bf16 %v3142_v3, %v3141_v49  ;;  %v3140_v4 = vmax.f32 %v3108_v56, 0.0  ;;  %v3072_v54 = vadd.f32 %v3029_v13, %v2870_v27  ;;  %v2873_v63 = vadd.f32 %v4531_v23, %v6391_v61 }
 0x343   : > { %v2830_v30 = vpop.f32.mrf.mxu1  ;;  %v3113_v36 = vadd.f32 %v6404_v59, %v3074_v42  ;;  %v3392_v27 = vunpack.c.h.bf16 %v4713_v34 }
 0x344   : > { %v3159_v16 = vpack.c.bf16 %v3140_v4, %v3139_v21  ;;  %v2871_v31 = vadd.f32 %v2830_v30, %v2669_v39  ;;  %v3075_v26 = vadd.f32 %v4565_v52, %v2873_v63  ;;  %v3111_v29 = vadd.f32 %v6404_v59, %v3072_v54  ;;  %v4714_v63 = vld [vmem:[%s5026_s15 + $0x28] sm:$0xff]  }
 0x345   : > { %v3145_v61 = vmax.f32 %v3113_v36, 0.0  ;;  %v3397_v30 = vunpack.c.l.bf16 %v4714_v63 }
 0x346   : > { %v3073_v46 = vadd.f32 %v3032_v25, %v2871_v31  ;;  %4592 = vmatprep.mubr.msk.bf16.mxu1 %vm1101_vm1, %v3159_v16  ;;  %v3114_v17 = vadd.f32 %v6404_v59, %v3075_v26  ;;  %v3143_v58 = vmax.f32 %v3111_v29, 0.0  ;;  %v4715_v29 = vld [vmem:[%s5026_s15 + $0x20] sm:$0xff]  }
 0x347   : > { %4593 = vmatmul.mubr.msk.bf16.gmra.mxu1 %vm1101_vm1, %v3160_v14  ;;  %v3396_v28 = vunpack.c.h.bf16 %v4715_v29 }
 0x348   : > { %v3112_v19 = vadd.f32 %v6404_v59, %v3073_v46  ;;  %v3146_v12 = vmax.f32 %v3114_v17, 0.0  ;;  %v3395_v46 = vunpack.c.l.bf16 %v4715_v29 }
 0x34a   : > { %v3144_v60 = vmax.f32 %v3112_v19, 0.0  ;;  %v3162_v41 = vpack.c.bf16 %v3146_v12, %v3145_v61 }
 0x34c   : > { %v3161_v51 = vpack.c.bf16 %v3144_v60, %v3143_v58  ;;  %v3398_v60 = vunpack.c.h.bf16 %v4714_v63 }
 0x34e   : > { %4596 = vmatprep.mubr.msk.bf16.mxu1 %vm1101_vm1, %v3161_v51 }
 0x34f   : > { %4597 = vmatmul.mubr.msk.bf16.gmra.mxu1 %vm1101_vm1, %v3162_v41 }
 0x3d7   : > { %v4570_v59 = vpop.f32.mrf.mxu1 }
 0x3d8   : > { %v3269_v6 = vadd.f32 %v4570_v59, %v6535_v18 }
 0x3d9   : > { %v3260_v57 = vpop.f32.mrf.mxu1 }
 0x3da   : > { %v3421_v37 = vadd.f32 %v3389_v44, %v3269_v6  ;;  %v3261_v5 = vadd.f32 %v6535_v18, %v3260_v57  ;;  %v4716_v6 = vld [vmem:[%s5026_s15 + $0x38] sm:$0xff]  }
 0x3db   : > { %v4571_v0 = vpop.f32.mrf.mxu1  ;;  %v3401_v57 = vunpack.c.l.bf16 %v4716_v6 }
 0x3dc   : > { %v3453_v33 = vmax.f32 %v3421_v37, 0.0  ;;  %v3419_v45 = vadd.f32 %v3387_v55, %v3261_v5  ;;  %v3272_v11 = vadd.f32 %v4571_v0, %v6535_v18 }
 0x3dd   : > { %v3263_v8 = vpop.f32.mrf.mxu1 }
 0x3de   : > { %v3999_v22 = vpack.c.bf16 %v3453_v33, %v3453_v33  ;;  %v3451_v9 = vmax.f32 %v3419_v45, 0.0  ;;  %v3422_v35 = vadd.f32 %v3390_v53, %v3272_v11  ;;  %v3264_v20 = vadd.f32 %v6535_v18, %v3263_v8  ;;  %v4717_v33 = vld [vmem:[%s5026_s15 + $0x30] sm:$0xff]  }
 0x3df   : > { %v4574_v38 = vpop.f32.mrf.mxu1  ;;  %v3399_v45 = vunpack.c.l.bf16 %v4717_v33 }
 0x3e0   : > { %3614 = vst.msk [vmem:[%s6547_s30 + $0x8] sm:$0xf] %vm3611_vm7, %v3999_v22  ;;  %v3997_v24 = vpack.c.bf16 %v3451_v9, %v3451_v9  ;;  %v3454_v13 = vmax.f32 %v3422_v35, 0.0  ;;  %v3420_v47 = vadd.f32 %v3388_v15, %v3264_v20  ;;  %v3285_v1 = vadd.f32 %v4574_v38, %v6535_v18 }
 0x3e1   : > { %v3276_v32 = vpop.f32.mrf.mxu1  ;;  %v3402_v9 = vunpack.c.h.bf16 %v4716_v6 }
 0x3e2   : > { %3612 = vst.msk [vmem:[%s6547_s30] sm:$0xf] %vm3611_vm7, %v3997_v24  ;;  %v4000_v48 = vpack.c.bf16 %v3454_v13, %v3454_v13  ;;  %v3452_v7 = vmax.f32 %v3420_v47, 0.0  ;;  %v3425_v49 = vadd.f32 %v3393_v2, %v3285_v1  ;;  %v3277_v3 = vadd.f32 %v6535_v18, %v3276_v32 }
 0x3e3   : > { %v4575_v56 = vpop.f32.mrf.mxu1  ;;  %v3400_v24 = vunpack.c.h.bf16 %v4717_v33 }
 0x3e4   : > { %3615 = vst.msk [vmem:[%s6547_s30 + $0xc] sm:$0xf] %vm3611_vm7, %v4000_v48  ;;  %v3998_v42 = vpack.c.bf16 %v3452_v7, %v3452_v7  ;;  %v3457_v52 = vmax.f32 %v3425_v49, 0.0  ;;  %v3423_v23 = vadd.f32 %v3391_v10, %v3277_v3  ;;  %v3288_v62 = vadd.f32 %v4575_v56, %v6535_v18  ;;  %v4718_v48 = vld [vmem:[%s5026_s15 + $0x48] sm:$0xff]  }
 0x3e5   : > { %v3279_v39 = vpop.f32.mrf.mxu1  ;;  %v3405_v7 = vunpack.c.l.bf16 %v4718_v48 }
 0x3e6   : > { %3613 = vst.msk [vmem:[%s6547_s30 + $0x4] sm:$0xf] %vm3611_vm7, %v3998_v42  ;;  %v4003_v21 = vpack.c.bf16 %v3457_v52, %v3457_v52  ;;  %v3455_v14 = vmax.f32 %v3423_v23, 0.0  ;;  %v3426_v4 = vadd.f32 %v3394_v43, %v3288_v62  ;;  %v3280_v54 = vadd.f32 %v6535_v18, %v3279_v39  ;;  %v4719_v52 = vld [vmem:[%s5026_s15 + $0x40] sm:$0xff]  }
 0x3e7   : > { %v4578_v25 = vpop.f32.mrf.mxu1  ;;  %v3403_v23 = vunpack.c.l.bf16 %v4719_v52 }
 0x3e8   : > { %3618 = vst.msk [vmem:[%s6547_s30 + $0x18] sm:$0xf] %vm3611_vm7, %v4003_v21  ;;  %v4001_v16 = vpack.c.bf16 %v3455_v14, %v3455_v14  ;;  %v3458_v31 = vmax.f32 %v3426_v4, 0.0  ;;  %v3424_v36 = vadd.f32 %v3392_v27, %v3280_v54  ;;  %v3301_v26 = vadd.f32 %v4578_v25, %v6535_v18 }
 0x3e9   : > { %v3292_v61 = vpop.f32.mrf.mxu1  ;;  %v3406_v54 = vunpack.c.h.bf16 %v4718_v48  ;;  %v3404_v25 = vunpack.c.h.bf16 %v4719_v52 }
 0x3ea   : > { %3616 = vst.msk [vmem:[%s6547_s30 + $0x10] sm:$0xf] %vm3611_vm7, %v4001_v16  ;;  %v4004_v17 = vpack.c.bf16 %v3458_v31, %v3458_v31  ;;  %v3456_v19 = vmax.f32 %v3424_v36, 0.0  ;;  %v3429_v12 = vadd.f32 %v3397_v30, %v3301_v26  ;;  %v3293_v58 = vadd.f32 %v6535_v18, %v3292_v61  ;;  %v4720_v61 = vld [vmem:[%s5026_s15 + $0x58] sm:$0xff]  }
 0x3eb   : > { %v4579_v51 = vpop.f32.mrf.mxu1 }
 0x3ec   : > { %3619 = vst.msk [vmem:[%s6547_s30 + $0x1c] sm:$0xf] %vm3611_vm7, %v4004_v17  ;;  %v4002_v41 = vpack.c.bf16 %v3456_v19, %v3456_v19  ;;  %v3461_v40 = vmax.f32 %v3429_v12, 0.0  ;;  %v3427_v44 = vadd.f32 %v3395_v46, %v3293_v58  ;;  %v3304_v59 = vadd.f32 %v4579_v51, %v6535_v18 }
 0x3ed   : > { %v3295_v55 = vpop.f32.mrf.mxu1  ;;  %v3409_v12 = vunpack.c.l.bf16 %v4720_v61 }
 0x3ee   : > { %3617 = vst.msk [vmem:[%s6547_s30 + $0x14] sm:$0xf] %vm3611_vm7, %v4002_v41  ;;  %v4007_v37 = vpack.c.bf16 %v3461_v40, %v3461_v40  ;;  %v3459_v5 = vmax.f32 %v3427_v44, 0.0  ;;  %v3430_v53 = vadd.f32 %v3398_v60, %v3304_v59  ;;  %v3296_v0 = vadd.f32 %v6535_v18, %v3295_v55  ;;  %v4721_v44 = vld [vmem:[%s5026_s15 + $0x50] sm:$0xff]  }
 0x3ef   : > { %v4582_v15 = vpop.f32.mrf.mxu1  ;;  %v3407_v59 = vunpack.c.l.bf16 %v4721_v44 }
 0x3f0   : > { %3622 = vst.msk [vmem:[%s6547_s30 + $0x28] sm:$0xf] %vm3611_vm7, %v4007_v37  ;;  %v4005_v11 = vpack.c.bf16 %v3459_v5, %v3459_v5  ;;  %v3462_v8 = vmax.f32 %v3430_v53, 0.0  ;;  %v3428_v50 = vadd.f32 %v3396_v28, %v3296_v0  ;;  %v3317_v2 = vadd.f32 %v4582_v15, %v6535_v18 }
 0x3f1   : > { %v3308_v22 = vpop.f32.mrf.mxu1  ;;  %v3410_v5 = vunpack.c.h.bf16 %v4720_v61 }
 0x3f2   : > { %3620 = vst.msk [vmem:[%s6547_s30 + $0x20] sm:$0xf] %vm3611_vm7, %v4005_v11  ;;  %v4008_v35 = vpack.c.bf16 %v3462_v8, %v3462_v8  ;;  %v3460_v20 = vmax.f32 %v3428_v50, 0.0  ;;  %v3433_v38 = vadd.f32 %v3401_v57, %v3317_v2  ;;  %v3309_v34 = vadd.f32 %v6535_v18, %v3308_v22 }
 0x3f3   : > { %v4583_v10 = vpop.f32.mrf.mxu1  ;;  %v3408_v11 = vunpack.c.h.bf16 %v4721_v44 }
 0x3f4   : > { %3623 = vst.msk [vmem:[%s6547_s30 + $0x2c] sm:$0xf] %vm3611_vm7, %v4008_v35  ;;  %v4006_v13 = vpack.c.bf16 %v3460_v20, %v3460_v20  ;;  %v3465_v47 = vmax.f32 %v3433_v38, 0.0  ;;  %v3431_v1 = vadd.f32 %v3399_v45, %v3309_v34  ;;  %v3320_v32 = vadd.f32 %v4583_v10, %v6535_v18  ;;  %v4722_v35 = vld [vmem:[%s5026_s15 + $0x68] sm:$0xff]  }
 0x3f5   : > { %v3311_v43 = vpop.f32.mrf.mxu1  ;;  %v3413_v20 = vunpack.c.l.bf16 %v4722_v35 }
 0x3f6   : > { %3621 = vst.msk [vmem:[%s6547_s30 + $0x24] sm:$0xf] %vm3611_vm7, %v4006_v13  ;;  %v4011_v49 = vpack.c.bf16 %v3465_v47, %v3465_v47  ;;  %v3463_v3 = vmax.f32 %v3431_v1, 0.0  ;;  %v3434_v56 = vadd.f32 %v3402_v9, %v3320_v32  ;;  %v3312_v27 = vadd.f32 %v6535_v18, %v3311_v43  ;;  %v4723_v47 = vld [vmem:[%s5026_s15 + $0x60] sm:$0xff]  }
 0x3f7   : > { %v4586_v42 = vpop.f32.mrf.mxu1  ;;  %v3411_v1 = vunpack.c.l.bf16 %v4723_v47 }
 0x3f8   : > { %3626 = vst.msk [vmem:[%s6547_s30 + $0x38] sm:$0xf] %vm3611_vm7, %v4011_v49  ;;  %v4009_v62 = vpack.c.bf16 %v3463_v3, %v3463_v3  ;;  %v3466_v39 = vmax.f32 %v3434_v56, 0.0  ;;  %v3432_v21 = vadd.f32 %v3400_v24, %v3312_v27  ;;  %v3333_v14 = vadd.f32 %v4586_v42, %v6535_v18 }
 0x3f9   : > { %v3324_v4 = vpop.f32.mrf.mxu1  ;;  %v3414_v3 = vunpack.c.h.bf16 %v4722_v35 }
 0x3fa   : > { %3624 = vst.msk [vmem:[%s6547_s30 + $0x30] sm:$0xf] %vm3611_vm7, %v4009_v62  ;;  %v4012_v63 = vpack.c.bf16 %v3466_v39, %v3466_v39  ;;  %v3464_v30 = vmax.f32 %v3432_v21, 0.0  ;;  %v3437_v16 = vadd.f32 %v3405_v7, %v3333_v14  ;;  %v3325_v31 = vadd.f32 %v6535_v18, %v3324_v4 }
 0x3fb   : > { %v4587_v36 = vpop.f32.mrf.mxu1  ;;  %v3412_v62 = vunpack.c.h.bf16 %v4723_v47 }
 0x3fc   : > { %3627 = vst.msk [vmem:[%s6547_s30 + $0x3c] sm:$0xf] %vm3611_vm7, %v4012_v63  ;;  %v4010_v26 = vpack.c.bf16 %v3464_v30, %v3464_v30  ;;  %v3469_v29 = vmax.f32 %v3437_v16, 0.0  ;;  %v3435_v46 = vadd.f32 %v3403_v23, %v3325_v31  ;;  %v3336_v17 = vadd.f32 %v4587_v36, %v6535_v18  ;;  %v4724_v63 = vld [vmem:[%s5026_s15 + $0x78] sm:$0xff]  }
 0x3fd   : > { %v3327_v19 = vpop.f32.mrf.mxu1  ;;  %v3417_v30 = vunpack.c.l.bf16 %v4724_v63 }
 0x3fe   : > { %3625 = vst.msk [vmem:[%s6547_s30 + $0x34] sm:$0xf] %vm3611_vm7, %v4010_v26  ;;  %v4015_v58 = vpack.c.bf16 %v3469_v29, %v3469_v29  ;;  %v3467_v60 = vmax.f32 %v3435_v46, 0.0  ;;  %v3438_v41 = vadd.f32 %v3406_v54, %v3336_v17  ;;  %v3328_v51 = vadd.f32 %v6535_v18, %v3327_v19  ;;  %v4725_v29 = vld [vmem:[%s5026_s15 + $0x70] sm:$0xff]   ;;  %s3658_s15 = sshll.u32 %s6547_s30, 4  ;;  %s6656_s15 = int_to_ptr.vmem [resolvable:$true] %s3658_s15 }
 0x3ff   : > { %v4590_v40 = vpop.f32.mrf.mxu1  ;;  %v3415_v46 = vunpack.c.l.bf16 %v4725_v29  ;;  %s4780_s29 = scalar_lea.vmem %s6656_s15, 2048  ;;  %p4787_p10 = scmp.lt.s32.totalorder %s6656_s15, %s4785_s12 }
 0x400   : > { %3630 = vst.msk [vmem:[%s6547_s30 + $0x48] sm:$0xf] %vm3611_vm7, %v4015_v58  ;;  %v4013_v28 = vpack.c.bf16 %v3467_v60, %v3467_v60  ;;  %v3470_v55 = vmax.f32 %v3438_v41, 0.0  ;;  %v3436_v6 = vadd.f32 %v3404_v25, %v3328_v51  ;;  %v3349_v57 = vadd.f32 %v4590_v40, %v6535_v18  ;;  %p4781_p3 = scmp.ne.s32.totalorder %s6656_s15, %s4780_s29  ;;  %p4788_p12 = scmp.lt.s32.totalorder %s4786_s10, %s4780_s29 }
 0x401   : > { %v3340_v37 = vpop.f32.mrf.mxu1  ;;  %v3418_v60 = vunpack.c.h.bf16 %v4724_v63 }
 0x402   : > { %3628 = vst.msk [vmem:[%s6547_s30 + $0x40] sm:$0xf] %vm3611_vm7, %v4013_v28  ;;  %v4016_v53 = vpack.c.bf16 %v3470_v55, %v3470_v55  ;;  %v3468_v0 = vmax.f32 %v3436_v6, 0.0  ;;  %v3441_v15 = vadd.f32 %v3409_v12, %v3349_v57  ;;  %v3341_v33 = vadd.f32 %v6535_v18, %v3340_v37  ;;  %p4782_p7 = pnand %p4781_p3, %p6805_p11  ;;  %p4789_p13 = por %p4788_p12, %p4787_p10 }
 0x403   : > { %v4591_v45 = vpop.f32.mrf.mxu1  ;;  %v3416_v28 = vunpack.c.h.bf16 %v4725_v29 }
 0x404   : > { %3631 = vst.msk [vmem:[%s6547_s30 + $0x4c] sm:$0xf] %vm3611_vm7, %v4016_v53  ;;  %v4014_v8 = vpack.c.bf16 %v3468_v0, %v3468_v0  ;;  %v3473_v50 = vmax.f32 %v3441_v15, 0.0  ;;  %v3439_v2 = vadd.f32 %v3407_v59, %v3341_v33  ;;  %v3352_v22 = vadd.f32 %v4591_v45, %v6535_v18  ;;  %p4783_p9 = pneg %p4782_p7 }
 0x405   : > { %v3343_v9 = vpop.f32.mrf.mxu1 }
 0x406   : > { %3629 = vst.msk [vmem:[%s6547_s30 + $0x44] sm:$0xf] %vm3611_vm7, %v4014_v8  ;;  %v4019_v38 = vpack.c.bf16 %v3473_v50, %v3473_v50  ;;  %v3471_v34 = vmax.f32 %v3439_v2, 0.0  ;;  %v3442_v10 = vadd.f32 %v3410_v5, %v3352_v22  ;;  %v3344_v24 = vadd.f32 %v6535_v18, %v3343_v9  ;;  %p4790_p0 = pnand %p4789_p13, %p4783_p9 }
 0x407   : > { %v4594_v13 = vpop.f32.mrf.mxu1 }
 0x408   : > { %3634 = vst.msk [vmem:[%s6547_s30 + $0x58] sm:$0xf] %vm3611_vm7, %v4019_v38  ;;  %v4017_v32 = vpack.c.bf16 %v3471_v34, %v3471_v34  ;;  %v3474_v43 = vmax.f32 %v3442_v10, 0.0  ;;  %v3440_v48 = vadd.f32 %v3408_v11, %v3344_v24  ;;  %v3365_v7 = vadd.f32 %v4594_v13, %v6535_v18 }
 0x409   : > { %v3356_v49 = vpop.f32.mrf.mxu1 }
 0x40a   : > { %3632 = vst.msk [vmem:[%s6547_s30 + $0x50] sm:$0xf] %vm3611_vm7, %v4017_v32  ;;  %v4020_v56 = vpack.c.bf16 %v3474_v43, %v3474_v43  ;;  %v3472_v27 = vmax.f32 %v3440_v48, 0.0  ;;  %v3445_v42 = vadd.f32 %v3413_v20, %v3365_v7  ;;  %v3357_v52 = vadd.f32 %v6535_v18, %v3356_v49 }
 0x40b   : > { %v4595_v23 = vpop.f32.mrf.mxu1 }
 0x40c   : > { %3635 = vst.msk [vmem:[%s6547_s30 + $0x5c] sm:$0xf] %vm3611_vm7, %v4020_v56  ;;  %v4018_v39 = vpack.c.bf16 %v3472_v27, %v3472_v27  ;;  %v3477_v21 = vmax.f32 %v3445_v42, 0.0  ;;  %v3443_v14 = vadd.f32 %v3411_v1, %v3357_v52  ;;  %v3368_v4 = vadd.f32 %v4595_v23, %v6535_v18 }
 0x40d   : > { %v3359_v54 = vpop.f32.mrf.mxu1 }
 0x40e   : > { %3633 = vst.msk [vmem:[%s6547_s30 + $0x54] sm:$0xf] %vm3611_vm7, %v4018_v39  ;;  %v4023_v16 = vpack.c.bf16 %v3477_v21, %v3477_v21  ;;  %v3475_v31 = vmax.f32 %v3443_v14, 0.0  ;;  %v3446_v36 = vadd.f32 %v3414_v3, %v3368_v4  ;;  %v3360_v25 = vadd.f32 %v6535_v18, %v3359_v54 }
 0x40f   : > { %v4598_v26 = vpop.f32.mrf.mxu1 }
 0x410   : > { %3638 = vst.msk [vmem:[%s6547_s30 + $0x68] sm:$0xf] %vm3611_vm7, %v4023_v16  ;;  %v4021_v17 = vpack.c.bf16 %v3475_v31, %v3475_v31  ;;  %v3478_v19 = vmax.f32 %v3446_v36, 0.0  ;;  %v3444_v61 = vadd.f32 %v3412_v62, %v3360_v25  ;;  %v3381_v12 = vadd.f32 %v4598_v26, %v6535_v18 }
 0x411   : > { %v3372_v58 = vpop.f32.mrf.mxu1 }
 0x412   : > { %3636 = vst.msk [vmem:[%s6547_s30 + $0x60] sm:$0xf] %vm3611_vm7, %v4021_v17  ;;  %v4024_v41 = vpack.c.bf16 %v3478_v19, %v3478_v19  ;;  %v3476_v51 = vmax.f32 %v3444_v61, 0.0  ;;  %v3449_v40 = vadd.f32 %v3417_v30, %v3381_v12  ;;  %v3373_v44 = vadd.f32 %v6535_v18, %v3372_v58 }
 0x413   : > { %v4599_v59 = vpop.f32.mrf.mxu1 }
 0x414   : > { %3639 = vst.msk [vmem:[%s6547_s30 + $0x6c] sm:$0xf] %vm3611_vm7, %v4024_v41  ;;  %v4022_v55 = vpack.c.bf16 %v3476_v51, %v3476_v51  ;;  %v3481_v6 = vmax.f32 %v3449_v40, 0.0  ;;  %v3447_v57 = vadd.f32 %v3415_v46, %v3373_v44  ;;  %v3384_v37 = vadd.f32 %v4599_v59, %v6535_v18 }
 0x415   : > { %v3375_v5 = vpop.f32.mrf.mxu1 }
 0x416   : > { %3637 = vst.msk [vmem:[%s6547_s30 + $0x64] sm:$0xf] %vm3611_vm7, %v4022_v55  ;;  %v4027_v53 = vpack.c.bf16 %v3481_v6, %v3481_v6  ;;  %v3479_v0 = vmax.f32 %v3447_v57, 0.0  ;;  %v3450_v15 = vadd.f32 %v3418_v60, %v3384_v37  ;;  %v3376_v33 = vadd.f32 %v6535_v18, %v3375_v5 }
 0x418   : > { %3642 = vst.msk [vmem:[%s6547_s30 + $0x78] sm:$0xf] %vm3611_vm7, %v4027_v53  ;;  %v4025_v45 = vpack.c.bf16 %v3479_v0, %v3479_v0  ;;  %v3482_v11 = vmax.f32 %v3450_v15, 0.0  ;;  %v3448_v8 = vadd.f32 %v3416_v28, %v3376_v33 }
 0x41a   : > { %3640 = vst.msk [vmem:[%s6547_s30 + $0x70] sm:$0xf] %vm3611_vm7, %v4025_v45  ;;  %v4028_v50 = vpack.c.bf16 %v3482_v11, %v3482_v11  ;;  %v3480_v2 = vmax.f32 %v3448_v8, 0.0 }
 0x41c   : > { %3643 = vst.msk [vmem:[%s6547_s30 + $0x7c] sm:$0xf] %vm3611_vm7, %v4028_v50  ;;  %v4026_v18 = vpack.c.bf16 %v3480_v2, %v3480_v2 }
 0x41e   : > { %3641 = vst.msk [vmem:[%s6547_s30 + $0x74] sm:$0xf] %vm3611_vm7, %v4026_v18 }
 0x41f   : > { %4793 = shalt.err (!%p4790_p0)
}
 0x420   : > { %s4794_s9 = scalar_lea.hbm %s6654_s23, 2048  ;;  %s4798_s20 = scalar_lea.hbm %s6710_s7, 4096 }
 0x421   : > { %p4795_p5 = scmp.ne.s32.totalorder %s6654_s23, %s4794_s9  ;;  %p4799_p4 = scmp.lt.s32.totalorder %s6654_s23, %s6710_s7 }
 0x422   : > { %p4800_p6 = scmp.lt.s32.totalorder %s4798_s20, %s4794_s9 }
 0x423   : > { %p4796_p2 = pnand %p4795_p5, %p6805_p11 }
 0x424   : > { %p4801_p8 = por %p4800_p6, %p4799_p4 }
 0x425   : > { %p4797_p1 = pneg %p4796_p2 }
 0x427   : > { %p4802_p3 = pnand %p4801_p8, %p4797_p1 }
 0x429   : > { %4805 = shalt.err (!%p4802_p3)
}
 0x42a   : > { %s4856_s16 = smov 64   ;;  %s4857_s11 = smov 4  }
 0x42b   : > { %4608 = dma.vmem_to_hbm [thread:$0]  (%p6805_p11), %s6656_s15, 2048, %s6654_s23, %s3645_s28, %s4856_s16, %s4856_s16, %s4857_s11  }
 0x42c PF: > { %s3673_s29 = sand.u32 1, %s4836_s24   ;;  %p6806_p7 = scmp.ne.s32.totalorder %s6723_s8, 0 }
 0x42d   : > { %p6807_p9 = scmp.ge.s32.totalorder %s4848_s27, 2  ;;  %s3674_s17 = scalar_lea.sflag [#allocation4], %s3673_s29 }
 0x42f   : > { %p4619_p10 = pnand %p6807_p9, %p6806_p7 }
 0x431   : > { %p4620_p12 = pneg %p4619_p10 }
 0x433   : > { %4831 = dma.done.wait (%p4620_p12), %s3674_s17, 2048  }
 0x434   : > { %4833 = vsyncadd (%p4620_p12), %s3674_s17, 4294965248  ;;  %p21_p13 = scmp.ge.s32.totalorder %s4952_s13, 4   ;;  %s6808_s24 = smov %s4840_s25 }
 0x435   : > { %s6809_s25 = smov %s4844_s26  ;;  %s6810_s26 = smov %s4972_s21 }
 0x436   : > { %s6811_s27 = smov %s4952_s13  ;;  %23 = sbr.rel (!%p21_p13) target bundleno = 8 (0x8), region = 105 }
 0x43b   :  { %3679 = vsyncpa [#allocation3], 1 }
 0x43c   :  { %3681 = vsyncpa [#allocation3 + $0x1], 1 }
 0x43d   :  { %3682 = vsyncpa [#allocation6], 1 }
 0x43e   :  { %3683 = vsyncpa [#allocation4], 1 }
 0x43f   :  { %3685 = vsyncpa [#allocation4 + $0x1], 1 }

// kernel: tpu_custom_call.1
= control target key start
LH: loop header
LB: loop body
LE: loop exit
PB: predicated region body
PF: predicated region fallthrough
CT: control target
= control target key end

     0   :  { %s6703_s0 = inlined_call_operand.hbm [shape: bf16[2,16,16,64], index: 0, kind: input, shape index: {}]   ;;  %s6704_s1 = inlined_call_operand.vmem [shape: bf16[64,16], index: 1, kind: input, shape index: {}]   ;;  %s6705_s2 = inlined_call_operand.hbm [shape: bf16[3,3,16,16], index: 2, kind: input, shape index: {}]   ;;  %s6706_s3 = inlined_call_operand.vmem [shape: bf16[16,64], index: 3, kind: input, shape index: {}]   ;;  %s6707_s4 = inlined_call_operand.vmem [shape: f32[1,16], index: 4, kind: input, shape index: {}]   ;;  %s6708_s5 = inlined_call_operand.vmem [shape: f32[1,16], index: 5, kind: input, shape index: {}]   ;;  %s6709_s6 = inlined_call_operand.vmem [shape: f32[1,64], index: 6, kind: input, shape index: {}]   ;;  %s6710_s7 = inlined_call_operand.hbm [shape: bf16[2,16,16,64], index: 7, kind: output, shape index: {}]  }
   0x1   :  { %6721 = sst [smem:[#allocation27_spill]] %s6705_s2 }
   0x2   :  { %12 = vsyncpa [#allocation3], 0 }
   0x3   :  { %14 = vsyncpa [#allocation3 + $0x1], 0 }
   0x4   :  { %15 = vsyncpa [#allocation6], 0 }
   0x5   :  { %16 = vsyncpa [#allocation4], 0 }
   0x6   :  { %18 = vsyncpa [#allocation4 + $0x1], 0  ;;  %s4898_s24 = smov 0   ;;  %s4900_s25 = smov 0  }
   0x7   :  { %s4902_s26 = smov 0   ;;  %s4904_s27 = smov 0  }
   0x8 LB: > { %s4919_s28 = sadd.s32 4294967295, %s4848_s27   ;;  %s3741_s29 = sadd.s32 4294967294, %s4848_s27   ;;  %s4848_s27 = sphi %s4904_s27, %s6811_s27   ;;  %s4844_s26 = sphi %s4902_s26, %s6810_s26   ;;  %s4840_s25 = sphi %s4900_s25, %s6809_s25   ;;  %s4836_s24 = sphi %s4898_s24, %s6808_s24  }
   0x9   : > { %p44_p0 = scmp.ne.s32.totalorder %s4840_s25, %s4836_s24  ;;  %p6712_p1 = scmp.eq.s32.totalorder %s4919_s28, 0 }
   0xa   : > { %p200_p3 = scmp.eq.s32.totalorder %s3741_s29, 1  ;;  %p3742_p5 = scmp.ge.s32.totalorder %s4848_s27, 1 }
   0xb   : > { %p4928_p4 = por %p6712_p1, %p44_p0  ;;  %p207_p7 = scmp.lt.s32.totalorder %s4848_s27, 3 }
   0xc   : > { %p4933_p6 = por %p200_p3, %p44_p0  ;;  %s4850_s10 = smov [#allocation5]  }
   0xd   : > { %s6722_s30 = scalar_select %p4928_p4, 1, 0 }
   0xe   : > { %s6723_s8 = scalar_select %p4933_p6, 1, 0 }
   0xf   : > { %p4938_p8 = pnand %p3742_p5, %p207_p7  ;;  %s222_s11 = sshll.u32 %s4850_s10, 4  ;;  %s223_s11 = int_to_ptr.vmem [resolvable:$true] %s222_s11 }
  0x10   : > { %s4952_s13 = sadd.s32 1, %s4848_s27   ;;  %s31_s14 = sadd.s32 1, %s4844_s26 }
  0x11   : > { %s6724_s9 = scalar_select %p4938_p8, 1, 0 }
  0x12   : > { %p4610_p9 = pneg %p4938_p8  ;;  %s28_s15 = ssub.s32 %s4848_s27, %s4952_s13 }
  0x13   : > { %s4737_s16 = scalar_lea.vmem %s223_s11, 1152  ;;  %p4745_p5 = scmp.lt.s32.totalorder %s223_s11, %s223_s11 }
  0x14   : > { %p4947_p11 = pnand %p4610_p9, %p6712_p1  ;;  %p4738_p13 = scmp.ne.s32.totalorder %s223_s11, %s4737_s16 }
  0x15   : > { %p4746_p7 = scmp.lt.s32.totalorder %s4737_s16, %s4737_s16 }
  0x16   : > { %p4728_p12 = pneg %p4947_p11 }
  0x17   : > { %p4747_p10 = por %p4746_p7, %p4745_p5 }
  0x18   : > { %p4740_p0 = pnand %p4738_p13, %p4728_p12 }
  0x1a   : > { %p4741_p3 = pneg %p4740_p0 }
  0x1c   : > { %p4748_p2 = pnand %p4747_p10, %p4741_p3 }
  0x1e   : > { %4751 = shalt.err (!%p4748_p2)
}
  0x1f   : > { %s6711_s17 = smov 64   ;;  %s6713_s18 = smov 4  }
  0x20   : > { %s6726_s2 = sld [smem:[#allocation27_spill]]  ;;  %p29_p2 = scmp.eq.s32.totalorder %s28_s15, 0 }
  0x21   : > { %p38_p9 = scmp.ne.s32.totalorder %s4844_s26, %s4840_s25  ;;  %p39_p10 = scmp.eq.s32.totalorder %s4848_s27, 0 }
  0x22   : > { %p4623_p12 = scmp.lt.s32.totalorder %s4848_s27, 2  ;;  %p6727_p0 = scmp.eq.s32.totalorder %s4919_s28, 1 }
  0x23   : > { %s4972_s21 = scalar_select %p29_p2, %s4844_s26, %s31_s14  }
  0x24   : > { %p40_p13 = por %p39_p10, %p38_p9  ;;  %p4976_p3 = por %p6727_p0, %p38_p9 }
  0x25   : > { %s248_s23 = sand.u32 1, %s4844_s26   ;;  %s3996_s29 = sshll.u32 %s4848_s27, 11 }
  0x26   : > { %4613 = dma.hbm_to_vmem [thread:$0]  (!%p4947_p11), %s6726_s2, 1152, %s223_s11, [#allocation6], %s6711_s17, %s6711_s17, %s6713_s18  }
  0x27   : > { %s6728_s22 = scalar_select %p4976_p3, 1, 0 }
  0x28   : > { %s3745_s10 = sshll.u32 %s248_s23, 7  ;;  %s4985_s19 = scalar_lea.hbm %s6703_s0, %s3996_s29 }
  0x29   : > { %s252_s11 = scalar_lea.vmem [#allocation2], %s3745_s10  ;;  %p4987_p11 = pnand %p4623_p12, %p40_p13 }
  0x2a   : > { %s259_s14 = sshll.u32 %s252_s11, 4  ;;  %s4993_s20 = scalar_lea.sflag [#allocation3], %s248_s23  ;;  %s4991_s14 = int_to_ptr.vmem [resolvable:$true] %s259_s14 }
  0x2b   : > { %s4752_s17 = scalar_lea.hbm %s4985_s19, 2048  ;;  %p4754_p7 = pneg %p4987_p11 }
  0x2c   : > { %p4753_p5 = scmp.ne.s32.totalorder %s4985_s19, %s4752_s17  ;;  %s4757_s10 = scalar_lea.hbm %s6703_s0, 4096 }
  0x2d   : > { %p4758_p10 = scmp.lt.s32.totalorder %s4985_s19, %s6703_s0  ;;  %p4759_p12 = scmp.lt.s32.totalorder %s4757_s10, %s4752_s17 }
  0x2e   : > { %p4755_p2 = pnand %p4754_p7, %p4753_p5 }
  0x2f   : > { %p4760_p13 = por %p4759_p12, %p4758_p10 }
  0x30   : > { %p4756_p9 = pneg %p4755_p2 }
  0x32   : > { %p4761_p0 = pnand %p4760_p13, %p4756_p9 }
  0x34   : > { %4764 = shalt.err (!%p4761_p0)
}
  0x35   : > { %s4765_s23 = scalar_lea.vmem %s4991_s14, 2048  ;;  %s4853_s18 = smov [#allocation2]  }
  0x36   : > { %p4766_p1 = scmp.ne.s32.totalorder %s4991_s14, %s4765_s23  ;;  %s4770_s2 = sshll.u32 %s4853_s18, 4  ;;  %s4771_s2 = int_to_ptr.vmem [resolvable:$false] %s4770_s2 }
  0x37   : > { %s4772_s29 = scalar_lea.vmem %s4771_s2, 4096  ;;  %p4773_p2 = scmp.lt.s32.totalorder %s4991_s14, %s4771_s2 }
  0x38   : > { %p4768_p6 = pnand %p4766_p1, %p4754_p7  ;;  %p4774_p3 = scmp.lt.s32.totalorder %s4772_s29, %s4765_s23 }
  0x3a   : > { %p4769_p5 = pneg %p4768_p6  ;;  %p4775_p4 = por %p4774_p3, %p4773_p2 }
  0x3c   : > { %p4776_p8 = pnand %p4775_p4, %p4769_p5 }
  0x3e   : > { %4779 = shalt.err (!%p4776_p8)
}
  0x3f   : > { %s6730_s17 = smov 4   ;;  %s6731_s12 = smov 64  }
  0x40   : > { %4617 = dma.hbm_to_vmem [thread:$0]  (!%p4987_p11), %s4985_s19, 2048, %s4991_s14, %s4993_s20, %s6731_s12, %s6731_s12, %s6730_s17  }
  0x41   : > { %p6732_p1 = scmp.ne.s32.totalorder %s6724_s9, 0 }
  0x43   : > { %271 = sbr.rel (%p6732_p1) target bundleno = 1068 (0x42c), region = 48 }
  0x48   : > { %s5020_s18 = sand.u32 1, %s4840_s25   ;;  %p6733_p4 = scmp.ne.s32.totalorder %s6722_s30, 0 }
  0x49   : > { %s3749_s2 = sshll.u32 %s5020_s18, 7  ;;  %s274_s10 = scalar_lea.sflag [#allocation3], %s5020_s18 }
  0x4a   : > { %s5026_s15 = scalar_lea.vmem [#allocation2], %s3749_s2 }
  0x4b   : > { %4823 = dma.done.wait (%p6733_p4), %s274_s10, 2048  }
  0x4c   : > { %4825 = vsyncadd (%p6733_p4), %s274_s10, 4294965248  ;;  %p6734_p6 = scmp.eq.s32.totalorder %s4919_s28, 0 }
  0x4e   : > { %4827 = dma.done.wait (%p6734_p6), [#allocation6], 1152   ;;  %p6735_p8 = pmov %p6734_p6 }
  0x4f   : > { %v4664_v0 = vld [vmem:[%s6704_s1 + $0x18] sm:$0xff]   ;;  %v4665_v1 = vld [vmem:[%s6704_s1 + $0x10] sm:$0xff]   ;;  %v4666_v2 = vld [vmem:[%s6704_s1 + $0x8] sm:$0xff]   ;;  %vm464_vm0 = vcmask 523264   ;;  %v6717_v21 = vmov 0   ;;  %vm1101_vm1 = vcmask 130048  }
  0x50   : > { %4829 = vsyncadd (%p6735_p8), [#allocation6], 4294966144  ;;  %4220 = vmatprep.subr.bf16.mxu0 %v4664_v0  ;;  %v313_v3 = vld [vmem:[%s5026_s15] sm:$0xff]   ;;  %v315_v5 = vld [vmem:[%s5026_s15 + $0x8] sm:$0xff]   ;;  %v5081_v22 = vrot.slane %v6717_v21, 1  ;;  %vm866_vm2 = vcmask 1040384  }
  0x51   : > { %4221 = vmatpush3.bf16.msra.mxu0 %v4664_v0  ;;  %4228 = vmatprep.mubr.msk.bf16.mxu0 %vm464_vm0, %v313_v3  ;;  %v4667_v4 = vld [vmem:[%s6704_s1] sm:$0xff]   ;;  %v317_v6 = vld [vmem:[%s5026_s15 + $0x10] sm:$0xff]   ;;  %v319_v7 = vld [vmem:[%s5026_s15 + $0x18] sm:$0xff]   ;;  %vm867_vm3 = vsmask.f32 256  ;;  %vm1541_vm6 = vcmask 1046528  }
  0x52   : > { %4222 = vmatprep.subr.bf16.mxu0 %v4665_v1  ;;  %v321_v8 = vld [vmem:[%s5026_s15 + $0x20] sm:$0xff]   ;;  %v323_v9 = vld [vmem:[%s5026_s15 + $0x28] sm:$0xff]   ;;  %v325_v10 = vld [vmem:[%s5026_s15 + $0x30] sm:$0xff]   ;;  %vm903_vm5 = vsmask.f32 7424  ;;  %vm3611_vm7 = vcmask 519168  }
  0x53   : > { %v327_v11 = vld [vmem:[%s5026_s15 + $0x38] sm:$0xff]   ;;  %v329_v12 = vld [vmem:[%s5026_s15 + $0x40] sm:$0xff]   ;;  %v331_v13 = vld [vmem:[%s5026_s15 + $0x48] sm:$0xff]   ;;  %s6547_s30 = scalar_lea.vmem [#allocation7], %s3749_s2  ;;  %s4029_s2 = sshll.u32 %s4919_s28, 11 }
  0x54   : > { %v333_v14 = vld [vmem:[%s5026_s15 + $0x50] sm:$0xff]   ;;  %v335_v15 = vld [vmem:[%s5026_s15 + $0x58] sm:$0xff]   ;;  %v337_v16 = vld [vmem:[%s5026_s15 + $0x60] sm:$0xff]   ;;  %s6654_s23 = scalar_lea.hbm %s6710_s7, %s4029_s2  ;;  %s3645_s28 = scalar_lea.sflag [#allocation4], %s5020_s18 }
  0x55   : > { %4223 = vmatpush3.bf16.msra.mxu0 %v4665_v1  ;;  %v339_v17 = vld [vmem:[%s5026_s15 + $0x68] sm:$0xff]   ;;  %v341_v18 = vld [vmem:[%s5026_s15 + $0x70] sm:$0xff]   ;;  %v343_v19 = vld [vmem:[%s5026_s15 + $0x78] sm:$0xff]   ;;  %p6805_p11 = scmp.ne.s32.totalorder %s6728_s22, 0  ;;  %s4855_s17 = smov [#allocation7]  }
  0x56   : > { %4224 = vmatprep.subr.bf16.mxu0 %v4666_v2  ;;  %v4684_v20 = vld [vmem:[#allocation5 + $0x8] sm:$0xff]   ;;  %v5085_v23 = vld [vmem:[#allocation5 + $0x10] sm:$0xff]   ;;  %v5088_v24 = vld [vmem:[#allocation5] sm:$0xff]   ;;  %s4784_s12 = sshll.u32 %s4855_s17, 4  ;;  %s4785_s12 = int_to_ptr.vmem [resolvable:$false] %s4784_s12 }
  0x57   : > { %4600 = vmatprep.subr.bf16.mxu1 %v4684_v20  ;;  %v5094_v26 = vld [vmem:[%s6707_s4] ss:$0 sm:$0xff]  ;;  %vm5102_vm4 = vmand %vm866_vm2, %vm867_vm3  ;;  %s4786_s10 = scalar_lea.vmem %s4785_s12, 4096 }
  0x58   : > { %4601 = vmatpush3.bf16.msra.mxu1 %v4684_v20 }
  0x59   : > { %4225 = vmatpush3.bf16.msra.mxu0 %v4666_v2  ;;  %4294 = vmatprep.subr.bf16.mxu1 %v5088_v24 }
  0x5a   : > { %4226 = vmatprep.subr.bf16.mxu0 %v4667_v4 }
  0x5d   : > { %4227 = vmatpush3.bf16.msra.mxu0 %v4667_v4 }
  0x5e   : > { %4260 = vmatprep.subr.bf16.mxu0 %v4684_v20 }
  0x60   : > { %4229 = vmatmul.mubr.msk.bf16.vlgmr.msra.gmra.mxu0 %vm464_vm0, %v315_v5 }
  0x61   : > { %4232 = vmatprep.mubr.msk.bf16.mxu0 %vm464_vm0, %v317_v6  ;;  %4261 = vmatpush3.bf16.msra.mxu0 %v4684_v20 }
  0x62   : > { %4328 = vmatprep.subr.bf16.mxu0 %v5085_v23 }
  0x68   : > { %4233 = vmatmul.mubr.msk.bf16.gmra.mxu0 %vm464_vm0, %v319_v7 }
  0x69   : > { %4236 = vmatprep.mubr.msk.bf16.mxu0 %vm464_vm0, %v321_v8 }
  0x70   : > { %4237 = vmatmul.mubr.msk.bf16.gmra.mxu0 %vm464_vm0, %v323_v9 }
  0x71   : > { %4240 = vmatprep.mubr.msk.bf16.mxu0 %vm464_vm0, %v325_v10 }
  0x78   : > { %4241 = vmatmul.mubr.msk.bf16.gmra.mxu0 %vm464_vm0, %v327_v11 }
  0x79   : > { %4244 = vmatprep.mubr.msk.bf16.mxu0 %vm464_vm0, %v329_v12 }
  0x80   : > { %4245 = vmatmul.mubr.msk.bf16.gmra.mxu0 %vm464_vm0, %v331_v13 }
  0x81   : > { %4248 = vmatprep.mubr.msk.bf16.mxu0 %vm464_vm0, %v333_v14 }
  0x88   : > { %4249 = vmatmul.mubr.msk.bf16.gmra.mxu0 %vm464_vm0, %v335_v15 }
  0x89   : > { %4252 = vmatprep.mubr.msk.bf16.mxu0 %vm464_vm0, %v337_v16 }
  0x90   : > { %4253 = vmatmul.mubr.msk.bf16.gmra.mxu0 %vm464_vm0, %v339_v17 }
  0x91   : > { %4256 = vmatprep.mubr.msk.bf16.mxu0 %vm464_vm0, %v341_v18 }
  0x98   : > { %4257 = vmatmul.mubr.msk.bf16.gmra.mxu0 %vm464_vm0, %v343_v19 }
  0x99   : > { %4262 = vmatprep.mubr.msk.bf16.mxu0 %vm1101_vm1, %v5081_v22 }
 0x120   : > { %v4230_v25 = vpop.f32.mrf.mxu0 }
 0x121   : > { %v556_v28 = vadd.f32 %v4230_v25, %v5094_v26 }
 0x122   : > { %v547_v27 = vpop.f32.mrf.mxu0 }
 0x123   : > { %v548_v30 = vadd.f32 %v5094_v26, %v547_v27  ;;  %v676_v33 = vmax.f32 %v556_v28, 0.0 }
 0x124   : > { %v4231_v29 = vpop.f32.mrf.mxu0 }
 0x125   : > { %v559_v31 = vadd.f32 %v4231_v29, %v5094_v26  ;;  %v674_v37 = vmax.f32 %v548_v30, 0.0 }
 0x126   : > { %v550_v32 = vpop.f32.mrf.mxu0 }
 0x127   : > { %v677_v34 = vmax.f32 %v559_v31, 0.0  ;;  %v551_v35 = vadd.f32 %v5094_v26, %v550_v32 }
 0x128   : > { %v4234_v36 = vpop.f32.mrf.mxu0 }
 0x129   : > { %v707_v38 = vpack.c.bf16 %v677_v34, %v676_v33  ;;  %v675_v39 = vmax.f32 %v551_v35, 0.0  ;;  %v572_v40 = vadd.f32 %v4234_v36, %v5094_v26 }
 0x12a   : > { %v563_v41 = vpop.f32.mrf.mxu0 }
 0x12b   : > { %v730_v42 = vshrl.u32 %v707_v38, 16  ;;  %v706_v43 = vpack.c.bf16 %v675_v39, %v674_v37  ;;  %v733_v46 = vshll.u32 %v707_v38, 16  ;;  %v680_v50 = vmax.f32 %v572_v40, 0.0 }
 0x12c   : > { %v4235_v44 = vpop.f32.mrf.mxu0  ;;  %v564_v51 = vadd.f32 %v5094_v26, %v563_v41 }
 0x12d   : > { %v732_v45 = vrot.slane %v730_v42, 7  ;;  %v723_v47 = vshrl.u32 %v706_v43, 16  ;;  %v575_v48 = vadd.f32 %v4235_v44, %v5094_v26  ;;  %v726_v55 = vshll.u32 %v706_v43, 16 }
 0x12e   : > { %v566_v52 = vpop.f32.mrf.mxu0  ;;  %v678_v0 = vmax.f32 %v564_v51, 0.0 }
 0x12f   : > { %v735_v53 = vor.u32 %v733_v46, %v732_v45  ;;  %v725_v54 = vrot.slane %v723_v47, 7  ;;  %v681_v56 = vmax.f32 %v575_v48, 0.0  ;;  %v567_v57 = vadd.f32 %v5094_v26, %v566_v52  ;;  %v5139_v47 = vld [vmem:[#allocation5 + $0x20] sm:$0xff]  }
 0x130   : > { %v4238_v58 = vpop.f32.mrf.mxu0  ;;  %v5110_v59 = vsel %vm5102_vm4, %v732_v45, 0 }
 0x131   : > { %v728_v60 = vor.u32 %v726_v55, %v725_v54  ;;  %v5114_v61 = vsel %vm5102_vm4, %v725_v54, 0  ;;  %v709_v62 = vpack.c.bf16 %v681_v56, %v680_v50  ;;  %v679_v1 = vmax.f32 %v567_v57, 0.0 }
 0x132   : > { %v920_v63 = vshll.u32 %v5114_v61, 16  ;;  %v588_v2 = vadd.f32 %v4238_v58, %v5094_v26  ;;  %v579_v3 = vpop.f32.mrf.mxu0  ;;  %v5120_v4 = vsel %vm5102_vm4, 0, %v735_v53  ;;  %v932_v10 = vshll.u32 %v5110_v59, 16 }
 0x133   : > { %v5124_v5 = vsel %vm5102_vm4, 0, %v728_v60  ;;  %v744_v6 = vshrl.u32 %v709_v62, 16  ;;  %v747_v7 = vshll.u32 %v709_v62, 16  ;;  %v708_v8 = vpack.c.bf16 %v679_v1, %v678_v0 }
 0x134   : > { %v4239_v9 = vpop.f32.mrf.mxu0  ;;  %v580_v12 = vadd.f32 %v5094_v26, %v579_v3  ;;  %v915_v14 = vshll.u32 %v5124_v5, 16  ;;  %v922_v15 = vrot.slane %v920_v63, 1  ;;  %v684_v17 = vmax.f32 %v588_v2, 0.0 }
 0x135   : > { %v746_v11 = vrot.slane %v744_v6, 7  ;;  %v591_v13 = vadd.f32 %v4239_v9, %v5094_v26  ;;  %v737_v16 = vshrl.u32 %v708_v8, 16  ;;  %v927_v19 = vshll.u32 %v5120_v4, 16 }
 0x136   : > { %v582_v18 = vpop.f32.mrf.mxu0  ;;  %v740_v20 = vshll.u32 %v708_v8, 16  ;;  %v913_v28 = vshrl.u32 %v5124_v5, 16  ;;  %v917_v31 = vrot.slane %v915_v14, 1  ;;  %v925_v32 = vshrl.u32 %v5120_v4, 16 }
 0x137   : > { %v685_v25 = vmax.f32 %v591_v13, 0.0  ;;  %v583_v27 = vadd.f32 %v5094_v26, %v582_v18  ;;  %v739_v29 = vrot.slane %v737_v16, 7  ;;  %v929_v33 = vrot.slane %v927_v19, 1 }
 0x138   : > { %v4242_v30 = vpop.f32.mrf.mxu0  ;;  %v749_v34 = vor.u32 %v747_v7, %v746_v11  ;;  %v682_v35 = vmax.f32 %v580_v12, 0.0  ;;  %v918_v40 = vor.u32 %v917_v31, %v913_v28  ;;  %v934_v42 = vrot.slane %v932_v10, 1 }
 0x139   : > { %v711_v36 = vpack.c.bf16 %v685_v25, %v684_v17  ;;  %v683_v37 = vmax.f32 %v583_v27, 0.0  ;;  %v742_v38 = vor.u32 %v740_v20, %v739_v29  ;;  %v930_v41 = vor.u32 %v929_v33, %v925_v32 }
 0x13a   : > { %v595_v39 = vpop.f32.mrf.mxu0  ;;  %v5136_v43 = vsel %vm5102_vm4, %v739_v29, 0  ;;  %v604_v46 = vadd.f32 %v4242_v30, %v5094_v26  ;;  %v5143_v48 = vsel %vm5102_vm4, %v746_v11, 0  ;;  %v5151_v52 = vsel %vm903_vm5, %v918_v40, %v922_v15 }
 0x13b   : > { %v758_v44 = vshrl.u32 %v711_v36, 16  ;;  %v710_v45 = vpack.c.bf16 %v683_v37, %v682_v35  ;;  %v5147_v50 = vsel %vm5102_vm4, 0, %v742_v38  ;;  %v596_v51 = vadd.f32 %v5094_v26, %v595_v39  ;;  %4263 = vmatmul.mubr.msk.bf16.vlgmr.msra.gmra.mxu0 %vm1101_vm1, %v5151_v52 }
 0x13c   : > { %v4243_v53 = vpop.f32.mrf.mxu0  ;;  %v5157_v57 = vsel %vm903_vm5, %v930_v41, %v934_v42  ;;  %v5161_v58 = vsel %vm5102_vm4, 0, %v749_v34  ;;  %v761_v60 = vshll.u32 %v711_v36, 16  ;;  %v939_v63 = vshll.u32 %v5147_v50, 16  ;;  %4329 = vmatpush3.bf16.msra.mxu0 %v5085_v23 }
 0x13d   : > { %v760_v54 = vrot.slane %v758_v44, 7  ;;  %v751_v55 = vshrl.u32 %v710_v45, 16  ;;  %v607_v56 = vadd.f32 %v4243_v53, %v5094_v26  ;;  %4266 = vmatprep.mubr.msk.bf16.mxu0 %vm1101_vm1, %v5157_v57  ;;  %v944_v0 = vshll.u32 %v5136_v43, 16  ;;  %4396 = vmatprep.subr.bf16.mxu0 %v5139_v47 }
 0x13e   : > { %v598_v62 = vpop.f32.mrf.mxu0  ;;  %v754_v2 = vshll.u32 %v710_v45, 16  ;;  %v688_v3 = vmax.f32 %v604_v46, 0.0  ;;  %v937_v10 = vshrl.u32 %v5147_v50, 16  ;;  %v941_v11 = vrot.slane %v939_v63, 1 }
 0x13f   : > { %v753_v1 = vrot.slane %v751_v55, 7  ;;  %v689_v6 = vmax.f32 %v607_v56, 0.0  ;;  %v763_v7 = vor.u32 %v761_v60, %v760_v54  ;;  %v599_v8 = vadd.f32 %v5094_v26, %v598_v62 }
 0x140   : > { %v4246_v9 = vpop.f32.mrf.mxu0  ;;  %v686_v13 = vmax.f32 %v596_v51, 0.0  ;;  %v946_v15 = vrot.slane %v944_v0, 1  ;;  %v942_v18 = vor.u32 %v941_v11, %v937_v10  ;;  %v951_v19 = vshll.u32 %v5161_v58, 16 }
 0x141   : > { %v756_v12 = vor.u32 %v754_v2, %v753_v1  ;;  %v713_v14 = vpack.c.bf16 %v689_v6, %v688_v3  ;;  %v687_v16 = vmax.f32 %v599_v8, 0.0  ;;  %v620_v23 = vadd.f32 %v4246_v9, %v5094_v26 }
 0x142   : > { %v611_v17 = vpop.f32.mrf.mxu0  ;;  %v5175_v20 = vsel %vm5102_vm4, %v760_v54, 0  ;;  %v949_v27 = vshrl.u32 %v5161_v58, 16  ;;  %v1548_v28 = vrot.slane %v5110_v59, 1  ;;  %v5181_v29 = vsel %vm5102_vm4, 0, %v763_v7 }
 0x143   : > { %v772_v25 = vshrl.u32 %v713_v14, 16  ;;  %v712_v30 = vpack.c.bf16 %v687_v16, %v686_v13  ;;  %v5184_v31 = vsel %vm903_vm5, %v942_v18, %v946_v15  ;;  %v953_v33 = vrot.slane %v951_v19, 1 }
 0x144   : > { %v4247_v32 = vpop.f32.mrf.mxu0  ;;  %v5188_v34 = vsel %vm5102_vm4, %v753_v1, 0  ;;  %v612_v35 = vadd.f32 %v5094_v26, %v611_v17  ;;  %4267 = vmatmul.mubr.msk.bf16.gmra.mxu0 %vm1101_vm1, %v5184_v31  ;;  %v956_v37 = vshll.u32 %v5143_v48, 16  ;;  %v5197_v38 = vsel %vm5102_vm4, 0, %v756_v12 }
 0x145   : > { %v623_v36 = vadd.f32 %v4247_v32, %v5094_v26  ;;  %v765_v39 = vshrl.u32 %v712_v30, 16  ;;  %v692_v40 = vmax.f32 %v620_v23, 0.0  ;;  %v954_v41 = vor.u32 %v953_v33, %v949_v27 }
 0x146   : > { %v614_v42 = vpop.f32.mrf.mxu0  ;;  %v774_v44 = vrot.slane %v772_v25, 7  ;;  %v768_v45 = vshll.u32 %v712_v30, 16  ;;  %v958_v51 = vrot.slane %v956_v37, 1  ;;  %v975_v56 = vshll.u32 %v5181_v29, 16 }
 0x147   : > { %v693_v46 = vmax.f32 %v623_v36, 0.0  ;;  %v767_v53 = vrot.slane %v765_v39, 7  ;;  %v615_v54 = vadd.f32 %v5094_v26, %v614_v42  ;;  %v980_v60 = vshll.u32 %v5175_v20, 16 }
 0x148   : > { %v4250_v55 = vpop.f32.mrf.mxu0  ;;  %v775_v62 = vshll.u32 %v713_v14, 16  ;;  %v690_v63 = vmax.f32 %v612_v35, 0.0  ;;  %v5203_v1 = vsel %vm903_vm5, %v954_v41, %v958_v51  ;;  %v973_v6 = vshrl.u32 %v5181_v29, 16 }
 0x149   : > { %v715_v0 = vpack.c.bf16 %v693_v46, %v692_v40  ;;  %v770_v2 = vor.u32 %v768_v45, %v767_v53  ;;  %4270 = vmatprep.mubr.msk.bf16.mxu0 %vm1101_vm1, %v5203_v1  ;;  %v691_v3 = vmax.f32 %v615_v54, 0.0  ;;  %v977_v7 = vrot.slane %v975_v56, 1 }
 0x14a   : > { %v627_v8 = vpop.f32.mrf.mxu0  ;;  %v1545_v9 = vrot.slane %v5114_v61, 1  ;;  %v777_v10 = vor.u32 %v775_v62, %v774_v44  ;;  %v5211_v11 = vsel %vm5102_vm4, %v774_v44, 0  ;;  %v636_v14 = vadd.f32 %v4250_v55, %v5094_v26 }
 0x14b   : > { %v786_v12 = vshrl.u32 %v715_v0, 16  ;;  %v714_v13 = vpack.c.bf16 %v691_v3, %v690_v63  ;;  %v978_v15 = vor.u32 %v977_v7, %v973_v6  ;;  %v982_v16 = vrot.slane %v980_v60, 1 }
 0x14c   : > { %v4251_v23 = vpop.f32.mrf.mxu0  ;;  %v789_v18 = vshll.u32 %v715_v0, 16  ;;  %v963_v19 = vshll.u32 %v5197_v38, 16  ;;  %v968_v25 = vshll.u32 %v5188_v34, 16  ;;  %v5218_v27 = vsel %vm5102_vm4, 0, %v770_v2 }
 0x14d   : > { %v788_v17 = vrot.slane %v786_v12, 7  ;;  %v779_v30 = vshrl.u32 %v714_v13, 16  ;;  %v5221_v32 = vsel %vm903_vm5, %v978_v15, %v982_v16  ;;  %v628_v33 = vadd.f32 %v5094_v26, %v627_v8 }
 0x14e   : > { %v630_v35 = vpop.f32.mrf.mxu0  ;;  %v5226_v36 = vsel %vm5102_vm4, 0, %v777_v10  ;;  %v5230_v37 = vsel %vm5102_vm4, %v767_v53, 0  ;;  %4274 = vmatprep.mubr.msk.bf16.mxu1 %vm1101_vm1, %v5221_v32  ;;  %v961_v39 = vshrl.u32 %v5197_v38, 16  ;;  %v965_v40 = vrot.slane %v963_v19, 1 }
 0x14f   : > { %v791_v41 = vor.u32 %v789_v18, %v788_v17  ;;  %v696_v42 = vmax.f32 %v636_v14, 0.0  ;;  %v639_v44 = vadd.f32 %v4251_v23, %v5094_v26  ;;  %v631_v45 = vadd.f32 %v5094_v26, %v630_v35 }
 0x150   : > { %v4254_v46 = vpop.f32.mrf.mxu0  ;;  %v781_v51 = vrot.slane %v779_v30, 7  ;;  %v966_v54 = vor.u32 %v965_v40, %v961_v39  ;;  %v970_v55 = vrot.slane %v968_v25, 1  ;;  %v987_v56 = vshll.u32 %v5218_v27, 16 }
 0x151   : > { %v694_v53 = vmax.f32 %v628_v33, 0.0  ;;  %v697_v60 = vmax.f32 %v639_v44, 0.0  ;;  %v695_v62 = vmax.f32 %v631_v45, 0.0  ;;  %v652_v63 = vadd.f32 %v4254_v46, %v5094_v26 }
 0x152   : > { %v643_v0 = vpop.f32.mrf.mxu0  ;;  %v782_v2 = vshll.u32 %v714_v13, 16  ;;  %v5240_v3 = vsel %vm903_vm5, %v966_v54, %v970_v55  ;;  %v985_v6 = vshrl.u32 %v5218_v27, 16  ;;  %v989_v7 = vrot.slane %v987_v56, 1  ;;  %v5261_v55 = vld [vmem:[#allocation5 + $0x18] sm:$0xff]  }
 0x153   : > { %v5245_v8 = vsel %vm5102_vm4, %v788_v17, 0  ;;  %4271 = vmatmul.mubr.msk.bf16.gmra.mxu0 %vm1101_vm1, %v5240_v3  ;;  %v717_v10 = vpack.c.bf16 %v697_v60, %v696_v42  ;;  %v716_v12 = vpack.c.bf16 %v695_v62, %v694_v53  ;;  %v992_v14 = vshll.u32 %v5230_v37, 16 }
 0x154   : > { %v4255_v15 = vpop.f32.mrf.mxu0  ;;  %v5252_v13 = vsel %vm5102_vm4, 0, %v791_v41  ;;  %v784_v16 = vor.u32 %v782_v2, %v781_v51  ;;  %4330 = vmatprep.mubr.msk.bf16.mxu0 %vm1101_vm1, %v5081_v22  ;;  %v990_v23 = vor.u32 %v989_v7, %v985_v6  ;;  %v700_v25 = vmax.f32 %v652_v63, 0.0 }
 0x155   : > { %v655_v17 = vadd.f32 %v4255_v15, %v5094_v26  ;;  %v800_v18 = vshrl.u32 %v717_v10, 16  ;;  %v793_v19 = vshrl.u32 %v716_v12, 16  ;;  %v1544_v30 = vrot.slane %v5124_v5, 1 }
 0x156   : > { %v646_v33 = vpop.f32.mrf.mxu0  ;;  %v803_v35 = vshll.u32 %v717_v10, 16  ;;  %v644_v39 = vadd.f32 %v5094_v26, %v643_v0  ;;  %v994_v40 = vrot.slane %v992_v14, 1  ;;  %v999_v45 = vshll.u32 %v5226_v36, 16  ;;  %v5283_v10 = vld [vmem:[#allocation5 + $0x30] sm:$0xff]  }
 0x157   : > { %v701_v42 = vmax.f32 %v655_v17, 0.0  ;;  %v802_v41 = vrot.slane %v800_v18, 7  ;;  %v795_v44 = vrot.slane %v793_v19, 7  ;;  %v1004_v46 = vshll.u32 %v5211_v11, 16 }
 0x158   : > { %v4258_v54 = vpop.f32.mrf.mxu0  ;;  %v5264_v56 = vsel %vm903_vm5, %v990_v23, %v994_v40  ;;  %v1547_v60 = vrot.slane %v5120_v4, 1  ;;  %v647_v62 = vadd.f32 %v5094_v26, %v646_v33  ;;  %v5270_v63 = vsel %vm5102_vm4, 0, %v784_v16 }
 0x159   : > { %v719_v53 = vpack.c.bf16 %v701_v42, %v700_v25  ;;  %v5274_v0 = vsel %vm5102_vm4, %v781_v51, 0  ;;  %v796_v2 = vshll.u32 %v716_v12, 16  ;;  %4275 = vmatmul.mubr.msk.bf16.vlgmr.msra.gmra.mxu1 %vm1101_vm1, %v5264_v56  ;;  %v5281_v6 = vsel %vm1541_vm6, %v1544_v30, %v1545_v9 }
 0x15a   : > { %v659_v7 = vpop.f32.mrf.mxu0  ;;  %v805_v14 = vor.u32 %v803_v35, %v802_v41  ;;  %4295 = vmatpush3.bf16.msra.mxu1 %v5088_v24  ;;  %v997_v16 = vshrl.u32 %v5226_v36, 16  ;;  %v1001_v51 = vrot.slane %v999_v45, 1  ;;  %v698_v12 = vmax.f32 %v644_v39, 0.0 }
 0x15b   : > { %v814_v15 = vshrl.u32 %v719_v53, 16  ;;  %v798_v23 = vor.u32 %v796_v2, %v795_v44  ;;  %4331 = vmatmul.mubr.msk.bf16.vlgmr.msra.gmra.mxu0 %vm1101_vm1, %v5281_v6  ;;  %v5292_v61 = vsel %vm1541_vm6, %v1547_v60, %v1548_v28  ;;  %v699_v9 = vmax.f32 %v647_v62, 0.0  ;;  %4362 = vmatprep.subr.bf16.mxu1 %v5261_v55 }
 0x15c   : > { %v5297_v24 = vsel %vm5102_vm4, %v802_v41, 0  ;;  %v1002_v18 = vor.u32 %v1001_v51, %v997_v16  ;;  %v1006_v19 = vrot.slane %v1004_v46, 1  ;;  %4334 = vmatprep.mubr.msk.bf16.mxu0 %vm1101_vm1, %v5292_v61  ;;  %4397 = vmatpush3.bf16.msra.mxu0 %v5139_v47  ;;  %v668_v59 = vadd.f32 %v4258_v54, %v5094_v26  ;;  %v4259_v33 = vpop.f32.mrf.mxu0 }
 0x15d   : > { %v816_v17 = vrot.slane %v814_v15, 7  ;;  %v718_v25 = vpack.c.bf16 %v699_v9, %v698_v12  ;;  %v1011_v28 = vshll.u32 %v5270_v63, 16  ;;  %v1016_v30 = vshll.u32 %v5274_v0, 16  ;;  %4464 = vmatprep.subr.bf16.mxu0 %v5283_v10 }
 0x15e   : > { %v5308_v35 = vsel %vm5102_vm4, 0, %v805_v14  ;;  %v5312_v39 = vsel %vm5102_vm4, %v795_v44, 0  ;;  %v817_v40 = vshll.u32 %v719_v53, 16  ;;  %v5315_v47 = vsel %vm903_vm5, %v1002_v18, %v1006_v19  ;;  %v662_v16 = vpop.f32.mrf.mxu0 }
 0x15f   : > { %v5319_v42 = vsel %vm5102_vm4, 0, %v798_v23  ;;  %4278 = vmatprep.mubr.msk.bf16.mxu1 %vm1101_vm1, %v5315_v47  ;;  %v807_v41 = vshrl.u32 %v718_v25, 16  ;;  %v1009_v45 = vshrl.u32 %v5270_v63, 16  ;;  %v1013_v46 = vrot.slane %v1011_v28, 1 }
 0x160   : > { %v819_v54 = vor.u32 %v817_v40, %v816_v17  ;;  %v660_v60 = vadd.f32 %v5094_v26, %v659_v7  ;;  %v1550_v44 = vrot.slane %v5147_v50, 1  ;;  %v1551_v53 = vrot.slane %v5136_v43, 1 }
 0x161   : > { %v704_v62 = vmax.f32 %v668_v59, 0.0  ;;  %v1014_v2 = vor.u32 %v1013_v46, %v1009_v45  ;;  %v1018_v14 = vrot.slane %v1016_v30, 1  ;;  %v671_v15 = vadd.f32 %v4259_v33, %v5094_v26 }
 0x162   : > { %v5329_v51 = vsel %vm1541_vm6, %v1550_v44, %v1551_v53  ;;  %v1023_v23 = vshll.u32 %v5252_v13, 16  ;;  %v1028_v12 = vshll.u32 %v5245_v8, 16  ;;  %v1553_v9 = vrot.slane %v5161_v58, 1 }
 0x163   : > { %v809_v7 = vrot.slane %v807_v41, 7  ;;  %v810_v18 = vshll.u32 %v718_v25, 16  ;;  %v5335_v19 = vsel %vm903_vm5, %v1014_v2, %v1018_v14  ;;  %4335 = vmatmul.mubr.msk.bf16.gmra.mxu0 %vm1101_vm1, %v5329_v51  ;;  %v705_v43 = vmax.f32 %v671_v15, 0.0 }
 0x164   : > { %4279 = vmatmul.mubr.msk.bf16.gmra.mxu1 %vm1101_vm1, %v5335_v19  ;;  %v1021_v59 = vshrl.u32 %v5252_v13, 16  ;;  %v1025_v28 = vrot.slane %v1023_v23, 1  ;;  %v1554_v30 = vrot.slane %v5143_v48, 1  ;;  %v663_v33 = vadd.f32 %v5094_v26, %v662_v16 }
 0x165   : > { %v702_v40 = vmax.f32 %v660_v60, 0.0  ;;  %v721_v41 = vpack.c.bf16 %v705_v43, %v704_v62  ;;  %v1030_v25 = vrot.slane %v1028_v12, 1  ;;  %v1035_v45 = vshll.u32 %v5319_v42, 16 }
 0x166   : > { %v1026_v46 = vor.u32 %v1025_v28, %v1021_v59  ;;  %v5346_v44 = vsel %vm1541_vm6, %v1553_v9, %v1554_v30  ;;  %v703_v53 = vmax.f32 %v663_v33, 0.0  ;;  %v1040_v2 = vshll.u32 %v5312_v39, 16 }
 0x167   : > { %v812_v14 = vor.u32 %v810_v18, %v809_v7  ;;  %4338 = vmatprep.mubr.msk.bf16.mxu0 %vm1101_vm1, %v5346_v44  ;;  %v1033_v48 = vshrl.u32 %v5319_v42, 16  ;;  %v1037_v15 = vrot.slane %v1035_v45, 1  ;;  %v1556_v26 = vrot.slane %v5197_v38, 1 }
 0x168   : > { %v5355_v60 = vsel %vm5102_vm4, %v816_v17, 0  ;;  %v5358_v62 = vsel %vm903_vm5, %v1026_v46, %v1030_v25  ;;  %v720_v16 = vpack.c.bf16 %v703_v53, %v702_v40  ;;  %v1557_v23 = vrot.slane %v5188_v34, 1 }
 0x169   : > { %v5363_v12 = vsel %vm5102_vm4, %v809_v7, 0  ;;  %4282 = vmatprep.mubr.msk.bf16.mxu1 %vm1101_vm1, %v5358_v62  ;;  %v1038_v9 = vor.u32 %v1037_v15, %v1033_v48  ;;  %v1042_v18 = vrot.slane %v1040_v2, 1  ;;  %v1047_v43 = vshll.u32 %v5308_v35, 16 }
 0x16a   : > { %v828_v59 = vshrl.u32 %v721_v41, 16  ;;  %v821_v17 = vshrl.u32 %v720_v16, 16  ;;  %v5369_v28 = vsel %vm1541_vm6, %v1556_v26, %v1557_v23  ;;  %v1052_v30 = vshll.u32 %v5297_v24, 16 }
 0x16b   : > { %v5374_v34 = vsel %vm5102_vm4, 0, %v812_v14  ;;  %v5377_v7 = vsel %vm903_vm5, %v1038_v9, %v1042_v18  ;;  %4339 = vmatmul.mubr.msk.bf16.gmra.mxu0 %vm1101_vm1, %v5369_v28  ;;  %v1045_v33 = vshrl.u32 %v5308_v35, 16  ;;  %v1049_v40 = vrot.slane %v1047_v43, 1 }
 0x16c   : > { %v5384_v25 = vsel %vm5102_vm4, 0, %v819_v54  ;;  %v823_v45 = vrot.slane %v821_v17, 7  ;;  %v824_v46 = vshll.u32 %v720_v16, 16  ;;  %4283 = vmatmul.mubr.msk.bf16.gmra.mxu1 %vm1101_vm1, %v5377_v7  ;;  %v1559_v53 = vrot.slane %v5181_v29, 1 }
 0x16d   : > { %v831_v2 = vshll.u32 %v721_v41, 16  ;;  %v1050_v14 = vor.u32 %v1049_v40, %v1045_v33  ;;  %v1054_v48 = vrot.slane %v1052_v30, 1  ;;  %v1560_v15 = vrot.slane %v5175_v20, 1 }
 0x16e   : > { %v830_v26 = vrot.slane %v828_v59, 7  ;;  %v826_v23 = vor.u32 %v824_v46, %v823_v45  ;;  %v1059_v9 = vshll.u32 %v5374_v34, 16  ;;  %v1064_v18 = vshll.u32 %v5363_v12, 16 }
 0x16f   : > { %v5393_v54 = vsel %vm903_vm5, %v1050_v14, %v1054_v48  ;;  %v5396_v16 = vsel %vm1541_vm6, %v1559_v53, %v1560_v15  ;;  %v1057_v43 = vshrl.u32 %v5374_v34, 16  ;;  %v1562_v41 = vrot.slane %v5218_v27, 1 }
 0x170   : > { %v5402_v17 = vsel %vm5102_vm4, 0, %v826_v23  ;;  %v5406_v20 = vsel %vm5102_vm4, %v823_v45, 0  ;;  %4286 = vmatprep.mubr.msk.bf16.mxu1 %vm1101_vm1, %v5393_v54  ;;  %4342 = vmatprep.mubr.msk.bf16.mxu0 %vm1101_vm1, %v5396_v16  ;;  %v1061_v59 = vrot.slane %v1059_v9, 1  ;;  %v1563_v30 = vrot.slane %v5230_v37, 1 }
 0x171   : > { %v1066_v33 = vrot.slane %v1064_v18, 1  ;;  %v1071_v40 = vshll.u32 %v5384_v25, 16  ;;  %v1076_v46 = vshll.u32 %v5355_v60, 16  ;;  %v1565_v53 = vrot.slane %v5226_v36, 1 }
 0x172   : > { %v1062_v14 = vor.u32 %v1061_v59, %v1057_v43  ;;  %v5417_v45 = vsel %vm1541_vm6, %v1562_v41, %v1563_v30  ;;  %v1566_v48 = vrot.slane %v5211_v11, 1  ;;  %v1083_v15 = vshll.u32 %v5402_v17, 16 }
 0x173   : > { %v833_v23 = vor.u32 %v831_v2, %v830_v26  ;;  %4343 = vmatmul.mubr.msk.bf16.gmra.mxu0 %vm1101_vm1, %v5417_v45  ;;  %v1069_v37 = vshrl.u32 %v5384_v25, 16  ;;  %v1073_v9 = vrot.slane %v1071_v40, 1  ;;  %v1081_v18 = vshrl.u32 %v5402_v17, 16 }
 0x174   : > { %v5426_v21 = vsel %vm903_vm5, %v1062_v14, %v1066_v33  ;;  %v5429_v43 = vsel %vm1541_vm6, %v1565_v53, %v1566_v48  ;;  %v1085_v41 = vrot.slane %v1083_v15, 1  ;;  %v1088_v11 = vshll.u32 %v5406_v20, 16 }
 0x175   : > { %4287 = vmatmul.mubr.msk.bf16.gmra.mxu1 %vm1101_vm1, %v5426_v21  ;;  %v1074_v2 = vor.u32 %v1073_v9, %v1069_v37  ;;  %v1078_v59 = vrot.slane %v1076_v46, 1  ;;  %4346 = vmatprep.mubr.msk.bf16.mxu0 %vm1101_vm1, %v5429_v43  ;;  %v1568_v40 = vrot.slane %v5270_v63, 1  ;;  %v1571_v53 = vrot.slane %v5252_v13, 1 }
 0x176   : > { %v1086_v30 = vor.u32 %v1085_v41, %v1081_v18  ;;  %v5443_v14 = vsel %vm5102_vm4, 0, %v833_v23  ;;  %v5447_v48 = vsel %vm5102_vm4, %v830_v26, 0  ;;  %v1090_v46 = vrot.slane %v1088_v11, 1 }
 0x177   : > { %v5438_v33 = vsel %vm903_vm5, %v1074_v2, %v1078_v59  ;;  %v1569_v15 = vrot.slane %v5274_v0, 1  ;;  %v1572_v37 = vrot.slane %v5245_v8, 1  ;;  %v2263_v23 = vrot.slane %v5447_v48, 1 }
 0x178   : > { %4290 = vmatprep.mubr.msk.bf16.mxu1 %vm1101_vm1, %v5438_v33  ;;  %v5454_v9 = vsel %vm903_vm5, %v1086_v30, %v1090_v46  ;;  %v2262_v26 = vrot.slane %v5443_v14, 1  ;;  %v6739_v0 = vmov 0   ;;  %v1574_v41 = vrot.slane %v5319_v42, 1 }
 0x179   : > { %6738 = vst [vmem:[#allocation11_spill] sm:$0xff] %v5454_v9  ;;  %v5457_v18 = vsel %vm1541_vm6, %v1568_v40, %v1569_v15  ;;  %v5463_v49 = vsel %vm1541_vm6, %v1571_v53, %v1572_v37  ;;  %v1577_v11 = vrot.slane %v5308_v35, 1  ;;  %v1575_v2 = vrot.slane %v5312_v39, 1  ;;  %v4689_v53 = vld [vmem:[#allocation5 + $0x28] sm:$0xff]  }
 0x17a   : > { %v5471_v8 = vsel %vm1541_vm6, %v2262_v26, %v2263_v23  ;;  %v1578_v59 = vrot.slane %v5297_v24, 1  ;;  %v1580_v24 = vrot.slane %v5374_v34, 1  ;;  %v1583_v39 = vrot.slane %v5384_v25, 1  ;;  %v4692_v26 = vld [vmem:[#allocation5 + $0x40] sm:$0xff]  }
 0x17b   : > { %4347 = vmatmul.mubr.msk.bf16.gmra.mxu0 %vm1101_vm1, %v5457_v18  ;;  %v5479_v30 = vsel %vm1541_vm6, %v1574_v41, %v1575_v2  ;;  %v1581_v46 = vrot.slane %v5363_v12, 1  ;;  %v1584_v15 = vrot.slane %v5355_v60, 1  ;;  %v1586_v60 = vrot.slane %v5402_v17, 1 }
 0x17c   : > { %4350 = vmatprep.mubr.msk.bf16.mxu0 %vm1101_vm1, %v5463_v49  ;;  %v5484_v40 = vsel %vm1541_vm6, %v1577_v11, %v1578_v59  ;;  %v1587_v12 = vrot.slane %v5406_v20, 1  ;;  %v2051_v41 = vshll.u32 %v5447_v48, 16 }
 0x17d   : > { %4291 = vmatmul.mubr.msk.bf16.gmra.mxu1 %vm1101_vm1, %v5454_v9  ;;  %v5498_v37 = vsel %vm1541_vm6, %v1580_v24, %v1581_v46 }
 0x17e   : > { %4296 = vmatprep.mubr.bf16.mxu1 %v6739_v0  ;;  %v5514_v23 = vsel %vm1541_vm6, %v1586_v60, %v1587_v12  ;;  %v2053_v2 = vrot.slane %v2051_v41, 1 }
 0x183   : > { %4351 = vmatmul.mubr.msk.bf16.gmra.mxu0 %vm1101_vm1, %v5479_v30 }
 0x184   : > { %4354 = vmatprep.mubr.msk.bf16.mxu0 %vm1101_vm1, %v5484_v40 }
 0x185   : > { %4297 = vmatmul.mubr.msk.bf16.vlgmr.msra.gmra.mxu1 %vm1101_vm1, %v5124_v5 }
 0x186   : > { %4363 = vmatpush3.bf16.msra.mxu1 %v5261_v55  ;;  %4300 = vmatprep.mubr.msk.bf16.mxu1 %vm1101_vm1, %v5120_v4  ;;  %v5503_v55 = vsel %vm1541_vm6, %v1583_v39, %v1584_v15 }
 0x187   : > { %4430 = vmatprep.subr.bf16.mxu1 %v4689_v53 }
 0x18b   : > { %4355 = vmatmul.mubr.msk.bf16.gmra.mxu0 %vm1101_vm1, %v5498_v37 }
 0x18c   : > { %4358 = vmatprep.mubr.msk.bf16.mxu0 %vm1101_vm1, %v5503_v55 }
 0x18d   : > { %4301 = vmatmul.mubr.msk.bf16.gmra.mxu1 %vm1101_vm1, %v5147_v50 }
 0x18e   : > { %4304 = vmatprep.mubr.msk.bf16.mxu1 %vm1101_vm1, %v5161_v58 }
 0x193   : > { %4359 = vmatmul.mubr.msk.bf16.gmra.mxu0 %vm1101_vm1, %v5514_v23 }
 0x194   : > { %4398 = vmatprep.mubr.msk.bf16.mxu0 %vm1101_vm1, %v5151_v52  ;;  %v4691_v52 = vld [vmem:[#allocation5 + $0x38] sm:$0xff]  }
 0x195   : > { %4305 = vmatmul.mubr.msk.bf16.gmra.mxu1 %vm1101_vm1, %v5197_v38 }
 0x196   : > { %4308 = vmatprep.mubr.msk.bf16.mxu1 %vm1101_vm1, %v5181_v29 }
 0x19b   : > { %4399 = vmatmul.mubr.msk.bf16.vlgmr.msra.gmra.mxu0 %vm1101_vm1, %v5157_v57 }
 0x19c   : > { %4402 = vmatprep.mubr.msk.bf16.mxu0 %vm1101_vm1, %v5184_v31  ;;  %4465 = vmatpush3.bf16.msra.mxu0 %v5283_v10  ;;  %v2046_v10 = vshll.u32 %v5443_v14, 16 }
 0x19d   : > { %4309 = vmatmul.mubr.msk.bf16.gmra.mxu1 %vm1101_vm1, %v5218_v27  ;;  %4532 = vmatprep.subr.bf16.mxu0 %v4692_v26 }
 0x19e   : > { %4312 = vmatprep.mubr.msk.bf16.mxu1 %vm1101_vm1, %v5226_v36  ;;  %v2048_v20 = vrot.slane %v2046_v10, 1 }
 0x1a3   : > { %4403 = vmatmul.mubr.msk.bf16.gmra.mxu0 %vm1101_vm1, %v5203_v1 }
 0x1a4   : > { %4406 = vmatprep.mubr.msk.bf16.mxu0 %vm1101_vm1, %v5240_v3 }
 0x1a5   : > { %4313 = vmatmul.mubr.msk.bf16.gmra.mxu1 %vm1101_vm1, %v5270_v63 }
 0x1a6   : > { %4316 = vmatprep.mubr.msk.bf16.mxu1 %vm1101_vm1, %v5252_v13 }
 0x1ab   : > { %4407 = vmatmul.mubr.msk.bf16.gmra.mxu0 %vm1101_vm1, %v5221_v32 }
 0x1ac   : > { %4410 = vmatprep.mubr.msk.bf16.mxu0 %vm1101_vm1, %v5264_v56 }
 0x1ad   : > { %4317 = vmatmul.mubr.msk.bf16.gmra.mxu1 %vm1101_vm1, %v5319_v42 }
 0x1ae   : > { %4320 = vmatprep.mubr.msk.bf16.mxu1 %vm1101_vm1, %v5308_v35 }
 0x1b3   : > { %4411 = vmatmul.mubr.msk.bf16.gmra.mxu0 %vm1101_vm1, %v5315_v47 }
 0x1b4   : > { %4414 = vmatprep.mubr.msk.bf16.mxu0 %vm1101_vm1, %v5335_v19 }
 0x1b5   : > { %4321 = vmatmul.mubr.msk.bf16.gmra.mxu1 %vm1101_vm1, %v5374_v34 }
 0x1b6   : > { %4324 = vmatprep.mubr.msk.bf16.mxu1 %vm1101_vm1, %v5384_v25 }
 0x1bb   : > { %4415 = vmatmul.mubr.msk.bf16.gmra.mxu0 %vm1101_vm1, %v5358_v62 }
 0x1bc   : > { %4418 = vmatprep.mubr.msk.bf16.mxu0 %vm1101_vm1, %v5377_v7 }
 0x1bd   : > { %4325 = vmatmul.mubr.msk.bf16.gmra.mxu1 %vm1101_vm1, %v5402_v17 }
 0x1be   : > { %4364 = vmatprep.mubr.msk.bf16.mxu1 %vm1101_vm1, %v5124_v5  ;;  %v2044_v5 = vshrl.u32 %v5443_v14, 16 }
 0x1c0   : > { %v2049_v11 = vor.u32 %v2048_v20, %v2044_v5 }
 0x1c2   : > { %v5585_v59 = vsel %vm903_vm5, %v2049_v11, %v2053_v2 }
 0x1c3   : > { %4419 = vmatmul.mubr.msk.bf16.gmra.mxu0 %vm1101_vm1, %v5393_v54  ;;  %6740 = vst [vmem:[#allocation12_spill] sm:$0xff] %v5585_v59 }
 0x1c4   : > { %4422 = vmatprep.mubr.msk.bf16.mxu0 %vm1101_vm1, %v5426_v21 }
 0x1c5   : > { %4365 = vmatmul.mubr.msk.bf16.vlgmr.msra.gmra.mxu1 %vm1101_vm1, %v5120_v4 }
 0x1c6   : > { %4431 = vmatpush3.bf16.msra.mxu1 %v4689_v53  ;;  %4368 = vmatprep.mubr.msk.bf16.mxu1 %vm1101_vm1, %v5147_v50 }
 0x1c7   : > { %4498 = vmatprep.subr.bf16.mxu1 %v4691_v52 }
 0x1cb   : > { %4423 = vmatmul.mubr.msk.bf16.gmra.mxu0 %vm1101_vm1, %v5438_v33 }
 0x1cc   : > { %4426 = vmatprep.mubr.msk.bf16.mxu0 %vm1101_vm1, %v5454_v9 }
 0x1cd   : > { %4369 = vmatmul.mubr.msk.bf16.gmra.mxu1 %vm1101_vm1, %v5161_v58 }
 0x1ce   : > { %4372 = vmatprep.mubr.msk.bf16.mxu1 %vm1101_vm1, %v5197_v38 }
 0x1d3   : > { %4427 = vmatmul.mubr.msk.bf16.gmra.mxu0 %vm1101_vm1, %v5585_v59 }
 0x1d4   : > { %4466 = vmatprep.mubr.msk.bf16.mxu0 %vm1101_vm1, %v5120_v4 }
 0x1d5   : > { %4373 = vmatmul.mubr.msk.bf16.gmra.mxu1 %vm1101_vm1, %v5181_v29 }
 0x1d6   : > { %4376 = vmatprep.mubr.msk.bf16.mxu1 %vm1101_vm1, %v5218_v27 }
 0x1db   : > { %4467 = vmatmul.mubr.msk.bf16.vlgmr.msra.gmra.mxu0 %vm1101_vm1, %v5147_v50 }
 0x1dc   : > { %4470 = vmatprep.mubr.msk.bf16.mxu0 %vm1101_vm1, %v5161_v58  ;;  %4533 = vmatpush3.bf16.msra.mxu0 %v4692_v26 }
 0x1dd   : > { %4377 = vmatmul.mubr.msk.bf16.gmra.mxu1 %vm1101_vm1, %v5226_v36 }
 0x1de   : > { %4380 = vmatprep.mubr.msk.bf16.mxu1 %vm1101_vm1, %v5270_v63 }
 0x1e3   : > { %4471 = vmatmul.mubr.msk.bf16.gmra.mxu0 %vm1101_vm1, %v5197_v38 }
 0x1e4   : > { %4474 = vmatprep.mubr.msk.bf16.mxu0 %vm1101_vm1, %v5181_v29 }
 0x1e5   : > { %4381 = vmatmul.mubr.msk.bf16.gmra.mxu1 %vm1101_vm1, %v5252_v13 }
 0x1e6   : > { %4384 = vmatprep.mubr.msk.bf16.mxu1 %vm1101_vm1, %v5319_v42 }
 0x1eb   : > { %4475 = vmatmul.mubr.msk.bf16.gmra.mxu0 %vm1101_vm1, %v5218_v27 }
 0x1ec   : > { %4478 = vmatprep.mubr.msk.bf16.mxu0 %vm1101_vm1, %v5226_v36 }
 0x1ed   : > { %4385 = vmatmul.mubr.msk.bf16.gmra.mxu1 %vm1101_vm1, %v5308_v35 }
 0x1ee   : > { %4388 = vmatprep.mubr.msk.bf16.mxu1 %vm1101_vm1, %v5374_v34 }
 0x1f3   : > { %4479 = vmatmul.mubr.msk.bf16.gmra.mxu0 %vm1101_vm1, %v5270_v63 }
 0x1f4   : > { %4482 = vmatprep.mubr.msk.bf16.mxu0 %vm1101_vm1, %v5252_v13 }
 0x1f5   : > { %4389 = vmatmul.mubr.msk.bf16.gmra.mxu1 %vm1101_vm1, %v5384_v25 }
 0x1f6   : > { %4392 = vmatprep.mubr.msk.bf16.mxu1 %vm1101_vm1, %v5402_v17 }
 0x1fb   : > { %4483 = vmatmul.mubr.msk.bf16.gmra.mxu0 %vm1101_vm1, %v5319_v42  ;;  %v5631_v4 = vpop.f32.mrf.mxu0 }
 0x1fc   : > { %4486 = vmatprep.mubr.msk.bf16.mxu0 %vm1101_vm1, %v5308_v35 }
 0x1fd   : > { %4393 = vmatmul.mubr.msk.bf16.gmra.mxu1 %vm1101_vm1, %v5443_v14  ;;  %v5637_v50 = vpop.f32.mrf.mxu0 }
 0x1fe   : > { %4432 = vmatprep.mubr.msk.bf16.mxu1 %vm1101_vm1, %v5281_v6 }
 0x1ff   : > { %v5639_v58 = vpop.f32.mrf.mxu0 }
 0x201   : > { %v5641_v29 = vpop.f32.mrf.mxu0 }
 0x203   : > { %4487 = vmatmul.mubr.msk.bf16.gmra.mxu0 %vm1101_vm1, %v5374_v34 }
 0x204   : > { %4490 = vmatprep.mubr.msk.bf16.mxu0 %vm1101_vm1, %v5384_v25  ;;  %v5647_v38 = vpop.f32.mrf.mxu0 }
 0x205   : > { %4433 = vmatmul.mubr.msk.bf16.vlgmr.msra.gmra.mxu1 %vm1101_vm1, %v5292_v61 }
 0x206   : > { %4499 = vmatpush3.bf16.msra.mxu1 %v4691_v52  ;;  %4436 = vmatprep.mubr.msk.bf16.mxu1 %vm1101_vm1, %v5329_v51  ;;  %v5653_v27 = vpop.f32.mrf.mxu0 }
 0x208   : > { %v5657_v36 = vpop.f32.mrf.mxu0 }
 0x20a   : > { %v5665_v13 = vpop.f32.mrf.mxu0 }
 0x20b   : > { %4491 = vmatmul.mubr.msk.bf16.gmra.mxu0 %vm1101_vm1, %v5402_v17 }
 0x20c   : > { %4494 = vmatprep.mubr.msk.bf16.mxu0 %vm1101_vm1, %v5443_v14 }
 0x20d   : > { %4437 = vmatmul.mubr.msk.bf16.gmra.mxu1 %vm1101_vm1, %v5346_v44 }
 0x20e   : > { %4440 = vmatprep.mubr.msk.bf16.mxu1 %vm1101_vm1, %v5369_v28 }
 0x213   : > { %v5667_v63 = vpop.f32.mrf.mxu0  ;;  %4495 = vmatmul.mubr.bf16.gmra.mxu0 %v6739_v0 }
 0x214   : > { %4534 = vmatprep.mubr.msk.bf16.mxu0 %vm1101_vm1, %v5292_v61 }
 0x215   : > { %4441 = vmatmul.mubr.msk.bf16.gmra.mxu1 %vm1101_vm1, %v5396_v16  ;;  %v5674_v6 = vpop.f32.mrf.mxu0 }
 0x216   : > { %4444 = vmatprep.mubr.msk.bf16.mxu1 %vm1101_vm1, %v5417_v45 }
 0x217   : > { %v5678_v35 = vpop.f32.mrf.mxu0 }
 0x219   : > { %v5680_v42 = vpop.f32.mrf.mxu0  ;;  %v5682_v34 = vpop.f32.mrf.mxu1 }
 0x21b   : > { %v5684_v25 = vpop.f32.mrf.mxu0  ;;  %4535 = vmatmul.mubr.msk.bf16.vlgmr.msra.gmra.mxu0 %vm1101_vm1, %v5329_v51  ;;  %v5688_v61 = vpop.f32.mrf.mxu1 }
 0x21c   : > { %4538 = vmatprep.mubr.msk.bf16.mxu0 %vm1101_vm1, %v5346_v44 }
 0x21d   : > { %4445 = vmatmul.mubr.msk.bf16.gmra.mxu1 %vm1101_vm1, %v5429_v43  ;;  %v5694_v17 = vpop.f32.mrf.mxu0  ;;  %v5696_v14 = vpop.f32.mrf.mxu1 }
 0x21e   : > { %4448 = vmatprep.mubr.msk.bf16.mxu1 %vm1101_vm1, %v5457_v18 }
 0x21f   : > { %v5700_v48 = vpop.f32.mrf.mxu0  ;;  %v5702_v0 = vpop.f32.mrf.mxu1 }
 0x221   : > { %v5704_v51 = vpop.f32.mrf.mxu0 }
 0x223   : > { %v5706_v53 = vpop.f32.mrf.mxu0  ;;  %4539 = vmatmul.mubr.msk.bf16.gmra.mxu0 %vm1101_vm1, %v5369_v28 }
 0x224   : > { %v5710_v44 = vpop.f32.mrf.mxu1  ;;  %4542 = vmatprep.mubr.msk.bf16.mxu0 %vm1101_vm1, %v5396_v16 }
 0x225   : > { %4449 = vmatmul.mubr.msk.bf16.gmra.mxu1 %vm1101_vm1, %v5463_v49  ;;  %v5716_v24 = vpop.f32.mrf.mxu0 }
 0x226   : > { %4452 = vmatprep.mubr.msk.bf16.mxu1 %vm1101_vm1, %v5479_v30  ;;  %v5720_v39 = vpop.f32.mrf.mxu1 }
 0x227   : > { %v5722_v46 = vpop.f32.mrf.mxu0 }
 0x228   : > { %v5724_v15 = vpop.f32.mrf.mxu1 }
 0x229   : > { %v5726_v28 = vpop.f32.mrf.mxu0 }
 0x22a   : > { %v5728_v60 = vpop.f32.mrf.mxu1 }
 0x22b   : > { %v5730_v12 = vpop.f32.mrf.mxu0  ;;  %4543 = vmatmul.mubr.msk.bf16.gmra.mxu0 %vm1101_vm1, %v5417_v45 }
 0x22c   : > { %v5734_v16 = vpop.f32.mrf.mxu1  ;;  %4546 = vmatprep.mubr.msk.bf16.mxu0 %vm1101_vm1, %v5429_v43 }
 0x22d   : > { %4453 = vmatmul.mubr.msk.bf16.gmra.mxu1 %vm1101_vm1, %v5484_v40  ;;  %v5740_v26 = vpop.f32.mrf.mxu0 }
 0x22e   : > { %4456 = vmatprep.mubr.msk.bf16.mxu1 %vm1101_vm1, %v5498_v37  ;;  %v5744_v52 = vpop.f32.mrf.mxu1 }
 0x22f   : > { %6741 = vst [vmem:[#allocation13_spill] sm:$0xff] %v5744_v52  ;;  %v5746_v10 = vpop.f32.mrf.mxu0 }
 0x230   : > { %v5748_v20 = vpop.f32.mrf.mxu1 }
 0x231   : > { %6742 = vst [vmem:[#allocation14_spill] sm:$0xff] %v5748_v20  ;;  %v5750_v45 = vpop.f32.mrf.mxu0 }
 0x232   : > { %v5752_v5 = vpop.f32.mrf.mxu1 }
 0x233   : > { %6743 = vst [vmem:[#allocation15_spill] sm:$0xff] %v5752_v5  ;;  %v5754_v41 = vpop.f32.mrf.mxu0  ;;  %4547 = vmatmul.mubr.msk.bf16.gmra.mxu0 %vm1101_vm1, %v5457_v18 }
 0x234   : > { %4550 = vmatprep.mubr.msk.bf16.mxu0 %vm1101_vm1, %v5463_v49 }
 0x235   : > { %v5760_v43 = vpop.f32.mrf.mxu1  ;;  %4457 = vmatmul.mubr.msk.bf16.gmra.mxu1 %vm1101_vm1, %v5503_v55  ;;  %v5764_v11 = vpop.f32.mrf.mxu0 }
 0x236   : > { %6744 = vst [vmem:[#allocation16_spill] sm:$0xff] %v5760_v43  ;;  %4460 = vmatprep.mubr.msk.bf16.mxu1 %vm1101_vm1, %v5514_v23 }
 0x237   : > { %v5768_v2 = vpop.f32.mrf.mxu1  ;;  %v5770_v59 = vpop.f32.mrf.mxu0 }
 0x238   : > { %6745 = vst [vmem:[#allocation17_spill] sm:$0xff] %v5768_v2 }
 0x239   : > { %v5772_v9 = vpop.f32.mrf.mxu1  ;;  %v5774_v18 = vpop.f32.mrf.mxu0 }
 0x23a   : > { %6746 = vst [vmem:[#allocation18_spill] sm:$0xff] %v5772_v9 }
 0x23b   : > { %v5776_v5 = vpop.f32.mrf.mxu1  ;;  %v5778_v49 = vpop.f32.mrf.mxu0  ;;  %4551 = vmatmul.mubr.msk.bf16.gmra.mxu0 %vm1101_vm1, %v5479_v30 }
 0x23c   : > { %6747 = vst [vmem:[#allocation19_spill] sm:$0xff] %v5776_v5  ;;  %4554 = vmatprep.mubr.msk.bf16.mxu0 %vm1101_vm1, %v5484_v40 }
 0x23d   : > { %v5784_v43 = vpop.f32.mrf.mxu1  ;;  %4461 = vmatmul.mubr.msk.bf16.gmra.mxu1 %vm1101_vm1, %v5471_v8  ;;  %v5788_v2 = vpop.f32.mrf.mxu0 }
 0x23e   : > { %6748 = vst [vmem:[#allocation20_spill] sm:$0xff] %v5784_v43  ;;  %4500 = vmatprep.mubr.msk.bf16.mxu1 %vm1101_vm1, %v5157_v57 }
 0x23f   : > { %v5792_v9 = vpop.f32.mrf.mxu1  ;;  %v5794_v5 = vpop.f32.mrf.mxu0 }
 0x240   : > { %6749 = vst [vmem:[#allocation21_spill] sm:$0xff] %v5792_v9 }
 0x241   : > { %v5796_v20 = vpop.f32.mrf.mxu1  ;;  %v5798_v30 = vpop.f32.mrf.mxu0 }
 0x242   : > { %6750 = vst [vmem:[#allocation22_spill] sm:$0xff] %v5796_v20  ;;  %6751 = vst [vmem:[#allocation23_spill] sm:$0xff] %v5798_v30 }
 0x243   : > { %v5800_v52 = vpop.f32.mrf.mxu1  ;;  %v5802_v40 = vpop.f32.mrf.mxu0  ;;  %4555 = vmatmul.mubr.msk.bf16.gmra.mxu0 %vm1101_vm1, %v5498_v37 }
 0x244   : > { %6752 = vst [vmem:[#allocation24_spill] sm:$0xff] %v5800_v52  ;;  %6753 = vst [vmem:[#allocation25_spill] sm:$0xff] %v5802_v40  ;;  %4558 = vmatprep.mubr.msk.bf16.mxu0 %vm1101_vm1, %v5503_v55 }
 0x245   : > { %v4298_v43 = vpop.f32.mrf.mxu1  ;;  %4501 = vmatmul.mubr.msk.bf16.vlgmr.msra.gmra.mxu1 %vm1101_vm1, %v5184_v31  ;;  %v5810_v57 = vpop.f32.mrf.mxu0 }
 0x246   : > { %6754 = vst [vmem:[#allocation26_spill] sm:$0xff] %v5810_v57  ;;  %v1392_v20 = vadd.f32 %v4298_v43, %v5631_v4  ;;  %4504 = vmatprep.mubr.msk.bf16.mxu1 %vm1101_vm1, %v5203_v1 }
 0x247   : > { %v1383_v52 = vpop.f32.mrf.mxu1  ;;  %v5815_v9 = vpop.f32.mrf.mxu0 }
 0x248   : > { %v1384_v40 = vadd.f32 %v1383_v52, %v5637_v50  ;;  %v5819_v37 = vadd.f32 %v5684_v25, %v1392_v20 }
 0x249   : > { %v4299_v55 = vpop.f32.mrf.mxu1  ;;  %v5821_v30 = vpop.f32.mrf.mxu0 }
 0x24a   : > { %v1395_v31 = vadd.f32 %v4299_v55, %v5639_v58  ;;  %v5825_v57 = vadd.f32 %v5694_v17, %v1384_v40 }
 0x24b   : > { %v1386_v4 = vpop.f32.mrf.mxu1  ;;  %v5827_v43 = vpop.f32.mrf.mxu0  ;;  %4559 = vmatmul.mubr.msk.bf16.gmra.mxu0 %vm1101_vm1, %v5514_v23 }
 0x24c   : > { %v1387_v1 = vadd.f32 %v1386_v4, %v5641_v29  ;;  %4562 = vmatprep.mubr.msk.bf16.mxu0 %vm1101_vm1, %v5471_v8  ;;  %v5835_v50 = vadd.f32 %v5700_v48, %v1395_v31 }
 0x24d   : > { %v4302_v25 = vpop.f32.mrf.mxu1  ;;  %4505 = vmatmul.mubr.msk.bf16.gmra.mxu1 %vm1101_vm1, %v5240_v3  ;;  %v5839_v58 = vpop.f32.mrf.mxu0 }
 0x24e   : > { %v1408_v17 = vadd.f32 %v4302_v25, %v5647_v38  ;;  %4508 = vmatprep.mubr.msk.bf16.mxu1 %vm1101_vm1, %v5221_v32  ;;  %v5845_v23 = vadd.f32 %v5704_v51, %v1387_v1 }
 0x24f   : > { %v1399_v29 = vpop.f32.mrf.mxu1  ;;  %v5847_v52 = vpop.f32.mrf.mxu0 }
 0x250   : > { %v1400_v8 = vadd.f32 %v1399_v29, %v5653_v27  ;;  %v5851_v48 = vadd.f32 %v5706_v53, %v1408_v17 }
 0x251   : > { %v4303_v20 = vpop.f32.mrf.mxu1  ;;  %v5853_v3 = vpop.f32.mrf.mxu0 }
 0x252   : > { %v1411_v40 = vadd.f32 %v4303_v20, %v5657_v36  ;;  %v5857_v38 = vadd.f32 %v5716_v24, %v1400_v8 }
 0x253   : > { %v1402_v32 = vpop.f32.mrf.mxu1  ;;  %v5859_v55 = vpop.f32.mrf.mxu0  ;;  %4563 = vmatmul.mubr.msk.bf16.gmra.mxu0 %vm1101_vm1, %v5081_v22 }
 0x254   : > { %v1403_v51 = vadd.f32 %v1402_v32, %v5665_v13  ;;  %v5865_v27 = vadd.f32 %v5722_v46, %v1411_v40  ;;  %v4693_v13 = vld [vmem:[%s6706_s3] sm:$0xff]  }
 0x255   : > { %v4306_v53 = vpop.f32.mrf.mxu1  ;;  %4509 = vmatmul.mubr.msk.bf16.gmra.mxu1 %vm1101_vm1, %v5264_v56  ;;  %v5869_v31 = vpop.f32.mrf.mxu0  ;;  %4566 = vmatprep.subr.bf16.mxu1 %v4693_v13 }
 0x256   : > { %v1424_v36 = vadd.f32 %v4306_v53, %v5667_v63  ;;  %4512 = vmatprep.mubr.msk.bf16.mxu1 %vm1101_vm1, %v5315_v47  ;;  %v5875_v24 = vadd.f32 %v5726_v28, %v1403_v51  ;;  %4567 = vmatpush3.bf16.msra.mxu1 %v4693_v13 }
 0x257   : > { %v1415_v46 = vpop.f32.mrf.mxu1  ;;  %v5880_v4 = vpop.f32.mrf.mxu0 }
 0x258   : > { %v1416_v1 = vadd.f32 %v1415_v46, %v5674_v6  ;;  %v5884_v56 = vadd.f32 %v5730_v12, %v1424_v36 }
 0x259   : > { %v4307_v63 = vpop.f32.mrf.mxu1  ;;  %v5886_v25 = vpop.f32.mrf.mxu0 }
 0x25a   : > { %v1427_v47 = vadd.f32 %v4307_v63, %v5678_v35  ;;  %v5890_v28 = vadd.f32 %v5740_v26, %v1416_v1 }
 0x25b   : > { %v1418_v17 = vpop.f32.mrf.mxu1  ;;  %v5892_v29 = vpop.f32.mrf.mxu0 }
 0x25c   : > { %v1419_v8 = vadd.f32 %v1418_v17, %v5680_v42  ;;  %v5896_v6 = vadd.f32 %v5746_v10, %v1427_v47 }
 0x25d   : > { %v4310_v12 = vpop.f32.mrf.mxu1  ;;  %4513 = vmatmul.mubr.msk.bf16.gmra.mxu1 %vm1101_vm1, %v5335_v19  ;;  %v5900_v20 = vpop.f32.mrf.mxu0 }
 0x25e   : > { %v1440_v40 = vadd.f32 %v4310_v12, %v5682_v34  ;;  %4516 = vmatprep.mubr.msk.bf16.mxu1 %vm1101_vm1, %v5358_v62  ;;  %v5906_v35 = vadd.f32 %v5750_v45, %v1419_v8 }
 0x25f   : > { %v1431_v26 = vpop.f32.mrf.mxu1  ;;  %v5908_v32 = vpop.f32.mrf.mxu0 }
 0x260   : > { %v1432_v42 = vadd.f32 %v1431_v26, %v5688_v61  ;;  %v5912_v10 = vadd.f32 %v5754_v41, %v1440_v40 }
 0x261   : > { %v4311_v51 = vpop.f32.mrf.mxu1  ;;  %v5914_v19 = vpop.f32.mrf.mxu0 }
 0x262   : > { %v1443_v53 = vadd.f32 %v4311_v51, %v5696_v14  ;;  %v5918_v34 = vadd.f32 %v5764_v11, %v1432_v42  ;;  %v6757_v42 = vld [vmem:[#allocation25_spill] sm:$0xff] }
 0x263   : > { %v1434_v62 = vpop.f32.mrf.mxu1  ;;  %v5920_v36 = vpop.f32.mrf.mxu0 }
 0x264   : > { %v1435_v45 = vadd.f32 %v1434_v62, %v5702_v0  ;;  %v5924_v13 = vadd.f32 %v5770_v59, %v1443_v53  ;;  %v6758_v62 = vld [vmem:[#allocation14_spill] sm:$0xff] }
 0x265   : > { %v4314_v61 = vpop.f32.mrf.mxu1  ;;  %4517 = vmatmul.mubr.msk.bf16.gmra.mxu1 %vm1101_vm1, %v5377_v7  ;;  %v5928_v41 = vpop.f32.mrf.mxu0 }
 0x266   : > { %v1456_v46 = vadd.f32 %v4314_v61, %v5710_v44  ;;  %4520 = vmatprep.mubr.msk.bf16.mxu1 %vm1101_vm1, %v5393_v54  ;;  %v5934_v14 = vadd.f32 %v5774_v18, %v1435_v45 }
 0x267   : > { %v1447_v11 = vpop.f32.mrf.mxu1  ;;  %v5936_v1 = vpop.f32.mrf.mxu0 }
 0x268   : > { %v1448_v59 = vadd.f32 %v1447_v11, %v5720_v39  ;;  %v5940_v0 = vadd.f32 %v5778_v49, %v1456_v46  ;;  %v6760_v11 = vld [vmem:[#allocation15_spill] sm:$0xff] }
 0x269   : > { %v4315_v63 = vpop.f32.mrf.mxu1  ;;  %v5942_v7 = vpop.f32.mrf.mxu0 }
 0x26a   : > { %v1459_v47 = vadd.f32 %v4315_v63, %v5724_v15  ;;  %v5946_v44 = vadd.f32 %v5788_v2, %v1448_v59  ;;  %v6755_v15 = vld [vmem:[#allocation23_spill] sm:$0xff] }
 0x26b   : > { %v1450_v54 = vpop.f32.mrf.mxu1  ;;  %v5948_v17 = vpop.f32.mrf.mxu0 }
 0x26c   : > { %v1451_v18 = vadd.f32 %v1450_v54, %v5728_v60  ;;  %v5952_v8 = vadd.f32 %v5794_v5, %v1459_v47  ;;  %v6756_v60 = vld [vmem:[#allocation13_spill] sm:$0xff]  ;;  %v6761_v54 = vld [vmem:[#allocation11_spill] sm:$0xff] }
 0x26d   : > { %v4318_v39 = vpop.f32.mrf.mxu1  ;;  %4521 = vmatmul.mubr.msk.bf16.gmra.mxu1 %vm1101_vm1, %v5426_v21  ;;  %v5956_v49 = vpop.f32.mrf.mxu0 }
 0x26e   : > { %v1472_v12 = vadd.f32 %v4318_v39, %v5734_v16  ;;  %4524 = vmatprep.mubr.msk.bf16.mxu1 %vm1101_vm1, %v5438_v33  ;;  %v5962_v2 = vadd.f32 %v6755_v15, %v1451_v18  ;;  %v6759_v16 = vld [vmem:[#allocation26_spill] sm:$0xff]  ;;  %v6762_v39 = vld [vmem:[#allocation16_spill] sm:$0xff] }
 0x26f   : > { %v1463_v40 = vpop.f32.mrf.mxu1  ;;  %v5964_v26 = vpop.f32.mrf.mxu0  ;;  %v6763_v15 = vld [vmem:[#allocation12_spill] sm:$0xff] }
 0x270   : > { %v1464_v5 = vadd.f32 %v1463_v40, %v6756_v60  ;;  %v5968_v51 = vadd.f32 %v6757_v42, %v1472_v12  ;;  %v6764_v42 = vld [vmem:[#allocation17_spill] sm:$0xff] }
 0x271   : > { %v4319_v53 = vpop.f32.mrf.mxu1  ;;  %v5970_v21 = vpop.f32.mrf.mxu0 }
 0x272   : > { %v1475_v45 = vadd.f32 %v4319_v53, %v6758_v62  ;;  %v5974_v61 = vadd.f32 %v6759_v16, %v1464_v5  ;;  %v6765_v16 = vld [vmem:[#allocation18_spill] sm:$0xff] }
 0x273   : > { %v1466_v33 = vpop.f32.mrf.mxu1  ;;  %v5976_v46 = vpop.f32.mrf.mxu0 }
 0x274   : > { %v1467_v59 = vadd.f32 %v1466_v33, %v6760_v11  ;;  %v5980_v63 = vadd.f32 %v5815_v9, %v1475_v45 }
 0x275   : > { %v4322_v47 = vpop.f32.mrf.mxu1  ;;  %4525 = vmatmul.mubr.msk.bf16.gmra.mxu1 %vm1101_vm1, %v6761_v54  ;;  %v5984_v18 = vpop.f32.mrf.mxu0 }
 0x276   : > { %v1488_v12 = vadd.f32 %v4322_v47, %v6762_v39  ;;  %4528 = vmatprep.mubr.msk.bf16.mxu1 %vm1101_vm1, %v6763_v15  ;;  %v5990_v40 = vadd.f32 %v5821_v30, %v1467_v59  ;;  %v6766_v30 = vld [vmem:[#allocation19_spill] sm:$0xff] }
 0x277   : > { %v1479_v60 = vpop.f32.mrf.mxu1  ;;  %v5992_v5 = vpop.f32.mrf.mxu0 }
 0x278   : > { %v1480_v9 = vadd.f32 %v1479_v60, %v6764_v42  ;;  %v5996_v53 = vadd.f32 %v5827_v43, %v1488_v12  ;;  %v6768_v12 = vld [vmem:[#allocation20_spill] sm:$0xff] }
 0x279   : > { %v4323_v62 = vpop.f32.mrf.mxu1  ;;  %v5998_v45 = vpop.f32.mrf.mxu0 }
 0x27a   : > { %v1491_v33 = vadd.f32 %v4323_v62, %v6765_v16  ;;  %v6002_v11 = vadd.f32 %v5839_v58, %v1480_v9  ;;  %v6770_v62 = vld [vmem:[#allocation21_spill] sm:$0xff] }
 0x27b   : > { %v1482_v47 = vpop.f32.mrf.mxu1  ;;  %v6004_v54 = vpop.f32.mrf.mxu0 }
 0x27c   : > { %v1483_v59 = vadd.f32 %v1482_v47, %v6766_v30  ;;  %v6008_v39 = vadd.f32 %v5847_v52, %v1491_v33  ;;  %v6771_v30 = vld [vmem:[#allocation22_spill] sm:$0xff] }
 0x27d   : > { %v4326_v15 = vpop.f32.mrf.mxu1  ;;  %4529 = vmatmul.mubr.msk.bf16.gmra.mxu1 %vm1101_vm1, %v5081_v22  ;;  %v6012_v43 = vpop.f32.mrf.mxu0 }
 0x27e   : > { %6767 = vst [vmem:[#allocation23_spill] sm:$0xff] %v6008_v39  ;;  %v1504_v60 = vadd.f32 %v4326_v15, %v6768_v12  ;;  %v6016_v42 = vadd.f32 %v5853_v3, %v1483_v59  ;;  %v6772_v3 = vld [vmem:[#allocation24_spill] sm:$0xff] }
 0x27f   : > { %v1495_v58 = vpop.f32.mrf.mxu1  ;;  %v6018_v9 = vpop.f32.mrf.mxu0 }
 0x280   : > { %6769 = vst [vmem:[#allocation13_spill] sm:$0xff] %v6016_v42  ;;  %v1496_v16 = vadd.f32 %v1495_v58, %v6770_v62  ;;  %v6022_v47 = vadd.f32 %v5859_v55, %v1504_v60 }
 0x281   : > { %v4327_v52 = vpop.f32.mrf.mxu1  ;;  %v6024_v33 = vpop.f32.mrf.mxu0 }
 0x282   : > { %v1507_v22 = vadd.f32 %v4327_v52, %v6771_v30  ;;  %v6028_v39 = vadd.f32 %v5869_v31, %v1496_v16 }
 0x283   : > { %v1498_v15 = vpop.f32.mrf.mxu1  ;;  %v6030_v12 = vpop.f32.mrf.mxu0 }
 0x284   : > { %v1499_v59 = vadd.f32 %v1498_v15, %v6772_v3  ;;  %v6034_v42 = vadd.f32 %v5880_v4, %v1507_v22 }
 0x285   : > { %v4366_v58 = vpop.f32.mrf.mxu1  ;;  %v6036_v62 = vpop.f32.mrf.mxu0 }
 0x286   : > { %v2014_v55 = vadd.f32 %v4366_v58, %v5819_v37  ;;  %v6040_v60 = vadd.f32 %v5886_v25, %v1499_v59 }
 0x287   : > { %v1885_v52 = vpop.f32.mrf.mxu1  ;;  %v6042_v30 = vpop.f32.mrf.mxu0 }
 0x288   : > { %v2012_v31 = vadd.f32 %v1885_v52, %v5825_v57  ;;  %v6046_v16 = vadd.f32 %v5892_v29, %v2014_v55 }
 0x289   : > { %v4367_v15 = vpop.f32.mrf.mxu1  ;;  %v6048_v3 = vpop.f32.mrf.mxu0 }
 0x28a   : > { %v2015_v4 = vadd.f32 %v4367_v15, %v5835_v50  ;;  %v6052_v22 = vadd.f32 %v5900_v20, %v2012_v31 }
 0x28b   : > { %v1888_v37 = vpop.f32.mrf.mxu1  ;;  %v6054_v58 = vpop.f32.mrf.mxu0 }
 0x28c   : > { %v2013_v25 = vadd.f32 %v1888_v37, %v5845_v23  ;;  %v6058_v59 = vadd.f32 %v5908_v32, %v2015_v4 }
 0x28d   : > { %v4370_v57 = vpop.f32.mrf.mxu1  ;;  %v6060_v52 = vpop.f32.mrf.mxu0 }
 0x28e   : > { %v2018_v29 = vadd.f32 %v4370_v57, %v5851_v48  ;;  %v6064_v55 = vadd.f32 %v5914_v19, %v2013_v25 }
 0x28f   : > { %v1901_v50 = vpop.f32.mrf.mxu1  ;;  %v6066_v15 = vpop.f32.mrf.mxu0 }
 0x290   : > { %v2016_v20 = vadd.f32 %v1901_v50, %v5857_v38  ;;  %v6070_v31 = vadd.f32 %v5920_v36, %v2018_v29 }
 0x291   : > { %v4371_v23 = vpop.f32.mrf.mxu1  ;;  %v6072_v37 = vpop.f32.mrf.mxu0 }
 0x292   : > { %v2019_v32 = vadd.f32 %v4371_v23, %v5865_v27  ;;  %v6076_v4 = vadd.f32 %v5928_v41, %v2016_v20 }
 0x293   : > { %v1904_v48 = vpop.f32.mrf.mxu1  ;;  %v6078_v57 = vpop.f32.mrf.mxu0 }
 0x294   : > { %v2017_v19 = vadd.f32 %v1904_v48, %v5875_v24  ;;  %v6082_v25 = vadd.f32 %v5936_v1, %v2019_v32 }
 0x295   : > { %v4374_v38 = vpop.f32.mrf.mxu1  ;;  %v6084_v50 = vpop.f32.mrf.mxu0 }
 0x296   : > { %v2022_v36 = vadd.f32 %v4374_v38, %v5884_v56  ;;  %v6088_v29 = vadd.f32 %v5942_v7, %v2017_v19 }
 0x297   : > { %v1917_v27 = vpop.f32.mrf.mxu1  ;;  %v6090_v23 = vpop.f32.mrf.mxu0 }
 0x298   : > { %v2020_v41 = vadd.f32 %v1917_v27, %v5890_v28  ;;  %v6094_v20 = vadd.f32 %v5948_v17, %v2022_v36 }
 0x299   : > { %v4375_v24 = vpop.f32.mrf.mxu1  ;;  %v6096_v48 = vpop.f32.mrf.mxu0 }
 0x29a   : > { %v2023_v1 = vadd.f32 %v4375_v24, %v5896_v6  ;;  %v6100_v32 = vadd.f32 %v5956_v49, %v2020_v41 }
 0x29b   : > { %v1920_v56 = vpop.f32.mrf.mxu1  ;;  %v6102_v38 = vpop.f32.mrf.mxu0 }
 0x29c   : > { %v2021_v7 = vadd.f32 %v1920_v56, %v5906_v35  ;;  %v6106_v19 = vadd.f32 %v5964_v26, %v2023_v1 }
 0x29d   : > { %v4378_v28 = vpop.f32.mrf.mxu1  ;;  %v6108_v27 = vpop.f32.mrf.mxu0 }
 0x29e   : > { %v2026_v17 = vadd.f32 %v4378_v28, %v5912_v10  ;;  %v6112_v36 = vadd.f32 %v5970_v21, %v2021_v7 }
 0x29f   : > { %v1933_v6 = vpop.f32.mrf.mxu1  ;;  %v6114_v24 = vpop.f32.mrf.mxu0 }
 0x2a0   : > { %v2024_v49 = vadd.f32 %v1933_v6, %v5918_v34  ;;  %v6118_v41 = vadd.f32 %v5976_v46, %v2026_v17 }
 0x2a1   : > { %v4379_v35 = vpop.f32.mrf.mxu1  ;;  %v6120_v56 = vpop.f32.mrf.mxu0 }
 0x2a2   : > { %v2027_v26 = vadd.f32 %v4379_v35, %v5924_v13  ;;  %v6124_v1 = vadd.f32 %v5984_v18, %v2024_v49 }
 0x2a3   : > { %v1936_v10 = vpop.f32.mrf.mxu1  ;;  %v6126_v28 = vpop.f32.mrf.mxu0 }
 0x2a4   : > { %v2025_v21 = vadd.f32 %v1936_v10, %v5934_v14  ;;  %v6130_v7 = vadd.f32 %v5992_v5, %v2027_v26 }
 0x2a5   : > { %v4382_v34 = vpop.f32.mrf.mxu1  ;;  %v6132_v6 = vpop.f32.mrf.mxu0 }
 0x2a6   : > { %v2030_v46 = vadd.f32 %v4382_v34, %v5940_v0  ;;  %v6136_v17 = vadd.f32 %v5998_v45, %v2025_v21 }
 0x2a7   : > { %v1949_v13 = vpop.f32.mrf.mxu1  ;;  %v6138_v35 = vpop.f32.mrf.mxu0 }
 0x2a8   : > { %6773 = vst [vmem:[#allocation25_spill] sm:$0xff] %v6136_v17  ;;  %v2028_v18 = vadd.f32 %v1949_v13, %v5946_v44  ;;  %v6142_v49 = vadd.f32 %v6004_v54, %v2030_v46 }
 0x2a9   : > { %v4383_v14 = vpop.f32.mrf.mxu1  ;;  %v6144_v10 = vpop.f32.mrf.mxu0 }
 0x2aa   : > { %v2031_v5 = vadd.f32 %v4383_v14, %v5952_v8  ;;  %v6148_v26 = vadd.f32 %v6012_v43, %v2028_v18 }
 0x2ab   : > { %v1952_v0 = vpop.f32.mrf.mxu1  ;;  %v6150_v34 = vpop.f32.mrf.mxu0 }
 0x2ac   : > { %v2029_v45 = vadd.f32 %v1952_v0, %v5962_v2  ;;  %v6154_v21 = vadd.f32 %v6018_v9, %v2031_v5 }
 0x2ad   : > { %v4386_v44 = vpop.f32.mrf.mxu1  ;;  %v6156_v13 = vpop.f32.mrf.mxu0 }
 0x2ae   : > { %v2034_v54 = vadd.f32 %v4386_v44, %v5968_v51  ;;  %v6160_v46 = vadd.f32 %v6024_v33, %v2029_v45 }
 0x2af   : > { %v1965_v8 = vpop.f32.mrf.mxu1  ;;  %v6162_v14 = vpop.f32.mrf.mxu0 }
 0x2b0   : > { %6774 = vst [vmem:[#allocation14_spill] sm:$0xff] %v6160_v46  ;;  %v2032_v43 = vadd.f32 %v1965_v8, %v5974_v61  ;;  %v6166_v18 = vadd.f32 %v6030_v12, %v2034_v54 }
 0x2b1   : > { %v4387_v2 = vpop.f32.mrf.mxu1  ;;  %v6168_v0 = vpop.f32.mrf.mxu0 }
 0x2b2   : > { %6775 = vst [vmem:[#allocation26_spill] sm:$0xff] %v6168_v0  ;;  %v2035_v9 = vadd.f32 %v4387_v2, %v5980_v63  ;;  %v6172_v5 = vadd.f32 %v6036_v62, %v2032_v43 }
 0x2b3   : > { %v1968_v51 = vpop.f32.mrf.mxu1  ;;  %v6174_v44 = vpop.f32.mrf.mxu0 }
 0x2b4   : > { %v2033_v33 = vadd.f32 %v1968_v51, %v5990_v40  ;;  %v6178_v45 = vadd.f32 %v6042_v30, %v2035_v9  ;;  %v6778_v30 = vld [vmem:[#allocation23_spill] sm:$0xff] }
 0x2b5   : > { %v4390_v61 = vpop.f32.mrf.mxu1  ;;  %v6180_v8 = vpop.f32.mrf.mxu0 }
 0x2b6   : > { %v2038_v12 = vadd.f32 %v4390_v61, %v5996_v53  ;;  %v6184_v54 = vadd.f32 %v6048_v3, %v2033_v33  ;;  %v6779_v3 = vld [vmem:[#allocation13_spill] sm:$0xff] }
 0x2b7   : > { %v1981_v63 = vpop.f32.mrf.mxu1  ;;  %v6186_v2 = vpop.f32.mrf.mxu0 }
 0x2b8   : > { %6776 = vst [vmem:[#allocation15_spill] sm:$0xff] %v6184_v54  ;;  %v2036_v62 = vadd.f32 %v1981_v63, %v6002_v11  ;;  %v6190_v43 = vadd.f32 %v6054_v58, %v2038_v12 }
 0x2b9   : > { %v4391_v40 = vpop.f32.mrf.mxu1  ;;  %v6192_v51 = vpop.f32.mrf.mxu0 }
 0x2ba   : > { %6777 = vst [vmem:[#allocation11_spill] sm:$0xff] %v6192_v51  ;;  %v2039_v9 = vadd.f32 %v4391_v40, %v6778_v30  ;;  %v6196_v46 = vadd.f32 %v6060_v52, %v2036_v62 }
 0x2bb   : > { %v1984_v53 = vpop.f32.mrf.mxu1  ;;  %v6198_v61 = vpop.f32.mrf.mxu0 }
 0x2bc   : > { %v2037_v33 = vadd.f32 %v1984_v53, %v6779_v3  ;;  %v6202_v54 = vadd.f32 %v6066_v15, %v2039_v9 }
 0x2bd   : > { %v4394_v11 = vpop.f32.mrf.mxu1  ;;  %v6204_v63 = vpop.f32.mrf.mxu0 }
 0x2be   : > { %v2042_v58 = vadd.f32 %v4394_v11, %v6022_v47  ;;  %v6208_v12 = vadd.f32 %v6072_v37, %v2037_v33 }
 0x2bf   : > { %v1997_v40 = vpop.f32.mrf.mxu1  ;;  %v6210_v30 = vpop.f32.mrf.mxu0 }
 0x2c0   : > { %6780 = vst [vmem:[#allocation16_spill] sm:$0xff] %v6208_v12  ;;  %v2040_v52 = vadd.f32 %v1997_v40, %v6028_v39  ;;  %v6214_v62 = vadd.f32 %v6078_v57, %v2042_v58 }
 0x2c1   : > { %v4395_v53 = vpop.f32.mrf.mxu1  ;;  %v6216_v3 = vpop.f32.mrf.mxu0 }
 0x2c2   : > { %6781 = vst [vmem:[#allocation12_spill] sm:$0xff] %v6216_v3  ;;  %v2043_v15 = vadd.f32 %v4395_v53, %v6034_v42  ;;  %v6220_v9 = vadd.f32 %v6084_v50, %v2040_v52 }
 0x2c3   : > { %v2000_v47 = vpop.f32.mrf.mxu1  ;;  %v6222_v11 = vpop.f32.mrf.mxu0 }
 0x2c4   : > { %v2041_v37 = vadd.f32 %v2000_v47, %v6040_v60  ;;  %v6226_v33 = vadd.f32 %v6090_v23, %v2043_v15 }
 0x2c5   : > { %v4434_v39 = vpop.f32.mrf.mxu1  ;;  %v6228_v40 = vpop.f32.mrf.mxu0 }
 0x2c6   : > { %v2440_v57 = vadd.f32 %v4434_v39, %v6046_v16  ;;  %v6232_v58 = vadd.f32 %v6096_v48, %v2041_v37 }
 0x2c7   : > { %v2311_v42 = vpop.f32.mrf.mxu1  ;;  %v6234_v53 = vpop.f32.mrf.mxu0 }
 0x2c8   : > { %6782 = vst [vmem:[#allocation17_spill] sm:$0xff] %v6232_v58  ;;  %v2438_v50 = vadd.f32 %v2311_v42, %v6052_v22  ;;  %v6238_v52 = vadd.f32 %v6102_v38, %v2440_v57 }
 0x2c9   : > { %v6240_v60 = vpop.f32.mrf.mxu1  ;;  %v6242_v23 = vpop.f32.mrf.mxu0 }
 0x2ca   : > { %6783 = vst [vmem:[#allocation18_spill] sm:$0xff] %v6242_v23  ;;  %v6245_v15 = vadd.f32 %v6108_v27, %v2438_v50 }
 0x2cb   : > { %v6247_v47 = vpop.f32.mrf.mxu1  ;;  %v6249_v16 = vpop.f32.mrf.mxu0 }
 0x2cd   : > { %v4438_v48 = vpop.f32.mrf.mxu1  ;;  %v6251_v37 = vpop.f32.mrf.mxu0 }
 0x2ce   : > { %v2444_v39 = vadd.f32 %v4438_v48, %v6070_v31 }
 0x2cf   : > { %v2327_v22 = vpop.f32.mrf.mxu1  ;;  %v6254_v42 = vpop.f32.mrf.mxu0 }
 0x2d0   : > { %v2442_v38 = vadd.f32 %v2327_v22, %v6076_v4  ;;  %v6258_v57 = vadd.f32 %v6126_v28, %v2444_v39 }
 0x2d1   : > { %v6260_v58 = vpop.f32.mrf.mxu1  ;;  %v6262_v27 = vpop.f32.mrf.mxu0 }
 0x2d2   : > { %6784 = vst [vmem:[#allocation19_spill] sm:$0xff] %v6262_v27  ;;  %v6265_v50 = vadd.f32 %v6132_v6, %v2442_v38 }
 0x2d3   : > { %v6267_v12 = vpop.f32.mrf.mxu1  ;;  %v6269_v23 = vpop.f32.mrf.mxu0 }
 0x2d5   : > { %v4442_v31 = vpop.f32.mrf.mxu1  ;;  %v6271_v48 = vpop.f32.mrf.mxu0 }
 0x2d6   : > { %v2448_v3 = vadd.f32 %v4442_v31, %v6094_v20 }
 0x2d7   : > { %v2343_v4 = vpop.f32.mrf.mxu1  ;;  %v6274_v22 = vpop.f32.mrf.mxu0 }
 0x2d8   : > { %v2446_v28 = vadd.f32 %v2343_v4, %v6100_v32  ;;  %v6278_v39 = vadd.f32 %v6150_v34, %v2448_v3 }
 0x2d9   : > { %v4443_v27 = vpop.f32.mrf.mxu1  ;;  %v6280_v6 = vpop.f32.mrf.mxu0 }
 0x2da   : > { %6785 = vst [vmem:[#allocation20_spill] sm:$0xff] %v6280_v6  ;;  %v2449_v38 = vadd.f32 %v4443_v27, %v6106_v19  ;;  %v6284_v51 = vadd.f32 %v6156_v13, %v2446_v28 }
 0x2db   : > { %v6286_v17 = vpop.f32.mrf.mxu1  ;;  %v6288_v0 = vpop.f32.mrf.mxu0 }
 0x2dc   : > { %v6291_v20 = vadd.f32 %v6162_v14, %v2449_v38 }
 0x2dd   : > { %v4446_v31 = vpop.f32.mrf.mxu1  ;;  %v6293_v32 = vpop.f32.mrf.mxu0 }
 0x2de   : > { %6786 = vst [vmem:[#allocation21_spill] sm:$0xff] %v6291_v20  ;;  %v2452_v34 = vadd.f32 %v4446_v31, %v6118_v41 }
 0x2df   : > { %v2359_v3 = vpop.f32.mrf.mxu1  ;;  %v6296_v4 = vpop.f32.mrf.mxu0 }
 0x2e0   : > { %v2450_v19 = vadd.f32 %v2359_v3, %v6124_v1  ;;  %v6300_v13 = vadd.f32 %v6174_v44, %v2452_v34 }
 0x2e1   : > { %v4447_v27 = vpop.f32.mrf.mxu1  ;;  %v6302_v28 = vpop.f32.mrf.mxu0 }
 0x2e2   : > { %v2453_v6 = vadd.f32 %v4447_v27, %v6130_v7  ;;  %v6306_v14 = vadd.f32 %v6180_v8, %v2450_v19 }
 0x2e3   : > { %v6308_v38 = vpop.f32.mrf.mxu1  ;;  %v6310_v20 = vpop.f32.mrf.mxu0 }
 0x2e4   : > { %6787 = vst [vmem:[#allocation22_spill] sm:$0xff] %v6306_v14  ;;  %v6313_v41 = vadd.f32 %v6186_v2, %v2453_v6 }
 0x2e5   : > { %v4450_v31 = vpop.f32.mrf.mxu1  ;;  %v6315_v1 = vpop.f32.mrf.mxu0 }
 0x2e6   : > { %6788 = vst [vmem:[#allocation24_spill] sm:$0xff] %v6313_v41  ;;  %v2456_v44 = vadd.f32 %v4450_v31, %v6142_v49 }
 0x2e7   : > { %v2375_v34 = vpop.f32.mrf.mxu1  ;;  %v6318_v3 = vpop.f32.mrf.mxu0 }
 0x2e8   : > { %v2454_v7 = vadd.f32 %v2375_v34, %v6148_v26  ;;  %v6322_v8 = vadd.f32 %v6198_v61, %v2456_v44 }
 0x2e9   : > { %v4451_v19 = vpop.f32.mrf.mxu1  ;;  %v6324_v27 = vpop.f32.mrf.mxu0 }
 0x2ea   : > { %v2457_v14 = vadd.f32 %v4451_v19, %v6154_v21  ;;  %v6328_v2 = vadd.f32 %v6204_v63, %v2454_v7 }
 0x2eb   : > { %v6330_v6 = vpop.f32.mrf.mxu1  ;;  %v6332_v41 = vpop.f32.mrf.mxu0 }
 0x2ec   : > { %6789 = vst [vmem:[#allocation23_spill] sm:$0xff] %v6328_v2  ;;  %v6335_v49 = vadd.f32 %v6210_v30, %v2457_v14 }
 0x2ed   : > { %v4454_v31 = vpop.f32.mrf.mxu1  ;;  %v6338_v44 = vpop.f32.mrf.mxu0 }
 0x2ee   : > { %v2460_v26 = vadd.f32 %v4454_v31, %v6166_v18 }
 0x2ef   : > { %v2391_v61 = vpop.f32.mrf.mxu1  ;;  %v6348_v2 = vpop.f32.mrf.mxu0 }
 0x2f0   : > { %v2458_v34 = vadd.f32 %v2391_v61, %v6172_v5  ;;  %v6342_v21 = vadd.f32 %v6222_v11, %v2460_v26 }
 0x2f1   : > { %v4455_v63 = vpop.f32.mrf.mxu1  ;;  %v6356_v5 = vpop.f32.mrf.mxu0 }
 0x2f2   : > { %v2461_v7 = vadd.f32 %v4455_v63, %v6178_v45  ;;  %v6346_v19 = vadd.f32 %v6228_v40, %v2458_v34 }
 0x2f3   : > { %v6350_v30 = vpop.f32.mrf.mxu1  ;;  %v6366_v63 = vpop.f32.mrf.mxu0 }
 0x2f4   : > { %v6353_v18 = vadd.f32 %v6234_v53, %v2461_v7 }
 0x2f5   : > { %v4458_v14 = vpop.f32.mrf.mxu1 }
 0x2f6   : > { %v2464_v31 = vadd.f32 %v4458_v14, %v6190_v43 }
 0x2f7   : > { %v2407_v11 = vpop.f32.mrf.mxu1 }
 0x2f8   : > { %v2462_v26 = vadd.f32 %v2407_v11, %v6196_v46  ;;  %v6360_v45 = vadd.f32 %v6249_v16, %v2464_v31  ;;  %v6374_v46 = vpop.f32.mrf.mxu0 }
 0x2f9   : > { %v4459_v40 = vpop.f32.mrf.mxu1 }
 0x2fa   : > { %v2465_v61 = vadd.f32 %v4459_v40, %v6202_v54  ;;  %v6364_v34 = vadd.f32 %v6251_v37, %v2462_v26  ;;  %v6384_v40 = vpop.f32.mrf.mxu0 }
 0x2fb   : > { %v6368_v53 = vpop.f32.mrf.mxu1 }
 0x2fc   : > { %v6371_v43 = vadd.f32 %v6254_v42, %v2465_v61 }
 0x2fd   : > { %v4462_v7 = vpop.f32.mrf.mxu1 }
 0x2fe   : > { %v2468_v14 = vadd.f32 %v4462_v7, %v6214_v62  ;;  %v2441_v62 = vadd.f32 %v6240_v60, %v6058_v59  ;;  %v6404_v59 = vld [vmem:[%s6708_s5] ss:$0 sm:$0xff] }
 0x2ff   : > { %v2423_v16 = vpop.f32.mrf.mxu1 }
 0x300   : > { %v2466_v31 = vadd.f32 %v2423_v16, %v6220_v9  ;;  %v6378_v54 = vadd.f32 %v6269_v23, %v2468_v14  ;;  %v2439_v23 = vadd.f32 %v6247_v47, %v6064_v55 }
 0x301   : > { %v4463_v37 = vpop.f32.mrf.mxu1 }
 0x302   : > { %v2469_v11 = vadd.f32 %v4463_v37, %v6226_v33  ;;  %v6382_v26 = vadd.f32 %v6271_v48, %v2466_v31  ;;  %v6396_v33 = vpop.f32.mrf.mxu0  ;;  %v2643_v31 = vadd.f32 %v6114_v24, %v2441_v62  ;;  %v2445_v24 = vadd.f32 %v6260_v58, %v6082_v25 }
 0x303   : > { %v6386_v42 = vpop.f32.mrf.mxu1  ;;  %v2443_v62 = vadd.f32 %v6267_v12, %v6088_v29 }
 0x304   : > { %v6391_v61 = vadd.f32 %v6274_v22, %v2469_v11  ;;  %v6408_v47 = vpop.f32.mrf.mxu0  ;;  %v2647_v12 = vadd.f32 %v6138_v35, %v2445_v24 }
 0x305   : > { %v4502_v9 = vpop.f32.mrf.mxu1 }
 0x306   : > { %v2844_v7 = vadd.f32 %v4502_v9, %v6238_v52  ;;  %v2641_v52 = vadd.f32 %v6120_v56, %v2439_v23 }
 0x307   : > { %v2715_v48 = vpop.f32.mrf.mxu1 }
 0x308   : > { %v3046_v14 = vadd.f32 %v6288_v0, %v2844_v7  ;;  %v2842_v16 = vadd.f32 %v2715_v48, %v6245_v15  ;;  %v6420_v48 = vpop.f32.mrf.mxu0 }
 0x309   : > { %v4503_v60 = vpop.f32.mrf.mxu1 }
 0x30a   : > { %v3044_v22 = vadd.f32 %v6293_v32, %v2842_v16  ;;  %v2845_v55 = vadd.f32 %v4503_v60, %v2643_v31  ;;  %v3085_v0 = vadd.f32 %v6404_v59, %v3046_v14  ;;  %v2645_v60 = vadd.f32 %v6144_v10, %v2443_v62 }
 0x30b   : > { %v2718_v37 = vpop.f32.mrf.mxu1 }
 0x30c   : > { %v3047_v15 = vadd.f32 %v6296_v4, %v2845_v55  ;;  %v2843_v11 = vadd.f32 %v2718_v37, %v2641_v52  ;;  %v3083_v32 = vadd.f32 %v6404_v59, %v3044_v22  ;;  %v3117_v4 = vmax.f32 %v3085_v0, 0.0  ;;  %v6428_v52 = vpop.f32.mrf.mxu0 }
 0x30d   : > { %v4506_v9 = vpop.f32.mrf.mxu1 }
 0x30e   : > { %v3086_v7 = vadd.f32 %v6404_v59, %v3047_v15  ;;  %v3045_v56 = vadd.f32 %v6302_v28, %v2843_v11  ;;  %v2848_v23 = vadd.f32 %v4506_v9, %v6258_v57  ;;  %v3115_v22 = vmax.f32 %v3083_v32, 0.0  ;;  %v6438_v62 = vpop.f32.mrf.mxu0 }
 0x30f   : > { %v2731_v14 = vpop.f32.mrf.mxu1 }
 0x310   : > { %v3118_v16 = vmax.f32 %v3086_v7, 0.0  ;;  %v3084_v31 = vadd.f32 %v6404_v59, %v3045_v56  ;;  %v2846_v25 = vadd.f32 %v2731_v14, %v6265_v50  ;;  %v3050_v29 = vadd.f32 %v6310_v20, %v2848_v23 }
 0x311   : > { %v4507_v58 = vpop.f32.mrf.mxu1 }
 0x312   : > { %v3148_v28 = vpack.c.bf16 %v3118_v16, %v3117_v4  ;;  %v3116_v55 = vmax.f32 %v3084_v31, 0.0  ;;  %v3048_v57 = vadd.f32 %v6315_v1, %v2846_v25  ;;  %v2849_v37 = vadd.f32 %v4507_v58, %v2647_v12  ;;  %v6790_v31 = vld [vmem:[#allocation21_spill] sm:$0xff]  ;;  %v6791_v12 = vld [vmem:[#allocation26_spill] sm:$0xff] }
 0x313   : > { %v2734_v0 = vpop.f32.mrf.mxu1  ;;  %v3089_v50 = vadd.f32 %v6404_v59, %v3050_v29  ;;  %v2447_v1 = vadd.f32 %v6286_v17, %v6112_v36  ;;  %v6446_v17 = vpop.f32.mrf.mxu0 }
 0x314   : > { %v3147_v15 = vpack.c.bf16 %v3116_v55, %v3115_v22  ;;  %v2847_v11 = vadd.f32 %v2734_v0, %v2645_v60  ;;  %v3051_v20 = vadd.f32 %v6318_v3, %v2849_v37  ;;  %v3087_v35 = vadd.f32 %v6404_v59, %v3048_v57  ;;  %v6792_v57 = vld [vmem:[#allocation25_spill] sm:$0xff] }
 0x315   : > { %v4510_v9 = vpop.f32.mrf.mxu1  ;;  %v3121_v23 = vmax.f32 %v3089_v50, 0.0  ;;  %v2649_v58 = vadd.f32 %v6791_v12, %v2447_v1  ;;  %v2451_v37 = vadd.f32 %v6308_v38, %v6792_v57  ;;  %v6793_v38 = vld [vmem:[#allocation22_spill] sm:$0xff] }
 0x316   : > { %v3049_v10 = vadd.f32 %v6324_v27, %v2847_v11  ;;  %v2852_v24 = vadd.f32 %v4510_v9, %v6278_v39  ;;  %4568 = vmatprep.mubr.msk.bf16.mxu1 %vm1101_vm1, %v3147_v15  ;;  %v3090_v32 = vadd.f32 %v6404_v59, %v3051_v20  ;;  %v3119_v4 = vmax.f32 %v3087_v35, 0.0 }
 0x317   : > { %v2747_v7 = vpop.f32.mrf.mxu1  ;;  %4569 = vmatmul.mubr.msk.bf16.vlgmr.msra.gmra.mxu1 %vm1101_vm1, %v3148_v28 }
 0x318   : > { %v3088_v3 = vadd.f32 %v6404_v59, %v3049_v10  ;;  %v3054_v56 = vadd.f32 %v6332_v41, %v2852_v24  ;;  %v2850_v27 = vadd.f32 %v2747_v7, %v6284_v51  ;;  %v3122_v39 = vmax.f32 %v3090_v32, 0.0  ;;  %v6794_v7 = vld [vmem:[#allocation24_spill] sm:$0xff] }
 0x319   : > { %v4511_v14 = vpop.f32.mrf.mxu1 }
 0x31a   : > { %v3120_v16 = vmax.f32 %v3088_v3, 0.0  ;;  %v2853_v36 = vadd.f32 %v4511_v14, %v6790_v31  ;;  %v3150_v25 = vpack.c.bf16 %v3122_v39, %v3121_v23  ;;  %v3052_v29 = vadd.f32 %v6338_v44, %v2850_v27  ;;  %v6457_v44 = vpop.f32.mrf.mxu0  ;;  %v6796_v31 = vld [vmem:[#allocation14_spill] sm:$0xff] }
 0x31b   : > { %v2750_v60 = vpop.f32.mrf.mxu1  ;;  %v3093_v41 = vadd.f32 %v6404_v59, %v3054_v56  ;;  %v6795_v56 = vld [vmem:[#allocation11_spill] sm:$0xff] }
 0x31c   : > { %v3149_v22 = vpack.c.bf16 %v3120_v16, %v3119_v4  ;;  %v3055_v51 = vadd.f32 %v6348_v2, %v2853_v36  ;;  %v2851_v28 = vadd.f32 %v2750_v60, %v2649_v58  ;;  %v3091_v11 = vadd.f32 %v6404_v59, %v3052_v29 }
 0x31d   : > { %v4514_v55 = vpop.f32.mrf.mxu1  ;;  %v3125_v2 = vmax.f32 %v3093_v41, 0.0  ;;  %v2653_v27 = vadd.f32 %v6795_v56, %v2451_v37  ;;  %v2455_v36 = vadd.f32 %v6330_v6, %v6796_v31 }
 0x31e   : > { %v3094_v0 = vadd.f32 %v6404_v59, %v3055_v51  ;;  %v2856_v15 = vadd.f32 %v4514_v55, %v6300_v13  ;;  %4572 = vmatprep.mubr.msk.bf16.mxu1 %vm1101_vm1, %v3149_v22  ;;  %v3053_v50 = vadd.f32 %v6356_v5, %v2851_v28  ;;  %v4557_v5 = vpop.f32.mrf.mxu0  ;;  %v3123_v23 = vmax.f32 %v3091_v11, 0.0  ;;  %v6797_v55 = vld [vmem:[#allocation23_spill] sm:$0xff] }
 0x31f   : > { %v2763_v20 = vpop.f32.mrf.mxu1  ;;  %4573 = vmatmul.mubr.msk.bf16.gmra.mxu1 %vm1101_vm1, %v3150_v25 }
 0x320   : > { %v3126_v9 = vmax.f32 %v3094_v0, 0.0  ;;  %v3058_v35 = vadd.f32 %v6366_v63, %v2856_v15  ;;  %v2854_v10 = vadd.f32 %v2763_v20, %v6793_v38  ;;  %v3092_v24 = vadd.f32 %v6404_v59, %v3053_v50  ;;  %v3000_v22 = vpop.f32.mrf.mxu0  ;;  %v6798_v0 = vld [vmem:[#allocation12_spill] sm:$0xff] }
 0x321   : > { %v4515_v13 = vpop.f32.mrf.mxu1  ;;  %v2657_v15 = vadd.f32 %v6798_v0, %v2455_v36  ;;  %v6800_v36 = vld [vmem:[#allocation18_spill] sm:$0xff] }
 0x322   : > { %v3152_v1 = vpack.c.bf16 %v3126_v9, %v3125_v2  ;;  %v3056_v32 = vadd.f32 %v6374_v46, %v2854_v10  ;;  %v2857_v3 = vadd.f32 %v4515_v13, %v6794_v7  ;;  %v3124_v39 = vmax.f32 %v3092_v24, 0.0  ;;  %v4560_v20 = vpop.f32.mrf.mxu0 }
 0x323   : > { %v2766_v14 = vpop.f32.mrf.mxu1  ;;  %v3097_v4 = vadd.f32 %v6404_v59, %v3058_v35 }
 0x324   : > { %v3059_v63 = vadd.f32 %v6384_v40, %v2857_v3  ;;  %v2855_v16 = vadd.f32 %v2766_v14, %v2653_v27  ;;  %v3151_v25 = vpack.c.bf16 %v3124_v39, %v3123_v23  ;;  %v3095_v46 = vadd.f32 %v6404_v59, %v3056_v32 }
 0x325   : > { %v4518_v29 = vpop.f32.mrf.mxu1  ;;  %v3129_v51 = vmax.f32 %v3097_v4, 0.0 }
 0x326   : > { %v3098_v12 = vadd.f32 %v6404_v59, %v3059_v63  ;;  %v3057_v58 = vadd.f32 %v6396_v33, %v2855_v16  ;;  %v2860_v60 = vadd.f32 %v4518_v29, %v6322_v8  ;;  %4576 = vmatprep.mubr.msk.bf16.mxu1 %vm1101_vm1, %v3151_v25  ;;  %v3127_v33 = vmax.f32 %v3095_v46, 0.0 }
 0x327   : > { %v2779_v41 = vpop.f32.mrf.mxu1  ;;  %4577 = vmatmul.mubr.msk.bf16.gmra.mxu1 %vm1101_vm1, %v3152_v1 }
 0x328   : > { %v3130_v40 = vmax.f32 %v3098_v12, 0.0  ;;  %v3096_v28 = vadd.f32 %v6404_v59, %v3057_v58  ;;  %v2858_v6 = vadd.f32 %v2779_v41, %v6797_v55  ;;  %v3062_v57 = vadd.f32 %v6408_v47, %v2860_v60  ;;  %v6801_v60 = vld [vmem:[#allocation16_spill] sm:$0xff] }
 0x329   : > { %v4519_v37 = vpop.f32.mrf.mxu1  ;;  %v2463_v41 = vadd.f32 %v6368_v53, %v6801_v60 }
 0x32a   : > { %v3154_v11 = vpack.c.bf16 %v3130_v40, %v3129_v51  ;;  %v3128_v8 = vmax.f32 %v3096_v28, 0.0  ;;  %v3060_v50 = vadd.f32 %v6420_v48, %v2858_v6  ;;  %v2861_v2 = vadd.f32 %v4519_v37, %v6335_v49  ;;  %v6799_v48 = vld [vmem:[#allocation15_spill] sm:$0xff]  ;;  %v3013_v49 = vpop.f32.mrf.mxu0 }
 0x32b   : > { %v2782_v9 = vpop.f32.mrf.mxu1  ;;  %v3101_v10 = vadd.f32 %v6404_v59, %v3062_v57  ;;  %v2459_v7 = vadd.f32 %v6350_v30, %v6799_v48 }
 0x32c   : > { %v3153_v35 = vpack.c.bf16 %v3128_v8, %v3127_v33  ;;  %v2859_v38 = vadd.f32 %v2782_v9, %v2657_v15  ;;  %v3063_v24 = vadd.f32 %v6428_v52, %v2861_v2  ;;  %v3099_v47 = vadd.f32 %v6404_v59, %v3060_v50  ;;  %v4561_v30 = vpop.f32.mrf.mxu0  ;;  %v6802_v8 = vld [vmem:[#allocation19_spill] sm:$0xff] }
 0x32d   : > { %v4522_v13 = vpop.f32.mrf.mxu1  ;;  %v2661_v25 = vadd.f32 %v6800_v36, %v2459_v7  ;;  %v2665_v50 = vadd.f32 %v6802_v8, %v2463_v41 }
 0x32e   : > { %v3061_v1 = vadd.f32 %v6438_v62, %v2859_v38  ;;  %v2864_v32 = vadd.f32 %v4522_v13, %v6342_v21  ;;  %4580 = vmatprep.mubr.msk.bf16.mxu1 %vm1101_vm1, %v3153_v35  ;;  %v3102_v3 = vadd.f32 %v6404_v59, %v3063_v24  ;;  %v3133_v62 = vmax.f32 %v3101_v10, 0.0  ;;  %v3016_v40 = vpop.f32.mrf.mxu0 }
 0x32f   : > { %v2795_v56 = vpop.f32.mrf.mxu1  ;;  %4581 = vmatmul.mubr.msk.bf16.gmra.mxu1 %vm1101_vm1, %v3154_v11  ;;  %v3131_v14 = vmax.f32 %v3099_v47, 0.0 }
 0x330   : > { %v3100_v27 = vadd.f32 %v6404_v59, %v3061_v1  ;;  %v3066_v52 = vadd.f32 %v6446_v17, %v2864_v32  ;;  %v2862_v23 = vadd.f32 %v2795_v56, %v6346_v19  ;;  %v3134_v39 = vmax.f32 %v3102_v3, 0.0  ;;  %v4564_v15 = vpop.f32.mrf.mxu0 }
 0x331   : > { %v4523_v21 = vpop.f32.mrf.mxu1 }
 0x332   : > { %v3132_v4 = vmax.f32 %v3100_v27, 0.0  ;;  %v2865_v63 = vadd.f32 %v4523_v21, %v6353_v18  ;;  %v3156_v16 = vpack.c.bf16 %v3134_v39, %v3133_v62  ;;  %v3064_v31 = vadd.f32 %v6457_v44, %v2862_v23  ;;  %v3029_v13 = vpop.f32.mrf.mxu0  ;;  %v6804_v62 = vld [vmem:[#allocation20_spill] sm:$0xff] }
 0x333   : > { %v2798_v29 = vpop.f32.mrf.mxu1  ;;  %v3105_v17 = vadd.f32 %v6404_v59, %v3066_v52 }
 0x334   : > { %v3155_v46 = vpack.c.bf16 %v3132_v4, %v3131_v14  ;;  %v3067_v19 = vadd.f32 %v4557_v5, %v2865_v63  ;;  %v2863_v12 = vadd.f32 %v2798_v29, %v2661_v25  ;;  %v3103_v44 = vadd.f32 %v6404_v59, %v3064_v31  ;;  %v4565_v52 = vpop.f32.mrf.mxu0 }
 0x335   : > { %v4526_v58 = vpop.f32.mrf.mxu1  ;;  %v3137_v6 = vmax.f32 %v3105_v17, 0.0 }
 0x336   : > { %v3106_v51 = vadd.f32 %v6404_v59, %v3067_v19  ;;  %v2868_v18 = vadd.f32 %v4526_v58, %v6360_v45  ;;  %4584 = vmatprep.mubr.msk.bf16.mxu1 %vm1101_vm1, %v3155_v46  ;;  %v3065_v28 = vadd.f32 %v3000_v22, %v2863_v12  ;;  %v3135_v2 = vmax.f32 %v3103_v44, 0.0  ;;  %v3032_v25 = vpop.f32.mrf.mxu0 }
 0x337   : > { %v2811_v55 = vpop.f32.mrf.mxu1  ;;  %4585 = vmatmul.mubr.msk.bf16.gmra.mxu1 %vm1101_vm1, %v3156_v16 }
 0x338   : > { %v3138_v57 = vmax.f32 %v3106_v51, 0.0  ;;  %v3070_v37 = vadd.f32 %v4560_v20, %v2868_v18  ;;  %v2866_v5 = vadd.f32 %v2811_v55, %v6364_v34  ;;  %v3104_v53 = vadd.f32 %v6404_v59, %v3065_v28  ;;  %v6803_v34 = vld [vmem:[#allocation17_spill] sm:$0xff]  ;;  %v6535_v18 = vld [vmem:[%s6709_s6] ss:$0 sm:$0xff] }
 0x339   : > { %v4527_v0 = vpop.f32.mrf.mxu1  ;;  %v2467_v10 = vadd.f32 %v6386_v42, %v6803_v34  ;;  %v4711_v28 = vld [vmem:[%s5026_s15] sm:$0xff]   ;;  %v4713_v34 = vld [vmem:[%s5026_s15 + $0x10] sm:$0xff]  }
 0x33a   : > { %v3158_v33 = vpack.c.bf16 %v3138_v57, %v3137_v6  ;;  %v3068_v45 = vadd.f32 %v3013_v49, %v2866_v5  ;;  %v2869_v11 = vadd.f32 %v4527_v0, %v6371_v43  ;;  %v3136_v22 = vmax.f32 %v3104_v53, 0.0 }
 0x33b   : > { %v2814_v9 = vpop.f32.mrf.mxu1  ;;  %v3109_v35 = vadd.f32 %v6404_v59, %v3070_v37  ;;  %v2669_v39 = vadd.f32 %v6804_v62, %v2467_v10  ;;  %v3387_v55 = vunpack.c.l.bf16 %v4711_v28  ;;  %v3391_v10 = vunpack.c.l.bf16 %v4713_v34 }
 0x33c   : > { %v3071_v20 = vadd.f32 %v4561_v30, %v2869_v11  ;;  %v2867_v38 = vadd.f32 %v2814_v9, %v2665_v50  ;;  %v3157_v24 = vpack.c.bf16 %v3136_v22, %v3135_v2  ;;  %v3107_v1 = vadd.f32 %v6404_v59, %v3068_v45  ;;  %v4712_v50 = vld [vmem:[%s5026_s15 + $0x18] sm:$0xff]  }
 0x33d   : > { %v4530_v47 = vpop.f32.mrf.mxu1  ;;  %v3141_v49 = vmax.f32 %v3109_v35, 0.0  ;;  %v3393_v2 = vunpack.c.l.bf16 %v4712_v50 }
 0x33e   : > { %v3110_v32 = vadd.f32 %v6404_v59, %v3071_v20  ;;  %v3069_v43 = vadd.f32 %v3016_v40, %v2867_v38  ;;  %v2872_v48 = vadd.f32 %v4530_v47, %v6378_v54  ;;  %4588 = vmatprep.mubr.msk.bf16.mxu1 %vm1101_vm1, %v3157_v24  ;;  %v3139_v21 = vmax.f32 %v3107_v1, 0.0  ;;  %v4710_v40 = vld [vmem:[%s5026_s15 + $0x8] sm:$0xff]  }
 0x33f   : > { %v2827_v7 = vpop.f32.mrf.mxu1  ;;  %4589 = vmatmul.mubr.msk.bf16.gmra.mxu1 %vm1101_vm1, %v3158_v33  ;;  %v3389_v44 = vunpack.c.l.bf16 %v4710_v40  ;;  %v3390_v53 = vunpack.c.h.bf16 %v4710_v40 }
 0x340   : > { %v3142_v3 = vmax.f32 %v3110_v32, 0.0  ;;  %v3108_v56 = vadd.f32 %v6404_v59, %v3069_v43  ;;  %v2870_v27 = vadd.f32 %v2827_v7, %v6382_v26  ;;  %v3074_v42 = vadd.f32 %v4564_v15, %v2872_v48 }
 0x341   : > { %v4531_v23 = vpop.f32.mrf.mxu1  ;;  %v3388_v15 = vunpack.c.h.bf16 %v4711_v28  ;;  %v3394_v43 = vunpack.c.h.bf16 %v4712_v50 }
 0x342   : > { %v3160_v14 = vpack.c.bf16 %v3142_v3, %v3141_v49  ;;  %v3140_v4 = vmax.f32 %v3108_v56, 0.0  ;;  %v3072_v54 = vadd.f32 %v3029_v13, %v2870_v27  ;;  %v2873_v63 = vadd.f32 %v4531_v23, %v6391_v61 }
 0x343   : > { %v2830_v30 = vpop.f32.mrf.mxu1  ;;  %v3113_v36 = vadd.f32 %v6404_v59, %v3074_v42  ;;  %v3392_v27 = vunpack.c.h.bf16 %v4713_v34 }
 0x344   : > { %v3159_v16 = vpack.c.bf16 %v3140_v4, %v3139_v21  ;;  %v2871_v31 = vadd.f32 %v2830_v30, %v2669_v39  ;;  %v3075_v26 = vadd.f32 %v4565_v52, %v2873_v63  ;;  %v3111_v29 = vadd.f32 %v6404_v59, %v3072_v54  ;;  %v4714_v63 = vld [vmem:[%s5026_s15 + $0x28] sm:$0xff]  }
 0x345   : > { %v3145_v61 = vmax.f32 %v3113_v36, 0.0  ;;  %v3397_v30 = vunpack.c.l.bf16 %v4714_v63 }
 0x346   : > { %v3073_v46 = vadd.f32 %v3032_v25, %v2871_v31  ;;  %4592 = vmatprep.mubr.msk.bf16.mxu1 %vm1101_vm1, %v3159_v16  ;;  %v3114_v17 = vadd.f32 %v6404_v59, %v3075_v26  ;;  %v3143_v58 = vmax.f32 %v3111_v29, 0.0  ;;  %v4715_v29 = vld [vmem:[%s5026_s15 + $0x20] sm:$0xff]  }
 0x347   : > { %4593 = vmatmul.mubr.msk.bf16.gmra.mxu1 %vm1101_vm1, %v3160_v14  ;;  %v3396_v28 = vunpack.c.h.bf16 %v4715_v29 }
 0x348   : > { %v3112_v19 = vadd.f32 %v6404_v59, %v3073_v46  ;;  %v3146_v12 = vmax.f32 %v3114_v17, 0.0  ;;  %v3395_v46 = vunpack.c.l.bf16 %v4715_v29 }
 0x34a   : > { %v3144_v60 = vmax.f32 %v3112_v19, 0.0  ;;  %v3162_v41 = vpack.c.bf16 %v3146_v12, %v3145_v61 }
 0x34c   : > { %v3161_v51 = vpack.c.bf16 %v3144_v60, %v3143_v58  ;;  %v3398_v60 = vunpack.c.h.bf16 %v4714_v63 }
 0x34e   : > { %4596 = vmatprep.mubr.msk.bf16.mxu1 %vm1101_vm1, %v3161_v51 }
 0x34f   : > { %4597 = vmatmul.mubr.msk.bf16.gmra.mxu1 %vm1101_vm1, %v3162_v41 }
 0x3d7   : > { %v4570_v59 = vpop.f32.mrf.mxu1 }
 0x3d8   : > { %v3269_v6 = vadd.f32 %v4570_v59, %v6535_v18 }
 0x3d9   : > { %v3260_v57 = vpop.f32.mrf.mxu1 }
 0x3da   : > { %v3421_v37 = vadd.f32 %v3389_v44, %v3269_v6  ;;  %v3261_v5 = vadd.f32 %v6535_v18, %v3260_v57  ;;  %v4716_v6 = vld [vmem:[%s5026_s15 + $0x38] sm:$0xff]  }
 0x3db   : > { %v4571_v0 = vpop.f32.mrf.mxu1  ;;  %v3401_v57 = vunpack.c.l.bf16 %v4716_v6 }
 0x3dc   : > { %v3453_v33 = vmax.f32 %v3421_v37, 0.0  ;;  %v3419_v45 = vadd.f32 %v3387_v55, %v3261_v5  ;;  %v3272_v11 = vadd.f32 %v4571_v0, %v6535_v18 }
 0x3dd   : > { %v3263_v8 = vpop.f32.mrf.mxu1 }
 0x3de   : > { %v3999_v22 = vpack.c.bf16 %v3453_v33, %v3453_v33  ;;  %v3451_v9 = vmax.f32 %v3419_v45, 0.0  ;;  %v3422_v35 = vadd.f32 %v3390_v53, %v3272_v11  ;;  %v3264_v20 = vadd.f32 %v6535_v18, %v3263_v8  ;;  %v4717_v33 = vld [vmem:[%s5026_s15 + $0x30] sm:$0xff]  }
 0x3df   : > { %v4574_v38 = vpop.f32.mrf.mxu1  ;;  %v3399_v45 = vunpack.c.l.bf16 %v4717_v33 }
 0x3e0   : > { %3614 = vst.msk [vmem:[%s6547_s30 + $0x8] sm:$0xf] %vm3611_vm7, %v3999_v22  ;;  %v3997_v24 = vpack.c.bf16 %v3451_v9, %v3451_v9  ;;  %v3454_v13 = vmax.f32 %v3422_v35, 0.0  ;;  %v3420_v47 = vadd.f32 %v3388_v15, %v3264_v20  ;;  %v3285_v1 = vadd.f32 %v4574_v38, %v6535_v18 }
 0x3e1   : > { %v3276_v32 = vpop.f32.mrf.mxu1  ;;  %v3402_v9 = vunpack.c.h.bf16 %v4716_v6 }
 0x3e2   : > { %3612 = vst.msk [vmem:[%s6547_s30] sm:$0xf] %vm3611_vm7, %v3997_v24  ;;  %v4000_v48 = vpack.c.bf16 %v3454_v13, %v3454_v13  ;;  %v3452_v7 = vmax.f32 %v3420_v47, 0.0  ;;  %v3425_v49 = vadd.f32 %v3393_v2, %v3285_v1  ;;  %v3277_v3 = vadd.f32 %v6535_v18, %v3276_v32 }
 0x3e3   : > { %v4575_v56 = vpop.f32.mrf.mxu1  ;;  %v3400_v24 = vunpack.c.h.bf16 %v4717_v33 }
 0x3e4   : > { %3615 = vst.msk [vmem:[%s6547_s30 + $0xc] sm:$0xf] %vm3611_vm7, %v4000_v48  ;;  %v3998_v42 = vpack.c.bf16 %v3452_v7, %v3452_v7  ;;  %v3457_v52 = vmax.f32 %v3425_v49, 0.0  ;;  %v3423_v23 = vadd.f32 %v3391_v10, %v3277_v3  ;;  %v3288_v62 = vadd.f32 %v4575_v56, %v6535_v18  ;;  %v4718_v48 = vld [vmem:[%s5026_s15 + $0x48] sm:$0xff]  }
 0x3e5   : > { %v3279_v39 = vpop.f32.mrf.mxu1  ;;  %v3405_v7 = vunpack.c.l.bf16 %v4718_v48 }
 0x3e6   : > { %3613 = vst.msk [vmem:[%s6547_s30 + $0x4] sm:$0xf] %vm3611_vm7, %v3998_v42  ;;  %v4003_v21 = vpack.c.bf16 %v3457_v52, %v3457_v52  ;;  %v3455_v14 = vmax.f32 %v3423_v23, 0.0  ;;  %v3426_v4 = vadd.f32 %v3394_v43, %v3288_v62  ;;  %v3280_v54 = vadd.f32 %v6535_v18, %v3279_v39  ;;  %v4719_v52 = vld [vmem:[%s5026_s15 + $0x40] sm:$0xff]  }
 0x3e7   : > { %v4578_v25 = vpop.f32.mrf.mxu1  ;;  %v3403_v23 = vunpack.c.l.bf16 %v4719_v52 }
 0x3e8   : > { %3618 = vst.msk [vmem:[%s6547_s30 + $0x18] sm:$0xf] %vm3611_vm7, %v4003_v21  ;;  %v4001_v16 = vpack.c.bf16 %v3455_v14, %v3455_v14  ;;  %v3458_v31 = vmax.f32 %v3426_v4, 0.0  ;;  %v3424_v36 = vadd.f32 %v3392_v27, %v3280_v54  ;;  %v3301_v26 = vadd.f32 %v4578_v25, %v6535_v18 }
 0x3e9   : > { %v3292_v61 = vpop.f32.mrf.mxu1  ;;  %v3406_v54 = vunpack.c.h.bf16 %v4718_v48  ;;  %v3404_v25 = vunpack.c.h.bf16 %v4719_v52 }
 0x3ea   : > { %3616 = vst.msk [vmem:[%s6547_s30 + $0x10] sm:$0xf] %vm3611_vm7, %v4001_v16  ;;  %v4004_v17 = vpack.c.bf16 %v3458_v31, %v3458_v31  ;;  %v3456_v19 = vmax.f32 %v3424_v36, 0.0  ;;  %v3429_v12 = vadd.f32 %v3397_v30, %v3301_v26  ;;  %v3293_v58 = vadd.f32 %v6535_v18, %v3292_v61  ;;  %v4720_v61 = vld [vmem:[%s5026_s15 + $0x58] sm:$0xff]  }
 0x3eb   : > { %v4579_v51 = vpop.f32.mrf.mxu1 }
 0x3ec   : > { %3619 = vst.msk [vmem:[%s6547_s30 + $0x1c] sm:$0xf] %vm3611_vm7, %v4004_v17  ;;  %v4002_v41 = vpack.c.bf16 %v3456_v19, %v3456_v19  ;;  %v3461_v40 = vmax.f32 %v3429_v12, 0.0  ;;  %v3427_v44 = vadd.f32 %v3395_v46, %v3293_v58  ;;  %v3304_v59 = vadd.f32 %v4579_v51, %v6535_v18 }
 0x3ed   : > { %v3295_v55 = vpop.f32.mrf.mxu1  ;;  %v3409_v12 = vunpack.c.l.bf16 %v4720_v61 }
 0x3ee   : > { %3617 = vst.msk [vmem:[%s6547_s30 + $0x14] sm:$0xf] %vm3611_vm7, %v4002_v41  ;;  %v4007_v37 = vpack.c.bf16 %v3461_v40, %v3461_v40  ;;  %v3459_v5 = vmax.f32 %v3427_v44, 0.0  ;;  %v3430_v53 = vadd.f32 %v3398_v60, %v3304_v59  ;;  %v3296_v0 = vadd.f32 %v6535_v18, %v3295_v55  ;;  %v4721_v44 = vld [vmem:[%s5026_s15 + $0x50] sm:$0xff]  }
 0x3ef   : > { %v4582_v15 = vpop.f32.mrf.mxu1  ;;  %v3407_v59 = vunpack.c.l.bf16 %v4721_v44 }
 0x3f0   : > { %3622 = vst.msk [vmem:[%s6547_s30 + $0x28] sm:$0xf] %vm3611_vm7, %v4007_v37  ;;  %v4005_v11 = vpack.c.bf16 %v3459_v5, %v3459_v5  ;;  %v3462_v8 = vmax.f32 %v3430_v53, 0.0  ;;  %v3428_v50 = vadd.f32 %v3396_v28, %v3296_v0  ;;  %v3317_v2 = vadd.f32 %v4582_v15, %v6535_v18 }
 0x3f1   : > { %v3308_v22 = vpop.f32.mrf.mxu1  ;;  %v3410_v5 = vunpack.c.h.bf16 %v4720_v61 }
 0x3f2   : > { %3620 = vst.msk [vmem:[%s6547_s30 + $0x20] sm:$0xf] %vm3611_vm7, %v4005_v11  ;;  %v4008_v35 = vpack.c.bf16 %v3462_v8, %v3462_v8  ;;  %v3460_v20 = vmax.f32 %v3428_v50, 0.0  ;;  %v3433_v38 = vadd.f32 %v3401_v57, %v3317_v2  ;;  %v3309_v34 = vadd.f32 %v6535_v18, %v3308_v22 }
 0x3f3   : > { %v4583_v10 = vpop.f32.mrf.mxu1  ;;  %v3408_v11 = vunpack.c.h.bf16 %v4721_v44 }
 0x3f4   : > { %3623 = vst.msk [vmem:[%s6547_s30 + $0x2c] sm:$0xf] %vm3611_vm7, %v4008_v35  ;;  %v4006_v13 = vpack.c.bf16 %v3460_v20, %v3460_v20  ;;  %v3465_v47 = vmax.f32 %v3433_v38, 0.0  ;;  %v3431_v1 = vadd.f32 %v3399_v45, %v3309_v34  ;;  %v3320_v32 = vadd.f32 %v4583_v10, %v6535_v18  ;;  %v4722_v35 = vld [vmem:[%s5026_s15 + $0x68] sm:$0xff]  }
 0x3f5   : > { %v3311_v43 = vpop.f32.mrf.mxu1  ;;  %v3413_v20 = vunpack.c.l.bf16 %v4722_v35 }
 0x3f6   : > { %3621 = vst.msk [vmem:[%s6547_s30 + $0x24] sm:$0xf] %vm3611_vm7, %v4006_v13  ;;  %v4011_v49 = vpack.c.bf16 %v3465_v47, %v3465_v47  ;;  %v3463_v3 = vmax.f32 %v3431_v1, 0.0  ;;  %v3434_v56 = vadd.f32 %v3402_v9, %v3320_v32  ;;  %v3312_v27 = vadd.f32 %v6535_v18, %v3311_v43  ;;  %v4723_v47 = vld [vmem:[%s5026_s15 + $0x60] sm:$0xff]  }
 0x3f7   : > { %v4586_v42 = vpop.f32.mrf.mxu1  ;;  %v3411_v1 = vunpack.c.l.bf16 %v4723_v47 }
 0x3f8   : > { %3626 = vst.msk [vmem:[%s6547_s30 + $0x38] sm:$0xf] %vm3611_vm7, %v4011_v49  ;;  %v4009_v62 = vpack.c.bf16 %v3463_v3, %v3463_v3  ;;  %v3466_v39 = vmax.f32 %v3434_v56, 0.0  ;;  %v3432_v21 = vadd.f32 %v3400_v24, %v3312_v27  ;;  %v3333_v14 = vadd.f32 %v4586_v42, %v6535_v18 }
 0x3f9   : > { %v3324_v4 = vpop.f32.mrf.mxu1  ;;  %v3414_v3 = vunpack.c.h.bf16 %v4722_v35 }
 0x3fa   : > { %3624 = vst.msk [vmem:[%s6547_s30 + $0x30] sm:$0xf] %vm3611_vm7, %v4009_v62  ;;  %v4012_v63 = vpack.c.bf16 %v3466_v39, %v3466_v39  ;;  %v3464_v30 = vmax.f32 %v3432_v21, 0.0  ;;  %v3437_v16 = vadd.f32 %v3405_v7, %v3333_v14  ;;  %v3325_v31 = vadd.f32 %v6535_v18, %v3324_v4 }
 0x3fb   : > { %v4587_v36 = vpop.f32.mrf.mxu1  ;;  %v3412_v62 = vunpack.c.h.bf16 %v4723_v47 }
 0x3fc   : > { %3627 = vst.msk [vmem:[%s6547_s30 + $0x3c] sm:$0xf] %vm3611_vm7, %v4012_v63  ;;  %v4010_v26 = vpack.c.bf16 %v3464_v30, %v3464_v30  ;;  %v3469_v29 = vmax.f32 %v3437_v16, 0.0  ;;  %v3435_v46 = vadd.f32 %v3403_v23, %v3325_v31  ;;  %v3336_v17 = vadd.f32 %v4587_v36, %v6535_v18  ;;  %v4724_v63 = vld [vmem:[%s5026_s15 + $0x78] sm:$0xff]  }
 0x3fd   : > { %v3327_v19 = vpop.f32.mrf.mxu1  ;;  %v3417_v30 = vunpack.c.l.bf16 %v4724_v63 }
 0x3fe   : > { %3625 = vst.msk [vmem:[%s6547_s30 + $0x34] sm:$0xf] %vm3611_vm7, %v4010_v26  ;;  %v4015_v58 = vpack.c.bf16 %v3469_v29, %v3469_v29  ;;  %v3467_v60 = vmax.f32 %v3435_v46, 0.0  ;;  %v3438_v41 = vadd.f32 %v3406_v54, %v3336_v17  ;;  %v3328_v51 = vadd.f32 %v6535_v18, %v3327_v19  ;;  %v4725_v29 = vld [vmem:[%s5026_s15 + $0x70] sm:$0xff]   ;;  %s3658_s15 = sshll.u32 %s6547_s30, 4  ;;  %s6656_s15 = int_to_ptr.vmem [resolvable:$true] %s3658_s15 }
 0x3ff   : > { %v4590_v40 = vpop.f32.mrf.mxu1  ;;  %v3415_v46 = vunpack.c.l.bf16 %v4725_v29  ;;  %s4780_s29 = scalar_lea.vmem %s6656_s15, 2048  ;;  %p4787_p10 = scmp.lt.s32.totalorder %s6656_s15, %s4785_s12 }
 0x400   : > { %3630 = vst.msk [vmem:[%s6547_s30 + $0x48] sm:$0xf] %vm3611_vm7, %v4015_v58  ;;  %v4013_v28 = vpack.c.bf16 %v3467_v60, %v3467_v60  ;;  %v3470_v55 = vmax.f32 %v3438_v41, 0.0  ;;  %v3436_v6 = vadd.f32 %v3404_v25, %v3328_v51  ;;  %v3349_v57 = vadd.f32 %v4590_v40, %v6535_v18  ;;  %p4781_p3 = scmp.ne.s32.totalorder %s6656_s15, %s4780_s29  ;;  %p4788_p12 = scmp.lt.s32.totalorder %s4786_s10, %s4780_s29 }
 0x401   : > { %v3340_v37 = vpop.f32.mrf.mxu1  ;;  %v3418_v60 = vunpack.c.h.bf16 %v4724_v63 }
 0x402   : > { %3628 = vst.msk [vmem:[%s6547_s30 + $0x40] sm:$0xf] %vm3611_vm7, %v4013_v28  ;;  %v4016_v53 = vpack.c.bf16 %v3470_v55, %v3470_v55  ;;  %v3468_v0 = vmax.f32 %v3436_v6, 0.0  ;;  %v3441_v15 = vadd.f32 %v3409_v12, %v3349_v57  ;;  %v3341_v33 = vadd.f32 %v6535_v18, %v3340_v37  ;;  %p4782_p7 = pnand %p4781_p3, %p6805_p11  ;;  %p4789_p13 = por %p4788_p12, %p4787_p10 }
 0x403   : > { %v4591_v45 = vpop.f32.mrf.mxu1  ;;  %v3416_v28 = vunpack.c.h.bf16 %v4725_v29 }
 0x404   : > { %3631 = vst.msk [vmem:[%s6547_s30 + $0x4c] sm:$0xf] %vm3611_vm7, %v4016_v53  ;;  %v4014_v8 = vpack.c.bf16 %v3468_v0, %v3468_v0  ;;  %v3473_v50 = vmax.f32 %v3441_v15, 0.0  ;;  %v3439_v2 = vadd.f32 %v3407_v59, %v3341_v33  ;;  %v3352_v22 = vadd.f32 %v4591_v45, %v6535_v18  ;;  %p4783_p9 = pneg %p4782_p7 }
 0x405   : > { %v3343_v9 = vpop.f32.mrf.mxu1 }
 0x406   : > { %3629 = vst.msk [vmem:[%s6547_s30 + $0x44] sm:$0xf] %vm3611_vm7, %v4014_v8  ;;  %v4019_v38 = vpack.c.bf16 %v3473_v50, %v3473_v50  ;;  %v3471_v34 = vmax.f32 %v3439_v2, 0.0  ;;  %v3442_v10 = vadd.f32 %v3410_v5, %v3352_v22  ;;  %v3344_v24 = vadd.f32 %v6535_v18, %v3343_v9  ;;  %p4790_p0 = pnand %p4789_p13, %p4783_p9 }
 0x407   : > { %v4594_v13 = vpop.f32.mrf.mxu1 }
 0x408   : > { %3634 = vst.msk [vmem:[%s6547_s30 + $0x58] sm:$0xf] %vm3611_vm7, %v4019_v38  ;;  %v4017_v32 = vpack.c.bf16 %v3471_v34, %v3471_v34  ;;  %v3474_v43 = vmax.f32 %v3442_v10, 0.0  ;;  %v3440_v48 = vadd.f32 %v3408_v11, %v3344_v24  ;;  %v3365_v7 = vadd.f32 %v4594_v13, %v6535_v18 }
 0x409   : > { %v3356_v49 = vpop.f32.mrf.mxu1 }
 0x40a   : > { %3632 = vst.msk [vmem:[%s6547_s30 + $0x50] sm:$0xf] %vm3611_vm7, %v4017_v32  ;;  %v4020_v56 = vpack.c.bf16 %v3474_v43, %v3474_v43  ;;  %v3472_v27 = vmax.f32 %v3440_v48, 0.0  ;;  %v3445_v42 = vadd.f32 %v3413_v20, %v3365_v7  ;;  %v3357_v52 = vadd.f32 %v6535_v18, %v3356_v49 }
 0x40b   : > { %v4595_v23 = vpop.f32.mrf.mxu1 }
 0x40c   : > { %3635 = vst.msk [vmem:[%s6547_s30 + $0x5c] sm:$0xf] %vm3611_vm7, %v4020_v56  ;;  %v4018_v39 = vpack.c.bf16 %v3472_v27, %v3472_v27  ;;  %v3477_v21 = vmax.f32 %v3445_v42, 0.0  ;;  %v3443_v14 = vadd.f32 %v3411_v1, %v3357_v52  ;;  %v3368_v4 = vadd.f32 %v4595_v23, %v6535_v18 }
 0x40d   : > { %v3359_v54 = vpop.f32.mrf.mxu1 }
 0x40e   : > { %3633 = vst.msk [vmem:[%s6547_s30 + $0x54] sm:$0xf] %vm3611_vm7, %v4018_v39  ;;  %v4023_v16 = vpack.c.bf16 %v3477_v21, %v3477_v21  ;;  %v3475_v31 = vmax.f32 %v3443_v14, 0.0  ;;  %v3446_v36 = vadd.f32 %v3414_v3, %v3368_v4  ;;  %v3360_v25 = vadd.f32 %v6535_v18, %v3359_v54 }
 0x40f   : > { %v4598_v26 = vpop.f32.mrf.mxu1 }
 0x410   : > { %3638 = vst.msk [vmem:[%s6547_s30 + $0x68] sm:$0xf] %vm3611_vm7, %v4023_v16  ;;  %v4021_v17 = vpack.c.bf16 %v3475_v31, %v3475_v31  ;;  %v3478_v19 = vmax.f32 %v3446_v36, 0.0  ;;  %v3444_v61 = vadd.f32 %v3412_v62, %v3360_v25  ;;  %v3381_v12 = vadd.f32 %v4598_v26, %v6535_v18 }
 0x411   : > { %v3372_v58 = vpop.f32.mrf.mxu1 }
 0x412   : > { %3636 = vst.msk [vmem:[%s6547_s30 + $0x60] sm:$0xf] %vm3611_vm7, %v4021_v17  ;;  %v4024_v41 = vpack.c.bf16 %v3478_v19, %v3478_v19  ;;  %v3476_v51 = vmax.f32 %v3444_v61, 0.0  ;;  %v3449_v40 = vadd.f32 %v3417_v30, %v3381_v12  ;;  %v3373_v44 = vadd.f32 %v6535_v18, %v3372_v58 }
 0x413   : > { %v4599_v59 = vpop.f32.mrf.mxu1 }
 0x414   : > { %3639 = vst.msk [vmem:[%s6547_s30 + $0x6c] sm:$0xf] %vm3611_vm7, %v4024_v41  ;;  %v4022_v55 = vpack.c.bf16 %v3476_v51, %v3476_v51  ;;  %v3481_v6 = vmax.f32 %v3449_v40, 0.0  ;;  %v3447_v57 = vadd.f32 %v3415_v46, %v3373_v44  ;;  %v3384_v37 = vadd.f32 %v4599_v59, %v6535_v18 }
 0x415   : > { %v3375_v5 = vpop.f32.mrf.mxu1 }
 0x416   : > { %3637 = vst.msk [vmem:[%s6547_s30 + $0x64] sm:$0xf] %vm3611_vm7, %v4022_v55  ;;  %v4027_v53 = vpack.c.bf16 %v3481_v6, %v3481_v6  ;;  %v3479_v0 = vmax.f32 %v3447_v57, 0.0  ;;  %v3450_v15 = vadd.f32 %v3418_v60, %v3384_v37  ;;  %v3376_v33 = vadd.f32 %v6535_v18, %v3375_v5 }
 0x418   : > { %3642 = vst.msk [vmem:[%s6547_s30 + $0x78] sm:$0xf] %vm3611_vm7, %v4027_v53  ;;  %v4025_v45 = vpack.c.bf16 %v3479_v0, %v3479_v0  ;;  %v3482_v11 = vmax.f32 %v3450_v15, 0.0  ;;  %v3448_v8 = vadd.f32 %v3416_v28, %v3376_v33 }
 0x41a   : > { %3640 = vst.msk [vmem:[%s6547_s30 + $0x70] sm:$0xf] %vm3611_vm7, %v4025_v45  ;;  %v4028_v50 = vpack.c.bf16 %v3482_v11, %v3482_v11  ;;  %v3480_v2 = vmax.f32 %v3448_v8, 0.0 }
 0x41c   : > { %3643 = vst.msk [vmem:[%s6547_s30 + $0x7c] sm:$0xf] %vm3611_vm7, %v4028_v50  ;;  %v4026_v18 = vpack.c.bf16 %v3480_v2, %v3480_v2 }
 0x41e   : > { %3641 = vst.msk [vmem:[%s6547_s30 + $0x74] sm:$0xf] %vm3611_vm7, %v4026_v18 }
 0x41f   : > { %4793 = shalt.err (!%p4790_p0)
}
 0x420   : > { %s4794_s9 = scalar_lea.hbm %s6654_s23, 2048  ;;  %s4798_s20 = scalar_lea.hbm %s6710_s7, 4096 }
 0x421   : > { %p4795_p5 = scmp.ne.s32.totalorder %s6654_s23, %s4794_s9  ;;  %p4799_p4 = scmp.lt.s32.totalorder %s6654_s23, %s6710_s7 }
 0x422   : > { %p4800_p6 = scmp.lt.s32.totalorder %s4798_s20, %s4794_s9 }
 0x423   : > { %p4796_p2 = pnand %p4795_p5, %p6805_p11 }
 0x424   : > { %p4801_p8 = por %p4800_p6, %p4799_p4 }
 0x425   : > { %p4797_p1 = pneg %p4796_p2 }
 0x427   : > { %p4802_p3 = pnand %p4801_p8, %p4797_p1 }
 0x429   : > { %4805 = shalt.err (!%p4802_p3)
}
 0x42a   : > { %s4856_s16 = smov 64   ;;  %s4857_s11 = smov 4  }
 0x42b   : > { %4608 = dma.vmem_to_hbm [thread:$0]  (%p6805_p11), %s6656_s15, 2048, %s6654_s23, %s3645_s28, %s4856_s16, %s4856_s16, %s4857_s11  }
 0x42c PF: > { %s3673_s29 = sand.u32 1, %s4836_s24   ;;  %p6806_p7 = scmp.ne.s32.totalorder %s6723_s8, 0 }
 0x42d   : > { %p6807_p9 = scmp.ge.s32.totalorder %s4848_s27, 2  ;;  %s3674_s17 = scalar_lea.sflag [#allocation4], %s3673_s29 }
 0x42f   : > { %p4619_p10 = pnand %p6807_p9, %p6806_p7 }
 0x431   : > { %p4620_p12 = pneg %p4619_p10 }
 0x433   : > { %4831 = dma.done.wait (%p4620_p12), %s3674_s17, 2048  }
 0x434   : > { %4833 = vsyncadd (%p4620_p12), %s3674_s17, 4294965248  ;;  %p21_p13 = scmp.ge.s32.totalorder %s4952_s13, 4   ;;  %s6808_s24 = smov %s4840_s25 }
 0x435   : > { %s6809_s25 = smov %s4844_s26  ;;  %s6810_s26 = smov %s4972_s21 }
 0x436   : > { %s6811_s27 = smov %s4952_s13  ;;  %23 = sbr.rel (!%p21_p13) target bundleno = 8 (0x8), region = 105 }
 0x43b   :  { %3679 = vsyncpa [#allocation3], 1 }
 0x43c   :  { %3681 = vsyncpa [#allocation3 + $0x1], 1 }
 0x43d   :  { %3682 = vsyncpa [#allocation6], 1 }
 0x43e   :  { %3683 = vsyncpa [#allocation4], 1 }
 0x43f   :  { %3685 = vsyncpa [#allocation4 + $0x1], 1 }

</bundles_post_ra>
